<compile_context>
chip_gen: v5e
topology: v5e:2x2
jax: 0.10.0
libtpu: 0.0.40
codegen_flags: <defaults>
</compile_context>

<pallas_src>
import math
import functools

import jax
import jax.numpy as jnp
from jax.experimental import pallas as pl
from jax.experimental.pallas import tpu as pltpu


# ----------------------------------------------------------------------------
# Fused Pallas kernel: classification head + regression head, one image / step.
# ----------------------------------------------------------------------------
def _retina_heads_kernel(x_ref, mask_ref, wh_ref, bh_ref, wc_ref, bc_ref,
                         wr_ref, br_ref, conf_ref, delta_ref, act_ref,
                         *, H, W, n_hidden):
    Wp = W + 2
    P = (H + 2) * Wp          # flattened padded plane size
    margin = Wp + 1           # max |tap offset| = Wp + 1

    mask = mask_ref[...]      # (1, P) f32: 1 inside HxW interior, 0 on the 1-px halo
    tap_starts = [dy * Wp + dx for dy in range(3) for dx in range(3)]

    def conv3x3(w_mat, b_col):
        # Build the 9-tap im2col strip from lane-shifted views of the padded plane:
        # one fat MXU matmul (Cout, 9*Cin) x (9*Cin, P) instead of 9 thin ones.
        strip = jnp.concatenate([act_ref[:, s:s + P] for s in tap_starts], axis=0)
        out = jnp.dot(w_mat, strip, preferred_element_type=jnp.float32)  # (Cout, P) f32
        return out + b_col                                               # bias (Cout, 1)

    def store_interior(vals, o_ref):
        # (Cout, P) padded plane -> NCHW-flattened output block (1, Cout, H*W).
        for h in range(H):
            src = (h + 1) * Wp + 1
            o_ref[0, :, h * W:(h + 1) * W] = vals[:, src:src + W].astype(o_ref.dtype)

    # Zero the plane + margins once; margins are never written again, so every
    # out-of-plane tap read is an exact zero (SAME padding).
    act_ref[...] = jnp.zeros_like(act_ref)

    for head in range(2):                           # 0 = classification, 1 = regression
        # Both heads consume the same (already zero-padded, bf16) feature plane.
        act_ref[:, margin:margin + P] = x_ref[0]
        for layer in range(n_hidden):
            idx = head * n_hidden + layer
            out = conv3x3(wh_ref[idx], bh_ref[idx])
            # ReLU, then re-zero the SAME-padding halo so the next conv sees padding.
            act_ref[:, margin:margin + P] = (
                jnp.maximum(out, 0.0) * mask).astype(jnp.bfloat16)
        if head == 0:
            store_interior(conv3x3(wc_ref[...], bc_ref[...]), conf_ref)
        else:
            store_interior(conv3x3(wr_ref[...], br_ref[...]), delta_ref)


def retina_heads_fused(x_nchw, packed):
    """Run both RetinaNet heads on one feature level.

    Returns (bbox_delta_raw, conf_raw) with shapes (N, 4*A, H*W) and
    (N, num_classes*A, H*W) — identical memory order to the PyTorch conv outputs.
    """
    N, C, H, W = x_nchw.shape
    Hp, Wp = H + 2, W + 2
    P = Hp * Wp
    margin = Wp + 1
    Ccls = packed["w_cls"].shape[0]
    Creg = packed["w_reg"].shape[0]
    n_hidden = packed["w_hidden"].shape[0] // 2

    # Zero-pad ONCE (shared by both heads / all 10 convs), flatten the plane, bf16.
    x_flat = jnp.pad(x_nchw, ((0, 0), (0, 0), (1, 1), (1, 1)))
    x_flat = x_flat.reshape(N, C, P).astype(jnp.bfloat16)

    # Interior mask of the padded plane (re-applied between layers inside the kernel).
    row = jnp.arange(Hp, dtype=jnp.int32)[:, None]
    col = jnp.arange(Wp, dtype=jnp.int32)[None, :]
    mask = ((row >= 1) & (row <= H) & (col >= 1) & (col <= W))
    mask = mask.astype(jnp.float32).reshape(1, P)

    kern = functools.partial(_retina_heads_kernel, H=H, W=W, n_hidden=n_hidden)
    conf, delta = pl.pallas_call(
        kern,
        out_shape=(jax.ShapeDtypeStruct((N, Ccls, H * W), jnp.float32),
                   jax.ShapeDtypeStruct((N, Creg, H * W), jnp.float32)),
        grid_spec=pltpu.PrefetchScalarGridSpec(
            num_scalar_prefetch=0,
            grid=(N,),
            in_specs=[
                pl.BlockSpec((1, C, P), lambda n: (n, 0, 0)),                  # features
                pl.BlockSpec((1, P), lambda n: (0, 0)),                        # halo mask
                pl.BlockSpec((2 * n_hidden, C, 9 * C), lambda n: (0, 0, 0)),   # hidden W
                pl.BlockSpec((2 * n_hidden, C, 1), lambda n: (0, 0, 0)),       # hidden b
                pl.BlockSpec((Ccls, 9 * C), lambda n: (0, 0)),                 # cls final W
                pl.BlockSpec((Ccls, 1), lambda n: (0, 0)),                     # cls final b
                pl.BlockSpec((Creg, 9 * C), lambda n: (0, 0)),                 # reg final W
                pl.BlockSpec((Creg, 1), lambda n: (0, 0)),                     # reg final b
            ],
            out_specs=[
                pl.BlockSpec((1, Ccls, H * W), lambda n: (n, 0, 0)),
                pl.BlockSpec((1, Creg, H * W), lambda n: (n, 0, 0)),
            ],
            scratch_shapes=[pltpu.VMEM((C, P + 2 * margin), jnp.bfloat16)],
        ),
        compiler_params=pltpu.CompilerParams(
            dimension_semantics=("parallel",)),
    )(x_flat, mask, packed["w_hidden"], packed["b_hidden"],
      packed["w_cls"], packed["b_cls"], packed["w_reg"], packed["b_reg"])
    return delta, conf


# ----------------------------------------------------------------------------
# Parameters: deterministic "improved weight init" (normal std=0.01, zero bias,
# classification prior on the first A entries of the last cls bias — this matches
# the reference code's `[:anchors_per_class]` slice).
# ----------------------------------------------------------------------------
def init_retina_net_params(key, C, num_classes, A):
    p = 0.01
    n_hidden = 4

    def conv_w(key, cin, cout):
        key, sub = jax.random.split(key)
        return jax.random.normal(sub, (3, 3, cin, cout), jnp.float32) * 0.01, key

    params = {}
    for name, c_final in (("cls", num_classes * A), ("reg", 4 * A)):
        ws, bs = [], []
        for _ in range(n_hidden):
            w, key = conv_w(key, C, C)
            ws.append(w)
            bs.append(jnp.zeros((C,), jnp.float32))
        wf, key = conv_w(key, C, c_final)
        bf = jnp.zeros((c_final,), jnp.float32)
        params[name] = (ws, bs, wf, bf)

    anchors_per_class = (num_classes * A) // num_classes  # == A
    cls_ws, cls_bs, cls_wf, cls_bf = params["cls"]
    cls_bf = cls_bf.at[:anchors_per_class].set(-math.log((1 - p) / p))
    params["cls"] = (cls_ws, cls_bs, cls_wf, cls_bf)
    return params


def pack_params(params):
    """Pack HWIO conv weights into the fused-kernel layout:
    (Cout, 9*Cin) bf16 matmul matrices + (Cout, 1) f32 biases."""
    def pack_w(w_hwio):                      # (3,3,Cin,Cout) -> (Cout, 9*Cin)
        cin, cout = w_hwio.shape[2], w_hwio.shape[3]
        return w_hwio.reshape(9 * cin, cout).T

    cls_ws, cls_bs, cls_wf, cls_bf = params["cls"]
    reg_ws, reg_bs, reg_wf, reg_bf = params["reg"]
    w_hidden = jnp.stack([pack_w(w) for w in list(cls_ws) + list(reg_ws)]
                         ).astype(jnp.bfloat16)                       # (8, C, 9C)
    b_hidden = jnp.stack(list(cls_bs) + list(reg_bs))[:, :, None]      # (8, C, 1)
    return dict(
        w_hidden=w_hidden,
        b_hidden=b_hidden.astype(jnp.float32),
        w_cls=pack_w(cls_wf).astype(jnp.bfloat16),
        b_cls=cls_bf[:, None].astype(jnp.float32),
        w_reg=pack_w(reg_wf).astype(jnp.bfloat16),
        b_reg=reg_bf[:, None].astype(jnp.float32),
    )


# ----------------------------------------------------------------------------
# Forward pass (training-mode semantics of RetinaNet.forward)
# ----------------------------------------------------------------------------
def regress_boxes(features_nchw, packed, num_classes):
    locations, confidences = [], []
    for x in features_nchw:
        N = x.shape[0]
        delta_raw, conf_raw = retina_heads_fused(x, packed)
        locations.append(delta_raw.reshape(N, 4, -1))          # == .view(N, 4, -1)
        confidences.append(conf_raw.reshape(N, num_classes, -1))
    return jnp.concatenate(locations, axis=2), jnp.concatenate(confidences, axis=2)


def retina_net_forward(img_nchw, params, num_classes):
    features = [img_nchw]   # TODO(synk): identity backbone stand-in
    packed = pack_params(params)
    return regress_boxes(features, packed, num_classes)


# ----------------------------------------------------------------------------
# Pure-JAX (XLA conv, f32) reference of the same forward, for correctness check.
# ----------------------------------------------------------------------------
def _conv3x3_ref(x, w_hwio, b):
    y = jax.lax.conv_general_dilated(
        x, w_hwio, window_strides=(1, 1), padding="SAME",
        dimension_numbers=("NCHW", "HWIO", "NCHW"))
    return y + b.reshape(1, -1, 1, 1)


def retina_net_reference(img, params, num_classes):
    def run_head(x, ws, bs, wf, bf):
        h = x
        for w, b in zip(ws, bs):
            h = jnp.maximum(_conv3x3_ref(h, w, b), 0.0)
        return _conv3x3_ref(h, wf, bf)

    N = img.shape[0]
    cls_ws, cls_bs, cls_wf, cls_bf = params["cls"]
    reg_ws, reg_bs, reg_wf, reg_bf = params["reg"]
    conf = run_head(img, cls_ws, cls_bs, cls_wf, cls_bf).reshape(N, num_classes, -1)
    delta = run_head(img, reg_ws, reg_bs, reg_wf, reg_bf).reshape(N, 4, -1)
    return delta, conf


if __name__ == "__main__":
    # Small deterministic example consistent with the module:
    #   N=2 images, C=32 feature channels, 8x8 feature map, num_classes=4, A=2.
    N, C, H, W = 2, 32, 8, 8
    num_classes, A = 4, 2

    key = jax.random.PRNGKey(0)
    key, kx = jax.random.split(key)
    img = jax.random.normal(kx, (N, C, H, W), jnp.float32)
    params = init_retina_net_params(key, C, num_classes, A)

    fwd = jax.jit(functools.partial(retina_net_forward, num_classes=num_classes))
    bbox_delta, confs = fwd(img, params)
    jax.block_until_ready((bbox_delta, confs))

    assert bbox_delta.shape == (N, 4, A * H * W), bbox_delta.shape
    assert confs.shape == (N, num_classes, A * H * W), confs.shape

    # Correctness check vs. f32 XLA-conv reference (tolerance loose for bf16 matmuls).
    delta_ref, conf_ref = jax.jit(
        functools.partial(retina_net_reference, num_classes=num_classes))(img, params)
    jax.block_until_ready((delta_ref, conf_ref))

    def max_rel_err(a, b):
        return float(jnp.max(jnp.abs(a - b)) / (jnp.max(jnp.abs(b)) + 1e-8))

    assert max_rel_err(bbox_delta, delta_ref) < 0.1, max_rel_err(bbox_delta, delta_ref)
    assert max_rel_err(confs, conf_ref) < 0.1, max_rel_err(confs, conf_ref)

    print("KERNEL_OK")
</pallas_src>

<mosaic_0001>
module attributes {stable_mosaic.version = 11 : i64} {
  func.func @_retina_heads_kernel(%arg0: i32, %arg1: memref<1x32x100xbf16, #tpu.memory_space<vmem>>, %arg2: memref<1x100xf32, #tpu.memory_space<vmem>>, %arg3: memref<8x32x288xbf16, #tpu.memory_space<vmem>>, %arg4: memref<8x32x1xf32, #tpu.memory_space<vmem>>, %arg5: memref<8x288xbf16, #tpu.memory_space<vmem>>, %arg6: memref<8x1xf32, #tpu.memory_space<vmem>>, %arg7: memref<8x288xbf16, #tpu.memory_space<vmem>>, %arg8: memref<8x1xf32, #tpu.memory_space<vmem>>, %arg9: memref<1x8x64xf32, #tpu.memory_space<vmem>>, %arg10: memref<1x8x64xf32, #tpu.memory_space<vmem>>, %arg11: memref<32x122xbf16, #tpu.memory_space<vmem>>) attributes {dimension_semantics = [#tpu.dimension_semantics<parallel>], iteration_bounds = array<i64: 2>, scalar_prefetch = 0 : i64, scratch_operands = 1 : i64, tpu.core_type = #tpu.core_type<tc>, window_params = [{transform_indices = @transform_0, window_bounds = array<i64: 1, 32, 100>}, {pipeline_mode = #tpu.pipeline_mode<synchronous>, transform_indices = @transform_1, window_bounds = array<i64: 1, 100>}, {pipeline_mode = #tpu.pipeline_mode<synchronous>, transform_indices = @transform_2, window_bounds = array<i64: 8, 32, 288>}, {pipeline_mode = #tpu.pipeline_mode<synchronous>, transform_indices = @transform_3, window_bounds = array<i64: 8, 32, 1>}, {pipeline_mode = #tpu.pipeline_mode<synchronous>, transform_indices = @transform_4, window_bounds = array<i64: 8, 288>}, {pipeline_mode = #tpu.pipeline_mode<synchronous>, transform_indices = @transform_5, window_bounds = array<i64: 8, 1>}, {pipeline_mode = #tpu.pipeline_mode<synchronous>, transform_indices = @transform_6, window_bounds = array<i64: 8, 288>}, {pipeline_mode = #tpu.pipeline_mode<synchronous>, transform_indices = @transform_7, window_bounds = array<i64: 8, 1>}, {transform_indices = @transform_8, window_bounds = array<i64: 1, 8, 64>}, {transform_indices = @transform_9, window_bounds = array<i64: 1, 8, 64>}]} {
    %c0 = arith.constant 0 : index
    %c0_0 = arith.constant 0 : index
    %0 = vector.load %arg2[%c0, %c0_0] : memref<1x100xf32, #tpu.memory_space<vmem>>, vector<1x100xf32>
    %cst = arith.constant 0.000000e+00 : bf16
    %1 = vector.broadcast %cst : bf16 to vector<32x122xbf16>
    %c0_1 = arith.constant 0 : index
    %c0_2 = arith.constant 0 : index
    %2 = vector.load %arg11[%c0_1, %c0_2] : memref<32x122xbf16, #tpu.memory_space<vmem>>, vector<32x122xbf16>
    tpu.vector_store %arg11[%c0_1, %c0_2], %1 {strides = array<i32>} : memref<32x122xbf16, #tpu.memory_space<vmem>>, vector<32x122xbf16>,
    %c0_3 = arith.constant 0 : index
    %c0_4 = arith.constant 0 : index
    %c0_5 = arith.constant 0 : index
    %3 = vector.load %arg1[%c0_3, %c0_4, %c0_5] : memref<1x32x100xbf16, #tpu.memory_space<vmem>>, vector<1x32x100xbf16>
    %4 = vector.shape_cast %3 : vector<1x32x100xbf16> to vector<32x100xbf16>
    %c0_6 = arith.constant 0 : index
    %c11 = arith.constant 11 : index
    %5 = vector.load %arg11[%c0_6, %c11] : memref<32x122xbf16, #tpu.memory_space<vmem>>, vector<32x100xbf16>
    tpu.vector_store %arg11[%c0_6, %c11], %4 {strides = array<i32>} : memref<32x122xbf16, #tpu.memory_space<vmem>>, vector<32x100xbf16>,
    %c0_7 = arith.constant 0 : index
    %c0_8 = arith.constant 0 : index
    %c0_9 = arith.constant 0 : index
    %6 = vector.load %arg3[%c0_7, %c0_8, %c0_9] : memref<8x32x288xbf16, #tpu.memory_space<vmem>>, vector<1x32x288xbf16>
    %7 = vector.shape_cast %6 : vector<1x32x288xbf16> to vector<32x288xbf16>
    %c0_10 = arith.constant 0 : index
    %c0_11 = arith.constant 0 : index
    %c0_12 = arith.constant 0 : index
    %8 = vector.load %arg4[%c0_10, %c0_11, %c0_12] : memref<8x32x1xf32, #tpu.memory_space<vmem>>, vector<1x32x1xf32>
    %9 = vector.shape_cast %8 : vector<1x32x1xf32> to vector<32x1xf32>
    %c0_13 = arith.constant 0 : index
    %c0_14 = arith.constant 0 : index
    %10 = vector.load %arg11[%c0_13, %c0_14] : memref<32x122xbf16, #tpu.memory_space<vmem>>, vector<32x100xbf16>
    %c0_15 = arith.constant 0 : index
    %c1 = arith.constant 1 : index
    %11 = vector.load %arg11[%c0_15, %c1] : memref<32x122xbf16, #tpu.memory_space<vmem>>, vector<32x100xbf16>
    %c0_16 = arith.constant 0 : index
    %c2 = arith.constant 2 : index
    %12 = vector.load %arg11[%c0_16, %c2] : memref<32x122xbf16, #tpu.memory_space<vmem>>, vector<32x100xbf16>
    %c0_17 = arith.constant 0 : index
    %c10 = arith.constant 10 : index
    %13 = vector.load %arg11[%c0_17, %c10] : memref<32x122xbf16, #tpu.memory_space<vmem>>, vector<32x100xbf16>
    %c0_18 = arith.constant 0 : index
    %c11_19 = arith.constant 11 : index
    %14 = vector.load %arg11[%c0_18, %c11_19] : memref<32x122xbf16, #tpu.memory_space<vmem>>, vector<32x100xbf16>
    %c0_20 = arith.constant 0 : index
    %c12 = arith.constant 12 : index
    %15 = vector.load %arg11[%c0_20, %c12] : memref<32x122xbf16, #tpu.memory_space<vmem>>, vector<32x100xbf16>
    %c0_21 = arith.constant 0 : index
    %c20 = arith.constant 20 : index
    %16 = vector.load %arg11[%c0_21, %c20] : memref<32x122xbf16, #tpu.memory_space<vmem>>, vector<32x100xbf16>
    %c0_22 = arith.constant 0 : index
    %c21 = arith.constant 21 : index
    %17 = vector.load %arg11[%c0_22, %c21] : memref<32x122xbf16, #tpu.memory_space<vmem>>, vector<32x100xbf16>
    %c0_23 = arith.constant 0 : index
    %c22 = arith.constant 22 : index
    %18 = vector.load %arg11[%c0_23, %c22] : memref<32x122xbf16, #tpu.memory_space<vmem>>, vector<32x100xbf16>
    %19 = tpu.concatenate %10, %11, %12, %13, %14, %15, %16, %17, %18 in 0 : vector<32x100xbf16>, vector<32x100xbf16>, vector<32x100xbf16>, vector<32x100xbf16>, vector<32x100xbf16>, vector<32x100xbf16>, vector<32x100xbf16>, vector<32x100xbf16>, vector<32x100xbf16> -> vector<288x100xbf16>
    %cst_24 = arith.constant dense<0.000000e+00> : vector<32x100xf32>
    %20 = tpu.matmul %7, %19, %cst_24 {dimension_numbers = #tpu.dot_dimension_numbers<[1], [0], [0], [1], [0, 0, 1, 1], [], []>} : vector<32x288xbf16>, vector<288x100xbf16>, vector<32x100xf32> -> vector<32x100xf32>
    %21 = vector.broadcast %9 : vector<32x1xf32> to vector<32x100xf32>
    %22 = arith.addf %20, %21 : vector<32x100xf32>
    %cst_25 = arith.constant 0.000000e+00 : f32
    %23 = vector.broadcast %cst_25 : f32 to vector<32x100xf32>
    %24 = arith.maximumf %22, %23 : vector<32x100xf32>
    %25 = vector.broadcast %0 : vector<1x100xf32> to vector<32x100xf32>
    %26 = arith.mulf %24, %25 : vector<32x100xf32>
    %27 = arith.truncf %26 : vector<32x100xf32> to vector<32x100xbf16>
    %c0_26 = arith.constant 0 : index
    %c11_27 = arith.constant 11 : index
    %28 = vector.load %arg11[%c0_26, %c11_27] : memref<32x122xbf16, #tpu.memory_space<vmem>>, vector<32x100xbf16>
    tpu.vector_store %arg11[%c0_26, %c11_27], %27 {strides = array<i32>} : memref<32x122xbf16, #tpu.memory_space<vmem>>, vector<32x100xbf16>,
    %c1_28 = arith.constant 1 : index
    %c0_29 = arith.constant 0 : index
    %c0_30 = arith.constant 0 : index
    %29 = vector.load %arg3[%c1_28, %c0_29, %c0_30] : memref<8x32x288xbf16, #tpu.memory_space<vmem>>, vector<1x32x288xbf16>
    %30 = vector.shape_cast %29 : vector<1x32x288xbf16> to vector<32x288xbf16>
    %c1_31 = arith.constant 1 : index
    %c0_32 = arith.constant 0 : index
    %c0_33 = arith.constant 0 : index
    %31 = vector.load %arg4[%c1_31, %c0_32, %c0_33] : memref<8x32x1xf32, #tpu.memory_space<vmem>>, vector<1x32x1xf32>
    %32 = vector.shape_cast %31 : vector<1x32x1xf32> to vector<32x1xf32>
    %c0_34 = arith.constant 0 : index
    %c0_35 = arith.constant 0 : index
    %33 = vector.load %arg11[%c0_34, %c0_35] : memref<32x122xbf16, #tpu.memory_space<vmem>>, vector<32x100xbf16>
    %c0_36 = arith.constant 0 : index
    %c1_37 = arith.constant 1 : index
    %34 = vector.load %arg11[%c0_36, %c1_37] : memref<32x122xbf16, #tpu.memory_space<vmem>>, vector<32x100xbf16>
    %c0_38 = arith.constant 0 : index
    %c2_39 = arith.constant 2 : index
    %35 = vector.load %arg11[%c0_38, %c2_39] : memref<32x122xbf16, #tpu.memory_space<vmem>>, vector<32x100xbf16>
    %c0_40 = arith.constant 0 : index
    %c10_41 = arith.constant 10 : index
    %36 = vector.load %arg11[%c0_40, %c10_41] : memref<32x122xbf16, #tpu.memory_space<vmem>>, vector<32x100xbf16>
    %c0_42 = arith.constant 0 : index
    %c11_43 = arith.constant 11 : index
    %37 = vector.load %arg11[%c0_42, %c11_43] : memref<32x122xbf16, #tpu.memory_space<vmem>>, vector<32x100xbf16>
    %c0_44 = arith.constant 0 : index
    %c12_45 = arith.constant 12 : index
    %38 = vector.load %arg11[%c0_44, %c12_45] : memref<32x122xbf16, #tpu.memory_space<vmem>>, vector<32x100xbf16>
    %c0_46 = arith.constant 0 : index
    %c20_47 = arith.constant 20 : index
    %39 = vector.load %arg11[%c0_46, %c20_47] : memref<32x122xbf16, #tpu.memory_space<vmem>>, vector<32x100xbf16>
    %c0_48 = arith.constant 0 : index
    %c21_49 = arith.constant 21 : index
    %40 = vector.load %arg11[%c0_48, %c21_49] : memref<32x122xbf16, #tpu.memory_space<vmem>>, vector<32x100xbf16>
    %c0_50 = arith.constant 0 : index
    %c22_51 = arith.constant 22 : index
    %41 = vector.load %arg11[%c0_50, %c22_51] : memref<32x122xbf16, #tpu.memory_space<vmem>>, vector<32x100xbf16>
    %42 = tpu.concatenate %33, %34, %35, %36, %37, %38, %39, %40, %41 in 0 : vector<32x100xbf16>, vector<32x100xbf16>, vector<32x100xbf16>, vector<32x100xbf16>, vector<32x100xbf16>, vector<32x100xbf16>, vector<32x100xbf16>, vector<32x100xbf16>, vector<32x100xbf16> -> vector<288x100xbf16>
    %cst_52 = arith.constant dense<0.000000e+00> : vector<32x100xf32>
    %43 = tpu.matmul %30, %42, %cst_52 {dimension_numbers = #tpu.dot_dimension_numbers<[1], [0], [0], [1], [0, 0, 1, 1], [], []>} : vector<32x288xbf16>, vector<288x100xbf16>, vector<32x100xf32> -> vector<32x100xf32>
    %44 = vector.broadcast %32 : vector<32x1xf32> to vector<32x100xf32>
    %45 = arith.addf %43, %44 : vector<32x100xf32>
    %cst_53 = arith.constant 0.000000e+00 : f32
    %46 = vector.broadcast %cst_53 : f32 to vector<32x100xf32>
    %47 = arith.maximumf %45, %46 : vector<32x100xf32>
    %48 = vector.broadcast %0 : vector<1x100xf32> to vector<32x100xf32>
    %49 = arith.mulf %47, %48 : vector<32x100xf32>
    %50 = arith.truncf %49 : vector<32x100xf32> to vector<32x100xbf16>
    %c0_54 = arith.constant 0 : index
    %c11_55 = arith.constant 11 : index
    %51 = vector.load %arg11[%c0_54, %c11_55] : memref<32x122xbf16, #tpu.memory_space<vmem>>, vector<32x100xbf16>
    tpu.vector_store %arg11[%c0_54, %c11_55], %50 {strides = array<i32>} : memref<32x122xbf16, #tpu.memory_space<vmem>>, vector<32x100xbf16>,
    %c2_56 = arith.constant 2 : index
    %c0_57 = arith.constant 0 : index
    %c0_58 = arith.constant 0 : index
    %52 = vector.load %arg3[%c2_56, %c0_57, %c0_58] : memref<8x32x288xbf16, #tpu.memory_space<vmem>>, vector<1x32x288xbf16>
    %53 = vector.shape_cast %52 : vector<1x32x288xbf16> to vector<32x288xbf16>
    %c2_59 = arith.constant 2 : index
    %c0_60 = arith.constant 0 : index
    %c0_61 = arith.constant 0 : index
    %54 = vector.load %arg4[%c2_59, %c0_60, %c0_61] : memref<8x32x1xf32, #tpu.memory_space<vmem>>, vector<1x32x1xf32>
    %55 = vector.shape_cast %54 : vector<1x32x1xf32> to vector<32x1xf32>
    %c0_62 = arith.constant 0 : index
    %c0_63 = arith.constant 0 : index
    %56 = vector.load %arg11[%c0_62, %c0_63] : memref<32x122xbf16, #tpu.memory_space<vmem>>, vector<32x100xbf16>
    %c0_64 = arith.constant 0 : index
    %c1_65 = arith.constant 1 : index
    %57 = vector.load %arg11[%c0_64, %c1_65] : memref<32x122xbf16, #tpu.memory_space<vmem>>, vector<32x100xbf16>
    %c0_66 = arith.constant 0 : index
    %c2_67 = arith.constant 2 : index
    %58 = vector.load %arg11[%c0_66, %c2_67] : memref<32x122xbf16, #tpu.memory_space<vmem>>, vector<32x100xbf16>
    %c0_68 = arith.constant 0 : index
    %c10_69 = arith.constant 10 : index
    %59 = vector.load %arg11[%c0_68, %c10_69] : memref<32x122xbf16, #tpu.memory_space<vmem>>, vector<32x100xbf16>
    %c0_70 = arith.constant 0 : index
    %c11_71 = arith.constant 11 : index
    %60 = vector.load %arg11[%c0_70, %c11_71] : memref<32x122xbf16, #tpu.memory_space<vmem>>, vector<32x100xbf16>
    %c0_72 = arith.constant 0 : index
    %c12_73 = arith.constant 12 : index
    %61 = vector.load %arg11[%c0_72, %c12_73] : memref<32x122xbf16, #tpu.memory_space<vmem>>, vector<32x100xbf16>
    %c0_74 = arith.constant 0 : index
    %c20_75 = arith.constant 20 : index
    %62 = vector.load %arg11[%c0_74, %c20_75] : memref<32x122xbf16, #tpu.memory_space<vmem>>, vector<32x100xbf16>
    %c0_76 = arith.constant 0 : index
    %c21_77 = arith.constant 21 : index
    %63 = vector.load %arg11[%c0_76, %c21_77] : memref<32x122xbf16, #tpu.memory_space<vmem>>, vector<32x100xbf16>
    %c0_78 = arith.constant 0 : index
    %c22_79 = arith.constant 22 : index
    %64 = vector.load %arg11[%c0_78, %c22_79] : memref<32x122xbf16, #tpu.memory_space<vmem>>, vector<32x100xbf16>
    %65 = tpu.concatenate %56, %57, %58, %59, %60, %61, %62, %63, %64 in 0 : vector<32x100xbf16>, vector<32x100xbf16>, vector<32x100xbf16>, vector<32x100xbf16>, vector<32x100xbf16>, vector<32x100xbf16>, vector<32x100xbf16>, vector<32x100xbf16>, vector<32x100xbf16> -> vector<288x100xbf16>
    %cst_80 = arith.constant dense<0.000000e+00> : vector<32x100xf32>
    %66 = tpu.matmul %53, %65, %cst_80 {dimension_numbers = #tpu.dot_dimension_numbers<[1], [0], [0], [1], [0, 0, 1, 1], [], []>} : vector<32x288xbf16>, vector<288x100xbf16>, vector<32x100xf32> -> vector<32x100xf32>
    %67 = vector.broadcast %55 : vector<32x1xf32> to vector<32x100xf32>
    %68 = arith.addf %66, %67 : vector<32x100xf32>
    %cst_81 = arith.constant 0.000000e+00 : f32
    %69 = vector.broadcast %cst_81 : f32 to vector<32x100xf32>
    %70 = arith.maximumf %68, %69 : vector<32x100xf32>
    %71 = vector.broadcast %0 : vector<1x100xf32> to vector<32x100xf32>
    %72 = arith.mulf %70, %71 : vector<32x100xf32>
    %73 = arith.truncf %72 : vector<32x100xf32> to vector<32x100xbf16>
    %c0_82 = arith.constant 0 : index
    %c11_83 = arith.constant 11 : index
    %74 = vector.load %arg11[%c0_82, %c11_83] : memref<32x122xbf16, #tpu.memory_space<vmem>>, vector<32x100xbf16>
    tpu.vector_store %arg11[%c0_82, %c11_83], %73 {strides = array<i32>} : memref<32x122xbf16, #tpu.memory_space<vmem>>, vector<32x100xbf16>,
    %c3 = arith.constant 3 : index
    %c0_84 = arith.constant 0 : index
    %c0_85 = arith.constant 0 : index
    %75 = vector.load %arg3[%c3, %c0_84, %c0_85] : memref<8x32x288xbf16, #tpu.memory_space<vmem>>, vector<1x32x288xbf16>
    %76 = vector.shape_cast %75 : vector<1x32x288xbf16> to vector<32x288xbf16>
    %c3_86 = arith.constant 3 : index
    %c0_87 = arith.constant 0 : index
    %c0_88 = arith.constant 0 : index
    %77 = vector.load %arg4[%c3_86, %c0_87, %c0_88] : memref<8x32x1xf32, #tpu.memory_space<vmem>>, vector<1x32x1xf32>
    %78 = vector.shape_cast %77 : vector<1x32x1xf32> to vector<32x1xf32>
    %c0_89 = arith.constant 0 : index
    %c0_90 = arith.constant 0 : index
    %79 = vector.load %arg11[%c0_89, %c0_90] : memref<32x122xbf16, #tpu.memory_space<vmem>>, vector<32x100xbf16>
    %c0_91 = arith.constant 0 : index
    %c1_92 = arith.constant 1 : index
    %80 = vector.load %arg11[%c0_91, %c1_92] : memref<32x122xbf16, #tpu.memory_space<vmem>>, vector<32x100xbf16>
    %c0_93 = arith.constant 0 : index
    %c2_94 = arith.constant 2 : index
    %81 = vector.load %arg11[%c0_93, %c2_94] : memref<32x122xbf16, #tpu.memory_space<vmem>>, vector<32x100xbf16>
    %c0_95 = arith.constant 0 : index
    %c10_96 = arith.constant 10 : index
    %82 = vector.load %arg11[%c0_95, %c10_96] : memref<32x122xbf16, #tpu.memory_space<vmem>>, vector<32x100xbf16>
    %c0_97 = arith.constant 0 : index
    %c11_98 = arith.constant 11 : index
    %83 = vector.load %arg11[%c0_97, %c11_98] : memref<32x122xbf16, #tpu.memory_space<vmem>>, vector<32x100xbf16>
    %c0_99 = arith.constant 0 : index
    %c12_100 = arith.constant 12 : index
    %84 = vector.load %arg11[%c0_99, %c12_100] : memref<32x122xbf16, #tpu.memory_space<vmem>>, vector<32x100xbf16>
    %c0_101 = arith.constant 0 : index
    %c20_102 = arith.constant 20 : index
    %85 = vector.load %arg11[%c0_101, %c20_102] : memref<32x122xbf16, #tpu.memory_space<vmem>>, vector<32x100xbf16>
    %c0_103 = arith.constant 0 : index
    %c21_104 = arith.constant 21 : index
    %86 = vector.load %arg11[%c0_103, %c21_104] : memref<32x122xbf16, #tpu.memory_space<vmem>>, vector<32x100xbf16>
    %c0_105 = arith.constant 0 : index
    %c22_106 = arith.constant 22 : index
    %87 = vector.load %arg11[%c0_105, %c22_106] : memref<32x122xbf16, #tpu.memory_space<vmem>>, vector<32x100xbf16>
    %88 = tpu.concatenate %79, %80, %81, %82, %83, %84, %85, %86, %87 in 0 : vector<32x100xbf16>, vector<32x100xbf16>, vector<32x100xbf16>, vector<32x100xbf16>, vector<32x100xbf16>, vector<32x100xbf16>, vector<32x100xbf16>, vector<32x100xbf16>, vector<32x100xbf16> -> vector<288x100xbf16>
    %cst_107 = arith.constant dense<0.000000e+00> : vector<32x100xf32>
    %89 = tpu.matmul %76, %88, %cst_107 {dimension_numbers = #tpu.dot_dimension_numbers<[1], [0], [0], [1], [0, 0, 1, 1], [], []>} : vector<32x288xbf16>, vector<288x100xbf16>, vector<32x100xf32> -> vector<32x100xf32>
    %90 = vector.broadcast %78 : vector<32x1xf32> to vector<32x100xf32>
    %91 = arith.addf %89, %90 : vector<32x100xf32>
    %cst_108 = arith.constant 0.000000e+00 : f32
    %92 = vector.broadcast %cst_108 : f32 to vector<32x100xf32>
    %93 = arith.maximumf %91, %92 : vector<32x100xf32>
    %94 = vector.broadcast %0 : vector<1x100xf32> to vector<32x100xf32>
    %95 = arith.mulf %93, %94 : vector<32x100xf32>
    %96 = arith.truncf %95 : vector<32x100xf32> to vector<32x100xbf16>
    %c0_109 = arith.constant 0 : index
    %c11_110 = arith.constant 11 : index
    %97 = vector.load %arg11[%c0_109, %c11_110] : memref<32x122xbf16, #tpu.memory_space<vmem>>, vector<32x100xbf16>
    tpu.vector_store %arg11[%c0_109, %c11_110], %96 {strides = array<i32>} : memref<32x122xbf16, #tpu.memory_space<vmem>>, vector<32x100xbf16>,
    %c0_111 = arith.constant 0 : index
    %c0_112 = arith.constant 0 : index
    %98 = vector.load %arg5[%c0_111, %c0_112] : memref<8x288xbf16, #tpu.memory_space<vmem>>, vector<8x288xbf16>
    %c0_113 = arith.constant 0 : index
    %c0_114 = arith.constant 0 : index
    %99 = vector.load %arg6[%c0_113, %c0_114] : memref<8x1xf32, #tpu.memory_space<vmem>>, vector<8x1xf32>
    %c0_115 = arith.constant 0 : index
    %c0_116 = arith.constant 0 : index
    %100 = vector.load %arg11[%c0_115, %c0_116] : memref<32x122xbf16, #tpu.memory_space<vmem>>, vector<32x100xbf16>
    %c0_117 = arith.constant 0 : index
    %c1_118 = arith.constant 1 : index
    %101 = vector.load %arg11[%c0_117, %c1_118] : memref<32x122xbf16, #tpu.memory_space<vmem>>, vector<32x100xbf16>
    %c0_119 = arith.constant 0 : index
    %c2_120 = arith.constant 2 : index
    %102 = vector.load %arg11[%c0_119, %c2_120] : memref<32x122xbf16, #tpu.memory_space<vmem>>, vector<32x100xbf16>
    %c0_121 = arith.constant 0 : index
    %c10_122 = arith.constant 10 : index
    %103 = vector.load %arg11[%c0_121, %c10_122] : memref<32x122xbf16, #tpu.memory_space<vmem>>, vector<32x100xbf16>
    %c0_123 = arith.constant 0 : index
    %c11_124 = arith.constant 11 : index
    %104 = vector.load %arg11[%c0_123, %c11_124] : memref<32x122xbf16, #tpu.memory_space<vmem>>, vector<32x100xbf16>
    %c0_125 = arith.constant 0 : index
    %c12_126 = arith.constant 12 : index
    %105 = vector.load %arg11[%c0_125, %c12_126] : memref<32x122xbf16, #tpu.memory_space<vmem>>, vector<32x100xbf16>
    %c0_127 = arith.constant 0 : index
    %c20_128 = arith.constant 20 : index
    %106 = vector.load %arg11[%c0_127, %c20_128] : memref<32x122xbf16, #tpu.memory_space<vmem>>, vector<32x100xbf16>
    %c0_129 = arith.constant 0 : index
    %c21_130 = arith.constant 21 : index
    %107 = vector.load %arg11[%c0_129, %c21_130] : memref<32x122xbf16, #tpu.memory_space<vmem>>, vector<32x100xbf16>
    %c0_131 = arith.constant 0 : index
    %c22_132 = arith.constant 22 : index
    %108 = vector.load %arg11[%c0_131, %c22_132] : memref<32x122xbf16, #tpu.memory_space<vmem>>, vector<32x100xbf16>
    %109 = tpu.concatenate %100, %101, %102, %103, %104, %105, %106, %107, %108 in 0 : vector<32x100xbf16>, vector<32x100xbf16>, vector<32x100xbf16>, vector<32x100xbf16>, vector<32x100xbf16>, vector<32x100xbf16>, vector<32x100xbf16>, vector<32x100xbf16>, vector<32x100xbf16> -> vector<288x100xbf16>
    %cst_133 = arith.constant dense<0.000000e+00> : vector<8x100xf32>
    %110 = tpu.matmul %98, %109, %cst_133 {dimension_numbers = #tpu.dot_dimension_numbers<[1], [0], [0], [1], [0, 0, 1, 1], [], []>} : vector<8x288xbf16>, vector<288x100xbf16>, vector<8x100xf32> -> vector<8x100xf32>
    %111 = vector.broadcast %99 : vector<8x1xf32> to vector<8x100xf32>
    %112 = arith.addf %110, %111 : vector<8x100xf32>
    %113 = vector.extract_strided_slice %112 {offsets = [0, 11], sizes = [8, 8], strides = [1, 1]} : vector<8x100xf32> to vector<8x8xf32>
    %c0_134 = arith.constant 0 : index
    %c0_135 = arith.constant 0 : index
    %c0_136 = arith.constant 0 : index
    %114 = vector.load %arg9[%c0_134, %c0_135, %c0_136] : memref<1x8x64xf32, #tpu.memory_space<vmem>>, vector<1x8x8xf32>
    %115 = vector.shape_cast %114 : vector<1x8x8xf32> to vector<8x8xf32>
    %116 = vector.shape_cast %113 : vector<8x8xf32> to vector<1x8x8xf32>
    tpu.vector_store %arg9[%c0_134, %c0_135, %c0_136], %116 {strides = array<i32>} : memref<1x8x64xf32, #tpu.memory_space<vmem>>, vector<1x8x8xf32>,
    %117 = vector.extract_strided_slice %112 {offsets = [0, 21], sizes = [8, 8], strides = [1, 1]} : vector<8x100xf32> to vector<8x8xf32>
    %c0_137 = arith.constant 0 : index
    %c0_138 = arith.constant 0 : index
    %c8 = arith.constant 8 : index
    %118 = vector.load %arg9[%c0_137, %c0_138, %c8] : memref<1x8x64xf32, #tpu.memory_space<vmem>>, vector<1x8x8xf32>
    %119 = vector.shape_cast %118 : vector<1x8x8xf32> to vector<8x8xf32>
    %120 = vector.shape_cast %117 : vector<8x8xf32> to vector<1x8x8xf32>
    tpu.vector_store %arg9[%c0_137, %c0_138, %c8], %120 {strides = array<i32>} : memref<1x8x64xf32, #tpu.memory_space<vmem>>, vector<1x8x8xf32>,
    %121 = vector.extract_strided_slice %112 {offsets = [0, 31], sizes = [8, 8], strides = [1, 1]} : vector<8x100xf32> to vector<8x8xf32>
    %c0_139 = arith.constant 0 : index
    %c0_140 = arith.constant 0 : index
    %c16 = arith.constant 16 : index
    %122 = vector.load %arg9[%c0_139, %c0_140, %c16] : memref<1x8x64xf32, #tpu.memory_space<vmem>>, vector<1x8x8xf32>
    %123 = vector.shape_cast %122 : vector<1x8x8xf32> to vector<8x8xf32>
    %124 = vector.shape_cast %121 : vector<8x8xf32> to vector<1x8x8xf32>
    tpu.vector_store %arg9[%c0_139, %c0_140, %c16], %124 {strides = array<i32>} : memref<1x8x64xf32, #tpu.memory_space<vmem>>, vector<1x8x8xf32>,
    %125 = vector.extract_strided_slice %112 {offsets = [0, 41], sizes = [8, 8], strides = [1, 1]} : vector<8x100xf32> to vector<8x8xf32>
    %c0_141 = arith.constant 0 : index
    %c0_142 = arith.constant 0 : index
    %c24 = arith.constant 24 : index
    %126 = vector.load %arg9[%c0_141, %c0_142, %c24] : memref<1x8x64xf32, #tpu.memory_space<vmem>>, vector<1x8x8xf32>
    %127 = vector.shape_cast %126 : vector<1x8x8xf32> to vector<8x8xf32>
    %128 = vector.shape_cast %125 : vector<8x8xf32> to vector<1x8x8xf32>
    tpu.vector_store %arg9[%c0_141, %c0_142, %c24], %128 {strides = array<i32>} : memref<1x8x64xf32, #tpu.memory_space<vmem>>, vector<1x8x8xf32>,
    %129 = vector.extract_strided_slice %112 {offsets = [0, 51], sizes = [8, 8], strides = [1, 1]} : vector<8x100xf32> to vector<8x8xf32>
    %c0_143 = arith.constant 0 : index
    %c0_144 = arith.constant 0 : index
    %c32 = arith.constant 32 : index
    %130 = vector.load %arg9[%c0_143, %c0_144, %c32] : memref<1x8x64xf32, #tpu.memory_space<vmem>>, vector<1x8x8xf32>
    %131 = vector.shape_cast %130 : vector<1x8x8xf32> to vector<8x8xf32>
    %132 = vector.shape_cast %129 : vector<8x8xf32> to vector<1x8x8xf32>
    tpu.vector_store %arg9[%c0_143, %c0_144, %c32], %132 {strides = array<i32>} : memref<1x8x64xf32, #tpu.memory_space<vmem>>, vector<1x8x8xf32>,
    %133 = vector.extract_strided_slice %112 {offsets = [0, 61], sizes = [8, 8], strides = [1, 1]} : vector<8x100xf32> to vector<8x8xf32>
    %c0_145 = arith.constant 0 : index
    %c0_146 = arith.constant 0 : index
    %c40 = arith.constant 40 : index
    %134 = vector.load %arg9[%c0_145, %c0_146, %c40] : memref<1x8x64xf32, #tpu.memory_space<vmem>>, vector<1x8x8xf32>
    %135 = vector.shape_cast %134 : vector<1x8x8xf32> to vector<8x8xf32>
    %136 = vector.shape_cast %133 : vector<8x8xf32> to vector<1x8x8xf32>
    tpu.vector_store %arg9[%c0_145, %c0_146, %c40], %136 {strides = array<i32>} : memref<1x8x64xf32, #tpu.memory_space<vmem>>, vector<1x8x8xf32>,
    %137 = vector.extract_strided_slice %112 {offsets = [0, 71], sizes = [8, 8], strides = [1, 1]} : vector<8x100xf32> to vector<8x8xf32>
    %c0_147 = arith.constant 0 : index
    %c0_148 = arith.constant 0 : index
    %c48 = arith.constant 48 : index
    %138 = vector.load %arg9[%c0_147, %c0_148, %c48] : memref<1x8x64xf32, #tpu.memory_space<vmem>>, vector<1x8x8xf32>
    %139 = vector.shape_cast %138 : vector<1x8x8xf32> to vector<8x8xf32>
    %140 = vector.shape_cast %137 : vector<8x8xf32> to vector<1x8x8xf32>
    tpu.vector_store %arg9[%c0_147, %c0_148, %c48], %140 {strides = array<i32>} : memref<1x8x64xf32, #tpu.memory_space<vmem>>, vector<1x8x8xf32>,
    %141 = vector.extract_strided_slice %112 {offsets = [0, 81], sizes = [8, 8], strides = [1, 1]} : vector<8x100xf32> to vector<8x8xf32>
    %c0_149 = arith.constant 0 : index
    %c0_150 = arith.constant 0 : index
    %c56 = arith.constant 56 : index
    %142 = vector.load %arg9[%c0_149, %c0_150, %c56] : memref<1x8x64xf32, #tpu.memory_space<vmem>>, vector<1x8x8xf32>
    %143 = vector.shape_cast %142 : vector<1x8x8xf32> to vector<8x8xf32>
    %144 = vector.shape_cast %141 : vector<8x8xf32> to vector<1x8x8xf32>
    tpu.vector_store %arg9[%c0_149, %c0_150, %c56], %144 {strides = array<i32>} : memref<1x8x64xf32, #tpu.memory_space<vmem>>, vector<1x8x8xf32>,
    %c0_151 = arith.constant 0 : index
    %c0_152 = arith.constant 0 : index
    %c0_153 = arith.constant 0 : index
    %145 = vector.load %arg1[%c0_151, %c0_152, %c0_153] : memref<1x32x100xbf16, #tpu.memory_space<vmem>>, vector<1x32x100xbf16>
    %146 = vector.shape_cast %145 : vector<1x32x100xbf16> to vector<32x100xbf16>
    %c0_154 = arith.constant 0 : index
    %c11_155 = arith.constant 11 : index
    %147 = vector.load %arg11[%c0_154, %c11_155] : memref<32x122xbf16, #tpu.memory_space<vmem>>, vector<32x100xbf16>
    tpu.vector_store %arg11[%c0_154, %c11_155], %146 {strides = array<i32>} : memref<32x122xbf16, #tpu.memory_space<vmem>>, vector<32x100xbf16>,
    %c4 = arith.constant 4 : index
    %c0_156 = arith.constant 0 : index
    %c0_157 = arith.constant 0 : index
    %148 = vector.load %arg3[%c4, %c0_156, %c0_157] : memref<8x32x288xbf16, #tpu.memory_space<vmem>>, vector<1x32x288xbf16>
    %149 = vector.shape_cast %148 : vector<1x32x288xbf16> to vector<32x288xbf16>
    %c4_158 = arith.constant 4 : index
    %c0_159 = arith.constant 0 : index
    %c0_160 = arith.constant 0 : index
    %150 = vector.load %arg4[%c4_158, %c0_159, %c0_160] : memref<8x32x1xf32, #tpu.memory_space<vmem>>, vector<1x32x1xf32>
    %151 = vector.shape_cast %150 : vector<1x32x1xf32> to vector<32x1xf32>
    %c0_161 = arith.constant 0 : index
    %c0_162 = arith.constant 0 : index
    %152 = vector.load %arg11[%c0_161, %c0_162] : memref<32x122xbf16, #tpu.memory_space<vmem>>, vector<32x100xbf16>
    %c0_163 = arith.constant 0 : index
    %c1_164 = arith.constant 1 : index
    %153 = vector.load %arg11[%c0_163, %c1_164] : memref<32x122xbf16, #tpu.memory_space<vmem>>, vector<32x100xbf16>
    %c0_165 = arith.constant 0 : index
    %c2_166 = arith.constant 2 : index
    %154 = vector.load %arg11[%c0_165, %c2_166] : memref<32x122xbf16, #tpu.memory_space<vmem>>, vector<32x100xbf16>
    %c0_167 = arith.constant 0 : index
    %c10_168 = arith.constant 10 : index
    %155 = vector.load %arg11[%c0_167, %c10_168] : memref<32x122xbf16, #tpu.memory_space<vmem>>, vector<32x100xbf16>
    %c0_169 = arith.constant 0 : index
    %c11_170 = arith.constant 11 : index
    %156 = vector.load %arg11[%c0_169, %c11_170] : memref<32x122xbf16, #tpu.memory_space<vmem>>, vector<32x100xbf16>
    %c0_171 = arith.constant 0 : index
    %c12_172 = arith.constant 12 : index
    %157 = vector.load %arg11[%c0_171, %c12_172] : memref<32x122xbf16, #tpu.memory_space<vmem>>, vector<32x100xbf16>
    %c0_173 = arith.constant 0 : index
    %c20_174 = arith.constant 20 : index
    %158 = vector.load %arg11[%c0_173, %c20_174] : memref<32x122xbf16, #tpu.memory_space<vmem>>, vector<32x100xbf16>
    %c0_175 = arith.constant 0 : index
    %c21_176 = arith.constant 21 : index
    %159 = vector.load %arg11[%c0_175, %c21_176] : memref<32x122xbf16, #tpu.memory_space<vmem>>, vector<32x100xbf16>
    %c0_177 = arith.constant 0 : index
    %c22_178 = arith.constant 22 : index
    %160 = vector.load %arg11[%c0_177, %c22_178] : memref<32x122xbf16, #tpu.memory_space<vmem>>, vector<32x100xbf16>
    %161 = tpu.concatenate %152, %153, %154, %155, %156, %157, %158, %159, %160 in 0 : vector<32x100xbf16>, vector<32x100xbf16>, vector<32x100xbf16>, vector<32x100xbf16>, vector<32x100xbf16>, vector<32x100xbf16>, vector<32x100xbf16>, vector<32x100xbf16>, vector<32x100xbf16> -> vector<288x100xbf16>
    %cst_179 = arith.constant dense<0.000000e+00> : vector<32x100xf32>
    %162 = tpu.matmul %149, %161, %cst_179 {dimension_numbers = #tpu.dot_dimension_numbers<[1], [0], [0], [1], [0, 0, 1, 1], [], []>} : vector<32x288xbf16>, vector<288x100xbf16>, vector<32x100xf32> -> vector<32x100xf32>
    %163 = vector.broadcast %151 : vector<32x1xf32> to vector<32x100xf32>
    %164 = arith.addf %162, %163 : vector<32x100xf32>
    %cst_180 = arith.constant 0.000000e+00 : f32
    %165 = vector.broadcast %cst_180 : f32 to vector<32x100xf32>
    %166 = arith.maximumf %164, %165 : vector<32x100xf32>
    %167 = vector.broadcast %0 : vector<1x100xf32> to vector<32x100xf32>
    %168 = arith.mulf %166, %167 : vector<32x100xf32>
    %169 = arith.truncf %168 : vector<32x100xf32> to vector<32x100xbf16>
    %c0_181 = arith.constant 0 : index
    %c11_182 = arith.constant 11 : index
    %170 = vector.load %arg11[%c0_181, %c11_182] : memref<32x122xbf16, #tpu.memory_space<vmem>>, vector<32x100xbf16>
    tpu.vector_store %arg11[%c0_181, %c11_182], %169 {strides = array<i32>} : memref<32x122xbf16, #tpu.memory_space<vmem>>, vector<32x100xbf16>,
    %c5 = arith.constant 5 : index
    %c0_183 = arith.constant 0 : index
    %c0_184 = arith.constant 0 : index
    %171 = vector.load %arg3[%c5, %c0_183, %c0_184] : memref<8x32x288xbf16, #tpu.memory_space<vmem>>, vector<1x32x288xbf16>
    %172 = vector.shape_cast %171 : vector<1x32x288xbf16> to vector<32x288xbf16>
    %c5_185 = arith.constant 5 : index
    %c0_186 = arith.constant 0 : index
    %c0_187 = arith.constant 0 : index
    %173 = vector.load %arg4[%c5_185, %c0_186, %c0_187] : memref<8x32x1xf32, #tpu.memory_space<vmem>>, vector<1x32x1xf32>
    %174 = vector.shape_cast %173 : vector<1x32x1xf32> to vector<32x1xf32>
    %c0_188 = arith.constant 0 : index
    %c0_189 = arith.constant 0 : index
    %175 = vector.load %arg11[%c0_188, %c0_189] : memref<32x122xbf16, #tpu.memory_space<vmem>>, vector<32x100xbf16>
    %c0_190 = arith.constant 0 : index
    %c1_191 = arith.constant 1 : index
    %176 = vector.load %arg11[%c0_190, %c1_191] : memref<32x122xbf16, #tpu.memory_space<vmem>>, vector<32x100xbf16>
    %c0_192 = arith.constant 0 : index
    %c2_193 = arith.constant 2 : index
    %177 = vector.load %arg11[%c0_192, %c2_193] : memref<32x122xbf16, #tpu.memory_space<vmem>>, vector<32x100xbf16>
    %c0_194 = arith.constant 0 : index
    %c10_195 = arith.constant 10 : index
    %178 = vector.load %arg11[%c0_194, %c10_195] : memref<32x122xbf16, #tpu.memory_space<vmem>>, vector<32x100xbf16>
    %c0_196 = arith.constant 0 : index
    %c11_197 = arith.constant 11 : index
    %179 = vector.load %arg11[%c0_196, %c11_197] : memref<32x122xbf16, #tpu.memory_space<vmem>>, vector<32x100xbf16>
    %c0_198 = arith.constant 0 : index
    %c12_199 = arith.constant 12 : index
    %180 = vector.load %arg11[%c0_198, %c12_199] : memref<32x122xbf16, #tpu.memory_space<vmem>>, vector<32x100xbf16>
    %c0_200 = arith.constant 0 : index
    %c20_201 = arith.constant 20 : index
    %181 = vector.load %arg11[%c0_200, %c20_201] : memref<32x122xbf16, #tpu.memory_space<vmem>>, vector<32x100xbf16>
    %c0_202 = arith.constant 0 : index
    %c21_203 = arith.constant 21 : index
    %182 = vector.load %arg11[%c0_202, %c21_203] : memref<32x122xbf16, #tpu.memory_space<vmem>>, vector<32x100xbf16>
    %c0_204 = arith.constant 0 : index
    %c22_205 = arith.constant 22 : index
    %183 = vector.load %arg11[%c0_204, %c22_205] : memref<32x122xbf16, #tpu.memory_space<vmem>>, vector<32x100xbf16>
    %184 = tpu.concatenate %175, %176, %177, %178, %179, %180, %181, %182, %183 in 0 : vector<32x100xbf16>, vector<32x100xbf16>, vector<32x100xbf16>, vector<32x100xbf16>, vector<32x100xbf16>, vector<32x100xbf16>, vector<32x100xbf16>, vector<32x100xbf16>, vector<32x100xbf16> -> vector<288x100xbf16>
    %cst_206 = arith.constant dense<0.000000e+00> : vector<32x100xf32>
    %185 = tpu.matmul %172, %184, %cst_206 {dimension_numbers = #tpu.dot_dimension_numbers<[1], [0], [0], [1], [0, 0, 1, 1], [], []>} : vector<32x288xbf16>, vector<288x100xbf16>, vector<32x100xf32> -> vector<32x100xf32>
    %186 = vector.broadcast %174 : vector<32x1xf32> to vector<32x100xf32>
    %187 = arith.addf %185, %186 : vector<32x100xf32>
    %cst_207 = arith.constant 0.000000e+00 : f32
    %188 = vector.broadcast %cst_207 : f32 to vector<32x100xf32>
    %189 = arith.maximumf %187, %188 : vector<32x100xf32>
    %190 = vector.broadcast %0 : vector<1x100xf32> to vector<32x100xf32>
    %191 = arith.mulf %189, %190 : vector<32x100xf32>
    %192 = arith.truncf %191 : vector<32x100xf32> to vector<32x100xbf16>
    %c0_208 = arith.constant 0 : index
    %c11_209 = arith.constant 11 : index
    %193 = vector.load %arg11[%c0_208, %c11_209] : memref<32x122xbf16, #tpu.memory_space<vmem>>, vector<32x100xbf16>
    tpu.vector_store %arg11[%c0_208, %c11_209], %192 {strides = array<i32>} : memref<32x122xbf16, #tpu.memory_space<vmem>>, vector<32x100xbf16>,
    %c6 = arith.constant 6 : index
    %c0_210 = arith.constant 0 : index
    %c0_211 = arith.constant 0 : index
    %194 = vector.load %arg3[%c6, %c0_210, %c0_211] : memref<8x32x288xbf16, #tpu.memory_space<vmem>>, vector<1x32x288xbf16>
    %195 = vector.shape_cast %194 : vector<1x32x288xbf16> to vector<32x288xbf16>
    %c6_212 = arith.constant 6 : index
    %c0_213 = arith.constant 0 : index
    %c0_214 = arith.constant 0 : index
    %196 = vector.load %arg4[%c6_212, %c0_213, %c0_214] : memref<8x32x1xf32, #tpu.memory_space<vmem>>, vector<1x32x1xf32>
    %197 = vector.shape_cast %196 : vector<1x32x1xf32> to vector<32x1xf32>
    %c0_215 = arith.constant 0 : index
    %c0_216 = arith.constant 0 : index
    %198 = vector.load %arg11[%c0_215, %c0_216] : memref<32x122xbf16, #tpu.memory_space<vmem>>, vector<32x100xbf16>
    %c0_217 = arith.constant 0 : index
    %c1_218 = arith.constant 1 : index
    %199 = vector.load %arg11[%c0_217, %c1_218] : memref<32x122xbf16, #tpu.memory_space<vmem>>, vector<32x100xbf16>
    %c0_219 = arith.constant 0 : index
    %c2_220 = arith.constant 2 : index
    %200 = vector.load %arg11[%c0_219, %c2_220] : memref<32x122xbf16, #tpu.memory_space<vmem>>, vector<32x100xbf16>
    %c0_221 = arith.constant 0 : index
    %c10_222 = arith.constant 10 : index
    %201 = vector.load %arg11[%c0_221, %c10_222] : memref<32x122xbf16, #tpu.memory_space<vmem>>, vector<32x100xbf16>
    %c0_223 = arith.constant 0 : index
    %c11_224 = arith.constant 11 : index
    %202 = vector.load %arg11[%c0_223, %c11_224] : memref<32x122xbf16, #tpu.memory_space<vmem>>, vector<32x100xbf16>
    %c0_225 = arith.constant 0 : index
    %c12_226 = arith.constant 12 : index
    %203 = vector.load %arg11[%c0_225, %c12_226] : memref<32x122xbf16, #tpu.memory_space<vmem>>, vector<32x100xbf16>
    %c0_227 = arith.constant 0 : index
    %c20_228 = arith.constant 20 : index
    %204 = vector.load %arg11[%c0_227, %c20_228] : memref<32x122xbf16, #tpu.memory_space<vmem>>, vector<32x100xbf16>
    %c0_229 = arith.constant 0 : index
    %c21_230 = arith.constant 21 : index
    %205 = vector.load %arg11[%c0_229, %c21_230] : memref<32x122xbf16, #tpu.memory_space<vmem>>, vector<32x100xbf16>
    %c0_231 = arith.constant 0 : index
    %c22_232 = arith.constant 22 : index
    %206 = vector.load %arg11[%c0_231, %c22_232] : memref<32x122xbf16, #tpu.memory_space<vmem>>, vector<32x100xbf16>
    %207 = tpu.concatenate %198, %199, %200, %201, %202, %203, %204, %205, %206 in 0 : vector<32x100xbf16>, vector<32x100xbf16>, vector<32x100xbf16>, vector<32x100xbf16>, vector<32x100xbf16>, vector<32x100xbf16>, vector<32x100xbf16>, vector<32x100xbf16>, vector<32x100xbf16> -> vector<288x100xbf16>
    %cst_233 = arith.constant dense<0.000000e+00> : vector<32x100xf32>
    %208 = tpu.matmul %195, %207, %cst_233 {dimension_numbers = #tpu.dot_dimension_numbers<[1], [0], [0], [1], [0, 0, 1, 1], [], []>} : vector<32x288xbf16>, vector<288x100xbf16>, vector<32x100xf32> -> vector<32x100xf32>
    %209 = vector.broadcast %197 : vector<32x1xf32> to vector<32x100xf32>
    %210 = arith.addf %208, %209 : vector<32x100xf32>
    %cst_234 = arith.constant 0.000000e+00 : f32
    %211 = vector.broadcast %cst_234 : f32 to vector<32x100xf32>
    %212 = arith.maximumf %210, %211 : vector<32x100xf32>
    %213 = vector.broadcast %0 : vector<1x100xf32> to vector<32x100xf32>
    %214 = arith.mulf %212, %213 : vector<32x100xf32>
    %215 = arith.truncf %214 : vector<32x100xf32> to vector<32x100xbf16>
    %c0_235 = arith.constant 0 : index
    %c11_236 = arith.constant 11 : index
    %216 = vector.load %arg11[%c0_235, %c11_236] : memref<32x122xbf16, #tpu.memory_space<vmem>>, vector<32x100xbf16>
    tpu.vector_store %arg11[%c0_235, %c11_236], %215 {strides = array<i32>} : memref<32x122xbf16, #tpu.memory_space<vmem>>, vector<32x100xbf16>,
    %c7 = arith.constant 7 : index
    %c0_237 = arith.constant 0 : index
    %c0_238 = arith.constant 0 : index
    %217 = vector.load %arg3[%c7, %c0_237, %c0_238] : memref<8x32x288xbf16, #tpu.memory_space<vmem>>, vector<1x32x288xbf16>
    %218 = vector.shape_cast %217 : vector<1x32x288xbf16> to vector<32x288xbf16>
    %c7_239 = arith.constant 7 : index
    %c0_240 = arith.constant 0 : index
    %c0_241 = arith.constant 0 : index
    %219 = vector.load %arg4[%c7_239, %c0_240, %c0_241] : memref<8x32x1xf32, #tpu.memory_space<vmem>>, vector<1x32x1xf32>
    %220 = vector.shape_cast %219 : vector<1x32x1xf32> to vector<32x1xf32>
    %c0_242 = arith.constant 0 : index
    %c0_243 = arith.constant 0 : index
    %221 = vector.load %arg11[%c0_242, %c0_243] : memref<32x122xbf16, #tpu.memory_space<vmem>>, vector<32x100xbf16>
    %c0_244 = arith.constant 0 : index
    %c1_245 = arith.constant 1 : index
    %222 = vector.load %arg11[%c0_244, %c1_245] : memref<32x122xbf16, #tpu.memory_space<vmem>>, vector<32x100xbf16>
    %c0_246 = arith.constant 0 : index
    %c2_247 = arith.constant 2 : index
    %223 = vector.load %arg11[%c0_246, %c2_247] : memref<32x122xbf16, #tpu.memory_space<vmem>>, vector<32x100xbf16>
    %c0_248 = arith.constant 0 : index
    %c10_249 = arith.constant 10 : index
    %224 = vector.load %arg11[%c0_248, %c10_249] : memref<32x122xbf16, #tpu.memory_space<vmem>>, vector<32x100xbf16>
    %c0_250 = arith.constant 0 : index
    %c11_251 = arith.constant 11 : index
    %225 = vector.load %arg11[%c0_250, %c11_251] : memref<32x122xbf16, #tpu.memory_space<vmem>>, vector<32x100xbf16>
    %c0_252 = arith.constant 0 : index
    %c12_253 = arith.constant 12 : index
    %226 = vector.load %arg11[%c0_252, %c12_253] : memref<32x122xbf16, #tpu.memory_space<vmem>>, vector<32x100xbf16>
    %c0_254 = arith.constant 0 : index
    %c20_255 = arith.constant 20 : index
    %227 = vector.load %arg11[%c0_254, %c20_255] : memref<32x122xbf16, #tpu.memory_space<vmem>>, vector<32x100xbf16>
    %c0_256 = arith.constant 0 : index
    %c21_257 = arith.constant 21 : index
    %228 = vector.load %arg11[%c0_256, %c21_257] : memref<32x122xbf16, #tpu.memory_space<vmem>>, vector<32x100xbf16>
    %c0_258 = arith.constant 0 : index
    %c22_259 = arith.constant 22 : index
    %229 = vector.load %arg11[%c0_258, %c22_259] : memref<32x122xbf16, #tpu.memory_space<vmem>>, vector<32x100xbf16>
    %230 = tpu.concatenate %221, %222, %223, %224, %225, %226, %227, %228, %229 in 0 : vector<32x100xbf16>, vector<32x100xbf16>, vector<32x100xbf16>, vector<32x100xbf16>, vector<32x100xbf16>, vector<32x100xbf16>, vector<32x100xbf16>, vector<32x100xbf16>, vector<32x100xbf16> -> vector<288x100xbf16>
    %cst_260 = arith.constant dense<0.000000e+00> : vector<32x100xf32>
    %231 = tpu.matmul %218, %230, %cst_260 {dimension_numbers = #tpu.dot_dimension_numbers<[1], [0], [0], [1], [0, 0, 1, 1], [], []>} : vector<32x288xbf16>, vector<288x100xbf16>, vector<32x100xf32> -> vector<32x100xf32>
    %232 = vector.broadcast %220 : vector<32x1xf32> to vector<32x100xf32>
    %233 = arith.addf %231, %232 : vector<32x100xf32>
    %cst_261 = arith.constant 0.000000e+00 : f32
    %234 = vector.broadcast %cst_261 : f32 to vector<32x100xf32>
    %235 = arith.maximumf %233, %234 : vector<32x100xf32>
    %236 = vector.broadcast %0 : vector<1x100xf32> to vector<32x100xf32>
    %237 = arith.mulf %235, %236 : vector<32x100xf32>
    %238 = arith.truncf %237 : vector<32x100xf32> to vector<32x100xbf16>
    %c0_262 = arith.constant 0 : index
    %c11_263 = arith.constant 11 : index
    %239 = vector.load %arg11[%c0_262, %c11_263] : memref<32x122xbf16, #tpu.memory_space<vmem>>, vector<32x100xbf16>
    tpu.vector_store %arg11[%c0_262, %c11_263], %238 {strides = array<i32>} : memref<32x122xbf16, #tpu.memory_space<vmem>>, vector<32x100xbf16>,
    %c0_264 = arith.constant 0 : index
    %c0_265 = arith.constant 0 : index
    %240 = vector.load %arg7[%c0_264, %c0_265] : memref<8x288xbf16, #tpu.memory_space<vmem>>, vector<8x288xbf16>
    %c0_266 = arith.constant 0 : index
    %c0_267 = arith.constant 0 : index
    %241 = vector.load %arg8[%c0_266, %c0_267] : memref<8x1xf32, #tpu.memory_space<vmem>>, vector<8x1xf32>
    %c0_268 = arith.constant 0 : index
    %c0_269 = arith.constant 0 : index
    %242 = vector.load %arg11[%c0_268, %c0_269] : memref<32x122xbf16, #tpu.memory_space<vmem>>, vector<32x100xbf16>
    %c0_270 = arith.constant 0 : index
    %c1_271 = arith.constant 1 : index
    %243 = vector.load %arg11[%c0_270, %c1_271] : memref<32x122xbf16, #tpu.memory_space<vmem>>, vector<32x100xbf16>
    %c0_272 = arith.constant 0 : index
    %c2_273 = arith.constant 2 : index
    %244 = vector.load %arg11[%c0_272, %c2_273] : memref<32x122xbf16, #tpu.memory_space<vmem>>, vector<32x100xbf16>
    %c0_274 = arith.constant 0 : index
    %c10_275 = arith.constant 10 : index
    %245 = vector.load %arg11[%c0_274, %c10_275] : memref<32x122xbf16, #tpu.memory_space<vmem>>, vector<32x100xbf16>
    %c0_276 = arith.constant 0 : index
    %c11_277 = arith.constant 11 : index
    %246 = vector.load %arg11[%c0_276, %c11_277] : memref<32x122xbf16, #tpu.memory_space<vmem>>, vector<32x100xbf16>
    %c0_278 = arith.constant 0 : index
    %c12_279 = arith.constant 12 : index
    %247 = vector.load %arg11[%c0_278, %c12_279] : memref<32x122xbf16, #tpu.memory_space<vmem>>, vector<32x100xbf16>
    %c0_280 = arith.constant 0 : index
    %c20_281 = arith.constant 20 : index
    %248 = vector.load %arg11[%c0_280, %c20_281] : memref<32x122xbf16, #tpu.memory_space<vmem>>, vector<32x100xbf16>
    %c0_282 = arith.constant 0 : index
    %c21_283 = arith.constant 21 : index
    %249 = vector.load %arg11[%c0_282, %c21_283] : memref<32x122xbf16, #tpu.memory_space<vmem>>, vector<32x100xbf16>
    %c0_284 = arith.constant 0 : index
    %c22_285 = arith.constant 22 : index
    %250 = vector.load %arg11[%c0_284, %c22_285] : memref<32x122xbf16, #tpu.memory_space<vmem>>, vector<32x100xbf16>
    %251 = tpu.concatenate %242, %243, %244, %245, %246, %247, %248, %249, %250 in 0 : vector<32x100xbf16>, vector<32x100xbf16>, vector<32x100xbf16>, vector<32x100xbf16>, vector<32x100xbf16>, vector<32x100xbf16>, vector<32x100xbf16>, vector<32x100xbf16>, vector<32x100xbf16> -> vector<288x100xbf16>
    %cst_286 = arith.constant dense<0.000000e+00> : vector<8x100xf32>
    %252 = tpu.matmul %240, %251, %cst_286 {dimension_numbers = #tpu.dot_dimension_numbers<[1], [0], [0], [1], [0, 0, 1, 1], [], []>} : vector<8x288xbf16>, vector<288x100xbf16>, vector<8x100xf32> -> vector<8x100xf32>
    %253 = vector.broadcast %241 : vector<8x1xf32> to vector<8x100xf32>
    %254 = arith.addf %252, %253 : vector<8x100xf32>
    %255 = vector.extract_strided_slice %254 {offsets = [0, 11], sizes = [8, 8], strides = [1, 1]} : vector<8x100xf32> to vector<8x8xf32>
    %c0_287 = arith.constant 0 : index
    %c0_288 = arith.constant 0 : index
    %c0_289 = arith.constant 0 : index
    %256 = vector.load %arg10[%c0_287, %c0_288, %c0_289] : memref<1x8x64xf32, #tpu.memory_space<vmem>>, vector<1x8x8xf32>
    %257 = vector.shape_cast %256 : vector<1x8x8xf32> to vector<8x8xf32>
    %258 = vector.shape_cast %255 : vector<8x8xf32> to vector<1x8x8xf32>
    tpu.vector_store %arg10[%c0_287, %c0_288, %c0_289], %258 {strides = array<i32>} : memref<1x8x64xf32, #tpu.memory_space<vmem>>, vector<1x8x8xf32>,
    %259 = vector.extract_strided_slice %254 {offsets = [0, 21], sizes = [8, 8], strides = [1, 1]} : vector<8x100xf32> to vector<8x8xf32>
    %c0_290 = arith.constant 0 : index
    %c0_291 = arith.constant 0 : index
    %c8_292 = arith.constant 8 : index
    %260 = vector.load %arg10[%c0_290, %c0_291, %c8_292] : memref<1x8x64xf32, #tpu.memory_space<vmem>>, vector<1x8x8xf32>
    %261 = vector.shape_cast %260 : vector<1x8x8xf32> to vector<8x8xf32>
    %262 = vector.shape_cast %259 : vector<8x8xf32> to vector<1x8x8xf32>
    tpu.vector_store %arg10[%c0_290, %c0_291, %c8_292], %262 {strides = array<i32>} : memref<1x8x64xf32, #tpu.memory_space<vmem>>, vector<1x8x8xf32>,
    %263 = vector.extract_strided_slice %254 {offsets = [0, 31], sizes = [8, 8], strides = [1, 1]} : vector<8x100xf32> to vector<8x8xf32>
    %c0_293 = arith.constant 0 : index
    %c0_294 = arith.constant 0 : index
    %c16_295 = arith.constant 16 : index
    %264 = vector.load %arg10[%c0_293, %c0_294, %c16_295] : memref<1x8x64xf32, #tpu.memory_space<vmem>>, vector<1x8x8xf32>
    %265 = vector.shape_cast %264 : vector<1x8x8xf32> to vector<8x8xf32>
    %266 = vector.shape_cast %263 : vector<8x8xf32> to vector<1x8x8xf32>
    tpu.vector_store %arg10[%c0_293, %c0_294, %c16_295], %266 {strides = array<i32>} : memref<1x8x64xf32, #tpu.memory_space<vmem>>, vector<1x8x8xf32>,
    %267 = vector.extract_strided_slice %254 {offsets = [0, 41], sizes = [8, 8], strides = [1, 1]} : vector<8x100xf32> to vector<8x8xf32>
    %c0_296 = arith.constant 0 : index
    %c0_297 = arith.constant 0 : index
    %c24_298 = arith.constant 24 : index
    %268 = vector.load %arg10[%c0_296, %c0_297, %c24_298] : memref<1x8x64xf32, #tpu.memory_space<vmem>>, vector<1x8x8xf32>
    %269 = vector.shape_cast %268 : vector<1x8x8xf32> to vector<8x8xf32>
    %270 = vector.shape_cast %267 : vector<8x8xf32> to vector<1x8x8xf32>
    tpu.vector_store %arg10[%c0_296, %c0_297, %c24_298], %270 {strides = array<i32>} : memref<1x8x64xf32, #tpu.memory_space<vmem>>, vector<1x8x8xf32>,
    %271 = vector.extract_strided_slice %254 {offsets = [0, 51], sizes = [8, 8], strides = [1, 1]} : vector<8x100xf32> to vector<8x8xf32>
    %c0_299 = arith.constant 0 : index
    %c0_300 = arith.constant 0 : index
    %c32_301 = arith.constant 32 : index
    %272 = vector.load %arg10[%c0_299, %c0_300, %c32_301] : memref<1x8x64xf32, #tpu.memory_space<vmem>>, vector<1x8x8xf32>
    %273 = vector.shape_cast %272 : vector<1x8x8xf32> to vector<8x8xf32>
    %274 = vector.shape_cast %271 : vector<8x8xf32> to vector<1x8x8xf32>
    tpu.vector_store %arg10[%c0_299, %c0_300, %c32_301], %274 {strides = array<i32>} : memref<1x8x64xf32, #tpu.memory_space<vmem>>, vector<1x8x8xf32>,
    %275 = vector.extract_strided_slice %254 {offsets = [0, 61], sizes = [8, 8], strides = [1, 1]} : vector<8x100xf32> to vector<8x8xf32>
    %c0_302 = arith.constant 0 : index
    %c0_303 = arith.constant 0 : index
    %c40_304 = arith.constant 40 : index
    %276 = vector.load %arg10[%c0_302, %c0_303, %c40_304] : memref<1x8x64xf32, #tpu.memory_space<vmem>>, vector<1x8x8xf32>
    %277 = vector.shape_cast %276 : vector<1x8x8xf32> to vector<8x8xf32>
    %278 = vector.shape_cast %275 : vector<8x8xf32> to vector<1x8x8xf32>
    tpu.vector_store %arg10[%c0_302, %c0_303, %c40_304], %278 {strides = array<i32>} : memref<1x8x64xf32, #tpu.memory_space<vmem>>, vector<1x8x8xf32>,
    %279 = vector.extract_strided_slice %254 {offsets = [0, 71], sizes = [8, 8], strides = [1, 1]} : vector<8x100xf32> to vector<8x8xf32>
    %c0_305 = arith.constant 0 : index
    %c0_306 = arith.constant 0 : index
    %c48_307 = arith.constant 48 : index
    %280 = vector.load %arg10[%c0_305, %c0_306, %c48_307] : memref<1x8x64xf32, #tpu.memory_space<vmem>>, vector<1x8x8xf32>
    %281 = vector.shape_cast %280 : vector<1x8x8xf32> to vector<8x8xf32>
    %282 = vector.shape_cast %279 : vector<8x8xf32> to vector<1x8x8xf32>
    tpu.vector_store %arg10[%c0_305, %c0_306, %c48_307], %282 {strides = array<i32>} : memref<1x8x64xf32, #tpu.memory_space<vmem>>, vector<1x8x8xf32>,
    %283 = vector.extract_strided_slice %254 {offsets = [0, 81], sizes = [8, 8], strides = [1, 1]} : vector<8x100xf32> to vector<8x8xf32>
    %c0_308 = arith.constant 0 : index
    %c0_309 = arith.constant 0 : index
    %c56_310 = arith.constant 56 : index
    %284 = vector.load %arg10[%c0_308, %c0_309, %c56_310] : memref<1x8x64xf32, #tpu.memory_space<vmem>>, vector<1x8x8xf32>
    %285 = vector.shape_cast %284 : vector<1x8x8xf32> to vector<8x8xf32>
    %286 = vector.shape_cast %283 : vector<8x8xf32> to vector<1x8x8xf32>
    tpu.vector_store %arg10[%c0_308, %c0_309, %c56_310], %286 {strides = array<i32>} : memref<1x8x64xf32, #tpu.memory_space<vmem>>, vector<1x8x8xf32>,
    return
  }
  func.func @transform_0(%arg0: i32) -> (i32, i32, i32) {
    %c0_i32 = arith.constant 0 : i32
    %c0_i32_0 = arith.constant 0 : i32
    %c0_i32_1 = arith.constant 0 : i32
    return %arg0, %c0_i32, %c0_i32_0 : i32, i32, i32
  }
  func.func @transform_1(%arg0: i32) -> (i32, i32) {
    %c0_i32 = arith.constant 0 : i32
    %c0_i32_0 = arith.constant 0 : i32
    %c0_i32_1 = arith.constant 0 : i32
    return %c0_i32, %c0_i32_0 : i32, i32
  }
  func.func @transform_2(%arg0: i32) -> (i32, i32, i32) {
    %c0_i32 = arith.constant 0 : i32
    %c0_i32_0 = arith.constant 0 : i32
    %c0_i32_1 = arith.constant 0 : i32
    %c0_i32_2 = arith.constant 0 : i32
    return %c0_i32, %c0_i32_0, %c0_i32_1 : i32, i32, i32
  }
  func.func @transform_3(%arg0: i32) -> (i32, i32, i32) {
    %c0_i32 = arith.constant 0 : i32
    %c0_i32_0 = arith.constant 0 : i32
    %c0_i32_1 = arith.constant 0 : i32
    %c0_i32_2 = arith.constant 0 : i32
    return %c0_i32, %c0_i32_0, %c0_i32_1 : i32, i32, i32
  }
  func.func @transform_4(%arg0: i32) -> (i32, i32) {
    %c0_i32 = arith.constant 0 : i32
    %c0_i32_0 = arith.constant 0 : i32
    %c0_i32_1 = arith.constant 0 : i32
    return %c0_i32, %c0_i32_0 : i32, i32
  }
  func.func @transform_5(%arg0: i32) -> (i32, i32) {
    %c0_i32 = arith.constant 0 : i32
    %c0_i32_0 = arith.constant 0 : i32
    %c0_i32_1 = arith.constant 0 : i32
    return %c0_i32, %c0_i32_0 : i32, i32
  }
  func.func @transform_6(%arg0: i32) -> (i32, i32) {
    %c0_i32 = arith.constant 0 : i32
    %c0_i32_0 = arith.constant 0 : i32
    %c0_i32_1 = arith.constant 0 : i32
    return %c0_i32, %c0_i32_0 : i32, i32
  }
  func.func @transform_7(%arg0: i32) -> (i32, i32) {
    %c0_i32 = arith.constant 0 : i32
    %c0_i32_0 = arith.constant 0 : i32
    %c0_i32_1 = arith.constant 0 : i32
    return %c0_i32, %c0_i32_0 : i32, i32
  }
  func.func @transform_8(%arg0: i32) -> (i32, i32, i32) {
    %c0_i32 = arith.constant 0 : i32
    %c0_i32_0 = arith.constant 0 : i32
    %c0_i32_1 = arith.constant 0 : i32
    return %arg0, %c0_i32, %c0_i32_0 : i32, i32, i32
  }
  func.func @transform_9(%arg0: i32) -> (i32, i32, i32) {
    %c0_i32 = arith.constant 0 : i32
    %c0_i32_0 = arith.constant 0 : i32
    %c0_i32_1 = arith.constant 0 : i32
    return %arg0, %c0_i32, %c0_i32_0 : i32, i32, i32
  }
}

</mosaic_0001>

<bundles_post_ra>
// kernel: retina_net_forward.1
= control target key start
LH: loop header
LB: loop body
LE: loop exit
PB: predicated region body
PF: predicated region fallthrough
CT: control target
= control target key end

     0   :  { %s3147_s30 = smov 0   ;;  %s4058_s0 = inlined_call_operand.vmem [shape: bf16[2,32,100], index: 0, kind: input, shape index: {}]   ;;  %s4059_s1 = inlined_call_operand.vmem [shape: f32[1,100], index: 1, kind: input, shape index: {}]   ;;  %s4060_s2 = inlined_call_operand.vmem [shape: bf16[8,32,288], index: 2, kind: input, shape index: {}]   ;;  %s4061_s3 = inlined_call_operand.vmem [shape: f32[8,32,1], index: 3, kind: input, shape index: {}]   ;;  %s4062_s4 = inlined_call_operand.vmem [shape: bf16[8,288], index: 4, kind: input, shape index: {}]   ;;  %s4063_s5 = inlined_call_operand.vmem [shape: f32[8,1], index: 5, kind: input, shape index: {}]   ;;  %s4064_s6 = inlined_call_operand.vmem [shape: bf16[8,288], index: 6, kind: input, shape index: {}]   ;;  %s4065_s7 = inlined_call_operand.vmem [shape: f32[8,1], index: 7, kind: input, shape index: {}]   ;;  %s4066_s8 = inlined_call_operand.vmem [shape: f32[2,8,64], index: 8, kind: output, shape index: {0}]   ;;  %s4067_s9 = inlined_call_operand.vmem [shape: f32[2,8,64], index: 9, kind: output, shape index: {1}]  }
   0x1 LB: > { %s2590_s10 = sadd.s32 4294967295, %s3079_s30   ;;  %p2594_p0 = scmp.ge.s32.totalorder %s3079_s30, 1  ;;  %s3079_s30 = sphi %s3147_s30, %s20_s30  }
   0x2   : > { %p290_p1 = scmp.lt.s32.totalorder %s3079_s30, 3 }
   0x4   : > { %p291_p2 = pnand %p2594_p0, %p290_p1 }
   0x5   : > { %p329_p3 = scmp.lt.s32.totalorder (!%p291_p2), %s2590_s10, 1  ;;  %s4084_s15 = smov (!%p291_p2), 11  }
   0x6   : > { %294 = sbr.rel (%p291_p2) target bundleno = 4139 (0x102b), region = 52  ;;  %s4080_s16 = smov (!%p291_p2), 118  }
   0x7   : > { %s4078_s17 = smov (!%p291_p2), 107   ;;  %s4082_s18 = smov (!%p291_p2), 126  }
   0x8   : > { %s4076_s19 = smov (!%p291_p2), 108   ;;  %s4074_s20 = smov (!%p291_p2), 116  }
   0x9   : > { %s4072_s21 = smov (!%p291_p2), 127   ;;  %s4068_s22 = smov (!%p291_p2), 106  }
   0xa   : > { %s4070_s23 = smov (!%p291_p2), 117   ;;  %s4093_s13 = smov (!%p291_p2), 11  }
   0xb   : > { %vm344_vm0 = vcmask 994304   ;;  %v3081_v0 = vmov 0   ;;  %s4096_s10 = smov (!%p329_p3, %s2590_s10), 1  ;;  %vm369_vm1 = vcmask 904280   ;;  %v382_v25 = vld [vmem:[%s4061_s3] sm:$0xff]  ;;  %v384_v27 = vld [vmem:[%s4061_s3 + $0x10] sm:$0xff] }
   0xc   : > { %347 = vst.msk [vmem:[#allocation2 + $0x8] sm:$0xf] %vm344_vm0, %v3081_v0  ;;  %3070 = vset.pattern.permute.xlu1 %v3081_v0  ;;  %3069 = vset.pattern.permute.xlu0 %v3081_v0  ;;  %s2975_s11 = sshll.u32 %s4096_s10, 4  ;;  %v385_v28 = vld [vmem:[%s4061_s3 + $0x18] sm:$0xff]  ;;  %v2609_v31 = vld [vmem:[%s4060_s2] sm:$0xf] }
   0xd   : > { %345 = vst.msk [vmem:[#allocation2] sm:$0xf] %vm344_vm0, %v3081_v0  ;;  %3068 = vset.pattern.permute.xlu2 %v3081_v0  ;;  %s3161_s14 = scalar_lea.vmem %s4058_s0, %s2975_s11  ;;  %v2977_v32 = vld [vmem:[%s4060_s2 + $0x8] sm:$0xf0]  ;;  %v2976_v36 = vld [vmem:[%s4060_s2 + $0x4] sm:$0xf] }
   0xe   : > { %346 = vst.msk [vmem:[#allocation2 + $0x4] sm:$0xf] %vm344_vm0, %v3081_v0  ;;  %v351_v1 = vld [vmem:[%s3161_s14 + $0x8] sm:$0xf]  ;;  %v349_v2 = vld [vmem:[%s3161_s14] sm:$0xf]  ;;  %v2610_v35 = vor.u32 %v2977_v32, %v2609_v31 }
   0xf   : > { %348 = vst.msk [vmem:[#allocation2 + $0xc] sm:$0xf] %vm344_vm0, %v3081_v0  ;;  %361 = vrot.lane.b32.xlu0 %v351_v1, %s4084_s15  ;;  %357 = vrot.lane.b32.xlu1 %v349_v2, %s4084_s15  ;;  %v352_v3 = vld [vmem:[%s3161_s14 + $0xc] sm:$0xf]  ;;  %v350_v4 = vld [vmem:[%s3161_s14 + $0x4] sm:$0xf] }
  0x10   : > { %v383_v33 = vld [vmem:[%s4061_s3 + $0x8] sm:$0xff]  ;;  %v2611_v37 = vld [vmem:[%s4060_s2 + $0xc] sm:$0xf0]  ;;  %v2978_v39 = vld [vmem:[%s4060_s2 + $0x10] sm:$0xf0]  ;;  %vm500_vm2 = vcmask 261120  }
  0x11   : > { %v2617_v38 = vld [vmem:[%s4060_s2 + $0x8] sm:$0xf]  ;;  %v2614_v42 = vor.u32 %v2976_v36, %v2611_v37  ;;  %v2621_v44 = vld [vmem:[%s4060_s2 + $0x18] sm:$0xf]  ;;  %v2980_v45 = vld [vmem:[%s4060_s2 + $0x20] sm:$0xf0] }
  0x12   : > { %v2618_v43 = vor.u32 %v2978_v39, %v2617_v38  ;;  %v2622_v46 = vor.u32 %v2980_v45, %v2621_v44  ;;  %v2979_v47 = vld [vmem:[%s4060_s2 + $0x1c] sm:$0xf]  ;;  %v2623_v48 = vld [vmem:[%s4060_s2 + $0x24] sm:$0xf0]  ;;  %v2629_v49 = vld [vmem:[%s4060_s2 + $0x20] sm:$0xf] }
  0x13   : > { %v2981_v50 = vld [vmem:[%s4060_s2 + $0x28] sm:$0xf0]  ;;  %v2626_v51 = vor.u32 %v2979_v47, %v2623_v48  ;;  %v3255_v61 = vld [vmem:[%s4059_s1] ss:$0 sm:$0xff]  ;;  %s4087_s11 = smov 106   ;;  %s4094_s24 = smov 126  }
  0x14   : > { %v2630_v52 = vor.u32 %v2981_v50, %v2629_v49  ;;  %s3093_s12 = smov 111   ;;  %s3095_s26 = smov 105   ;;  %vm1396_vm3 = vcmask 64512   ;;  %vm1401_vm4 = vcmask 130112   ;;  %vm1406_vm5 = vcmask 195712  }
  0x15   : > { %vm1411_vm6 = vcmask 261312   ;;  %vm1416_vm7 = vcmask 326912   ;;  %vm1421_vm8 = vcmask 392512   ;;  %vm1426_vm9 = vcmask 458112  }
  0x16   : > { %vm1431_vm10 = vcmask 523712  }
  0x17   : > { %363 = vrot.lane.b32.xlu0 %v352_v3, %s4084_s15  ;;  %359 = vrot.lane.b32.xlu1 %v350_v4, %s4084_s15 }
  0x81   : > { %v362_v5 = vpop.permute.xlu0 %361  ;;  %v358_v6 = vpop.permute.xlu1 %357 }
  0x82   : > { %372 = vst.msk [vmem:[#allocation2 + $0x8] sm:$0xf] %vm369_vm1, %v362_v5 }
  0x83   : > { %370 = vst.msk [vmem:[#allocation2] sm:$0xf] %vm369_vm1, %v358_v6 }
  0x89   : > { %v364_v7 = vpop.permute.xlu0 %363  ;;  %v360_v8 = vpop.permute.xlu1 %359  ;;  %v2605_v9 = vld [vmem:[#allocation2 + $0x8] sm:$0xf] }
  0x8a   : > { %373 = vst.msk [vmem:[#allocation2 + $0xc] sm:$0xf] %vm369_vm1, %v364_v7  ;;  %v2601_v11 = vld [vmem:[#allocation2] sm:$0xf] }
  0x8b   : > { %371 = vst.msk [vmem:[#allocation2 + $0x4] sm:$0xf] %vm369_vm1, %v360_v8 }
  0x91   : > { %v2983_v10 = vld [vmem:[#allocation2 + $0x8] sm:$0xf0] }
  0x92   : > { %v2982_v12 = vld [vmem:[#allocation2] sm:$0xf0]  ;;  %v2606_v13 = vor.u32 %v2983_v10, %v2605_v9 }
  0x93   : > { %v3175_v14 = vor.u32 %v2982_v12, %v2601_v11 }
  0x94   : > { %416 = vrot.lane.b32.xlu2 %v2606_v13, %s4080_s16 }
  0x95   : > { %438 = vrot.lane.b32.xlu1 %v3175_v14, %s4078_s17  ;;  %414 = vrot.lane.b32.xlu0 %v3175_v14, %s4080_s16 }
  0x9c   : > { %440 = vrot.lane.b32.xlu2 %v2606_v13, %s4078_s17 }
  0x9d   : > { %408 = vrot.lane.b32.xlu1 %v3175_v14, %s4082_s18  ;;  %434 = vrot.lane.b32.xlu0 %v2606_v13, %s4076_s19 }
  0xa4   : > { %410 = vrot.lane.b32.xlu2 %v2606_v13, %s4082_s18 }
  0xa5   : > { %428 = vrot.lane.b32.xlu1 %v2606_v13, %s4074_s20  ;;  %404 = vrot.lane.b32.xlu0 %v2606_v13, %s4072_s21 }
  0xac   : > { %432 = vrot.lane.b32.xlu2 %v3175_v14, %s4076_s19 }
  0xad   : > { %446 = vrot.lane.b32.xlu1 %v2606_v13, %s4068_s22  ;;  %426 = vrot.lane.b32.xlu0 %v3175_v14, %s4074_s20 }
  0xb4   : > { %402 = vrot.lane.b32.xlu2 %v3175_v14, %s4072_s21 }
  0xb5   : > { %420 = vrot.lane.b32.xlu1 %v3175_v14, %s4070_s23  ;;  %444 = vrot.lane.b32.xlu0 %v3175_v14, %s4068_s22  ;;  %s2597_s22 = sshll.u32 %s4096_s10, 3 }
  0xbc   : > { %422 = vrot.lane.b32.xlu2 %v2606_v13, %s4070_s23  ;;  %s4086_s23 = smov 117  }
  0xbd   : > { %452 = vperm.xlu1 %3070, %v382_v25   ;;  %467 = vperm.xlu0 %3069, %v385_v28  }
  0xc4   : > { %462 = vperm.xlu2 %3068, %v384_v27  }
  0xcc   : > { %457 = vperm.xlu2 %3068, %v383_v33  }
  0xee   : > { %v417_v15 = vpop.permute.xlu2 %416 }
  0xef   : > { %507 = vmatpush.bf16.msra.mxu0 %v417_v15 }
  0xf6   : > { %v441_v16 = vpop.permute.xlu2 %440 }
  0xf7   : > { %526 = vmatpush.bf16.msra.mxu1 %v441_v16 }
  0xfe   : > { %v411_v17 = vpop.permute.xlu2 %410 }
 0x106   : > { %v433_v20 = vpop.permute.xlu2 %432 }
 0x107   : > { %v439_v18 = vpop.permute.xlu1 %438  ;;  %v415_v19 = vpop.permute.xlu0 %414 }
 0x108   : > { %508 = vmatpush.bf16.msra.mxu0 %v415_v19  ;;  %527 = vmatpush.bf16.msra.mxu1 %v439_v18 }
 0x10c   : > { %509 = vmatpush.bf16.msra.mxu0 %v411_v17 }
 0x10e   : > { %v403_v26 = vpop.permute.xlu2 %402 }
 0x10f   : > { %v409_v21 = vpop.permute.xlu1 %408  ;;  %v435_v22 = vpop.permute.xlu0 %434 }
 0x110   : > { %510 = vmatpush.bf16.msra.mxu0 %v409_v21  ;;  %528 = vmatpush.bf16.msra.mxu1 %v435_v22 }
 0x114   : > { %529 = vmatpush.bf16.msra.mxu1 %v433_v20 }
 0x116   : > { %v423_v34 = vpop.permute.xlu2 %422 }
 0x117   : > { %v429_v23 = vpop.permute.xlu1 %428  ;;  %v405_v24 = vpop.permute.xlu0 %404 }
 0x118   : > { %511 = vmatpush.bf16.msra.mxu0 %v405_v24  ;;  %530 = vmatpush.bf16.msra.mxu1 %v429_v23 }
 0x11c   : > { %512 = vmatpush.bf16.msra.mxu0 %v403_v26 }
 0x11e   : > { %v463_v62 = vpop.permute.xlu2 %462 }
 0x11f   : > { %v447_v29 = vpop.permute.xlu1 %446  ;;  %v427_v30 = vpop.permute.xlu0 %426 }
 0x120   : > { %513 = vmatpush.bf16.msra.mxu0 %v2606_v13  ;;  %531 = vmatpush.bf16.msra.mxu1 %v427_v30 }
 0x121   : > { %551 = vmatpush.bf16.msra.mxu2 %v447_v29 }
 0x124   : > { %514 = vmatpush.bf16.msra.mxu0 %v3175_v14  ;;  %532 = vmatpush.bf16.msra.mxu1 %v423_v34 }
 0x126   : > { %v458_v7 = vpop.permute.xlu2 %457 }
 0x127   : > { %v421_v40 = vpop.permute.xlu1 %420  ;;  %515 = vmatmul.bf16.vlgmr.msra.gmra.mxu0 %v2610_v35  ;;  %v445_v41 = vpop.permute.xlu0 %444 }
 0x128   : > { %533 = vmatpush.bf16.msra.mxu1 %v421_v40  ;;  %552 = vmatpush.bf16.msra.mxu2 %v445_v41  ;;  %v2643_v40 = vld [vmem:[%s4061_s3 + $0x30] sm:$0xff]  ;;  %v2642_v41 = vld [vmem:[%s4061_s3 + $0x28] sm:$0xff] }
 0x12b   : > { %534 = vmatmul.bf16.vlgmr.msra.gmra.mxu1 %v2614_v42  ;;  %2631 = vmatmul.msk.bf16.vlgmr.msra.gmra.mxu2 %vm500_vm2, %v2618_v43  ;;  %v2641_v42 = vld [vmem:[%s4061_s3 + $0x20] sm:$0xff]  ;;  %v2644_v43 = vld [vmem:[%s4061_s3 + $0x38] sm:$0xff] }
 0x12f   : > { %v453_v54 = vpop.permute.xlu1 %452  ;;  %v468_v14 = vpop.permute.xlu0 %467 }
 0x137   : > { %520 = vmatmul.bf16.gmra.mxu0 %v2622_v46 }
 0x13b   : > { %539 = vmatmul.bf16.gmra.mxu1 %v2626_v51  ;;  %2632 = vmatmul.msk.bf16.gmra.mxu2 %vm500_vm2, %v2630_v52 }
 0x1a4   : > { %v516_v53 = vpop.f32.mrf.mxu0 }
 0x1a5   : > { %v517_v55 = vadd.f32 %v516_v53, %v453_v54 }
 0x1a8   : > { %v535_v56 = vpop.f32.mrf.mxu1 }
 0x1a9   : > { %v536_v57 = vadd.f32 %v535_v56, %v517_v55  ;;  %v2655_v56 = vld [vmem:[%s4060_s2 + $0x30] sm:$0xf] }
 0x1ac   : > { %v518_v58 = vpop.f32.mrf.mxu0 }
 0x1ad   : > { %v519_v9 = vadd.f32 %v518_v58, %v458_v7  ;;  %v2988_v7 = vld [vmem:[%s4060_s2 + $0x50] sm:$0xf0] }
 0x1ae   : > { %v554_v59 = vpop.f32.mrf.mxu2 }
 0x1af   : > { %v555_v60 = vadd.f32 %v554_v59, %v536_v57  ;;  %v2985_v57 = vld [vmem:[%s4060_s2 + $0x38] sm:$0xf0] }
 0x1b0   : > { %v537_v63 = vpop.f32.mrf.mxu1  ;;  %v2656_v59 = vor.u32 %v2985_v57, %v2655_v56 }
 0x1b1   : > { %v564_v0 = vmax.f32 %v555_v60, 0.0  ;;  %v538_v11 = vadd.f32 %v537_v63, %v519_v9  ;;  %v2984_v60 = vld [vmem:[%s4060_s2 + $0x34] sm:$0xf]  ;;  %v2987_v9 = vld [vmem:[%s4060_s2 + $0x4c] sm:$0xf] }
 0x1b3   : > { %v571_v1 = vmul.f32 %v3255_v61, %v564_v0 }
 0x1b4   : > { %v521_v3 = vpop.f32.mrf.mxu0 }
 0x1b5   : > { %v575_v2 = vpack.c.bf16 %v571_v1, %v571_v1  ;;  %v522_v5 = vadd.f32 %v521_v3, %v463_v62  ;;  %v2657_v62 = vld [vmem:[%s4060_s2 + $0x3c] sm:$0xf0]  ;;  %v2986_v3 = vld [vmem:[%s4060_s2 + $0x40] sm:$0xf0] }
 0x1b6   : > { %v556_v4 = vpop.f32.mrf.mxu2  ;;  %v2660_v1 = vor.u32 %v2984_v60, %v2657_v62 }
 0x1b7   : > { %583 = vrot.lane.b32.xlu0 %v575_v2, %s4084_s15  ;;  %v557_v15 = vadd.f32 %v556_v4, %v538_v11  ;;  %v2663_v2 = vld [vmem:[%s4060_s2 + $0x38] sm:$0xf] }
 0x1b8   : > { %v540_v6 = vpop.f32.mrf.mxu1 }
 0x1b9   : > { %v541_v8 = vadd.f32 %v540_v6, %v522_v5  ;;  %v565_v20 = vmax.f32 %v557_v15, 0.0  ;;  %v2664_v5 = vor.u32 %v2986_v3, %v2663_v2  ;;  %v2667_v6 = vld [vmem:[%s4060_s2 + $0x48] sm:$0xf]  ;;  %v2689_v2 = vld [vmem:[%s4061_s3 + $0x50] sm:$0xff] }
 0x1ba   : > { %v2688_v3 = vld [vmem:[%s4061_s3 + $0x48] sm:$0xff] }
 0x1bb   : > { %v572_v25 = vmul.f32 %v3255_v61, %v565_v20 }
 0x1bc   : > { %v523_v13 = vpop.f32.mrf.mxu0 }
 0x1bd   : > { %v524_v18 = vadd.f32 %v523_v13, %v468_v14  ;;  %v576_v28 = vpack.c.bf16 %v572_v25, %v572_v25  ;;  %v2989_v13 = vld [vmem:[%s4060_s2 + $0x58] sm:$0xf0] }
 0x1be   : > { %v559_v10 = vpop.f32.mrf.mxu2 }
 0x1bf   : > { %v560_v12 = vadd.f32 %v559_v10, %v541_v8  ;;  %v2668_v8 = vor.u32 %v2988_v7, %v2667_v6  ;;  %v2669_v10 = vld [vmem:[%s4060_s2 + $0x54] sm:$0xf0] }
 0x1c0   : > { %v542_v17 = vpop.f32.mrf.mxu1  ;;  %v2672_v11 = vor.u32 %v2987_v9, %v2669_v10 }
 0x1c1   : > { %v566_v16 = vmax.f32 %v560_v12, 0.0  ;;  %v543_v22 = vadd.f32 %v542_v17, %v524_v18  ;;  %v2675_v12 = vld [vmem:[%s4060_s2 + $0x50] sm:$0xf] }
 0x1c2   : > { %v2676_v14 = vor.u32 %v2989_v13, %v2675_v12 }
 0x1c3   : > { %v573_v19 = vmul.f32 %v3255_v61, %v566_v16 }
 0x1c5   : > { %v577_v21 = vpack.c.bf16 %v573_v19, %v573_v19 }
 0x1c6   : > { %v561_v23 = vpop.f32.mrf.mxu2 }
 0x1c7   : > { %v562_v24 = vadd.f32 %v561_v23, %v543_v22  ;;  %587 = vrot.lane.b32.xlu1 %v577_v21, %s4084_s15 }
 0x1c9   : > { %v567_v26 = vmax.f32 %v562_v24, 0.0 }
 0x1cb   : > { %v574_v27 = vmul.f32 %v3255_v61, %v567_v26 }
 0x1cd   : > { %v578_v29 = vpack.c.bf16 %v574_v27, %v574_v27 }
 0x1cf   : > { %585 = vrot.lane.b32.xlu1 %v576_v28, %s4084_s15  ;;  %589 = vrot.lane.b32.xlu2 %v578_v29, %s4084_s15 }
 0x229   : > { %v590_v30 = vpop.permute.xlu2 %589  ;;  %v584_v31 = vpop.permute.xlu0 %583 }
 0x22a   : > { %598 = vst.msk [vmem:[#allocation2 + $0xc] sm:$0xf] %vm369_vm1, %v590_v30 }
 0x22b   : > { %595 = vst.msk [vmem:[#allocation2] sm:$0xf] %vm369_vm1, %v584_v31 }
 0x231   : > { %v2991_v33 = vld [vmem:[#allocation2 + $0x8] sm:$0xf0] }
 0x232   : > { %v2647_v37 = vld [vmem:[#allocation2] sm:$0xf] }
 0x239   : > { %v588_v32 = vpop.permute.xlu1 %587 }
 0x23a   : > { %597 = vst.msk [vmem:[#allocation2 + $0x8] sm:$0xf] %vm369_vm1, %v588_v32 }
 0x241   : > { %v2651_v34 = vld [vmem:[#allocation2 + $0x8] sm:$0xf]  ;;  %v586_v35 = vpop.permute.xlu1 %585 }
 0x242   : > { %596 = vst.msk [vmem:[#allocation2 + $0x4] sm:$0xf] %vm369_vm1, %v586_v35  ;;  %v2652_v36 = vor.u32 %v2991_v33, %v2651_v34 }
 0x244   : > { %667 = vrot.lane.b32.xlu0 %v2652_v36, %s4078_s17  ;;  %643 = vrot.lane.b32.xlu2 %v2652_v36, %s4080_s16 }
 0x249   : > { %v2990_v38 = vld [vmem:[#allocation2] sm:$0xf0] }
 0x24a   : > { %v2648_v39 = vor.u32 %v2990_v38, %v2647_v37 }
 0x24c   : > { %637 = vrot.lane.b32.xlu0 %v2652_v36, %s4082_s18  ;;  %665 = vrot.lane.b32.xlu2 %v2648_v39, %s4078_s17 }
 0x24d   : > { %641 = vrot.lane.b32.xlu1 %v2648_v39, %s4080_s16 }
 0x254   : > { %659 = vrot.lane.b32.xlu0 %v2648_v39, %s4076_s19  ;;  %635 = vrot.lane.b32.xlu2 %v2648_v39, %s4082_s18 }
 0x255   : > { %661 = vrot.lane.b32.xlu1 %v2652_v36, %s4076_s19 }
 0x25c   : > { %629 = vrot.lane.b32.xlu0 %v2648_v39, %s4072_s21  ;;  %655 = vrot.lane.b32.xlu2 %v2652_v36, %s4074_s20 }
 0x25d   : > { %631 = vrot.lane.b32.xlu1 %v2652_v36, %s4072_s21  ;;  %s4088_s21 = smov 127  }
 0x264   : > { %647 = vrot.lane.b32.xlu0 %v2648_v39, %s4086_s23  ;;  %649 = vrot.lane.b32.xlu2 %v2652_v36, %s4086_s23 }
 0x265   : > { %653 = vrot.lane.b32.xlu1 %v2648_v39, %s4074_s20 }
 0x26c   : > { %689 = vperm.xlu0 %3069, %v2643_v40   ;;  %671 = vrot.lane.b32.xlu2 %v2648_v39, %s4087_s11 }
 0x26d   : > { %673 = vrot.lane.b32.xlu1 %v2652_v36, %s4087_s11 }
 0x274   : > { %684 = vperm.xlu0 %3069, %v2642_v41   ;;  %679 = vperm.xlu2 %3068, %v2641_v42  }
 0x275   : > { %694 = vperm.xlu1 %3070, %v2644_v43  }
 0x29e   : > { %v644_v44 = vpop.permute.xlu2 %643 }
 0x29f   : > { %733 = vmatpush.bf16.msra.mxu3 %v644_v44 }
 0x2a6   : > { %v666_v46 = vpop.permute.xlu2 %665 }
 0x2ae   : > { %v636_v49 = vpop.permute.xlu2 %635 }
 0x2b6   : > { %v668_v45 = vpop.permute.xlu0 %667  ;;  %v656_v52 = vpop.permute.xlu2 %655 }
 0x2b7   : > { %752 = vmatpush.bf16.msrb.mxu2 %v668_v45 }
 0x2bb   : > { %753 = vmatpush.bf16.msrb.mxu2 %v666_v46 }
 0x2be   : > { %v638_v48 = vpop.permute.xlu0 %637  ;;  %v650_v58 = vpop.permute.xlu2 %649 }
 0x2bf   : > { %v642_v47 = vpop.permute.xlu1 %641 }
 0x2c0   : > { %734 = vmatpush.bf16.msra.mxu3 %v642_v47 }
 0x2c4   : > { %735 = vmatpush.bf16.msra.mxu3 %v638_v48 }
 0x2c6   : > { %v660_v51 = vpop.permute.xlu0 %659  ;;  %v672_v4 = vpop.permute.xlu2 %671 }
 0x2c7   : > { %v662_v50 = vpop.permute.xlu1 %661 }
 0x2c8   : > { %736 = vmatpush.bf16.msra.mxu3 %v636_v49  ;;  %754 = vmatpush.bf16.msrb.mxu2 %v662_v50 }
 0x2cc   : > { %755 = vmatpush.bf16.msrb.mxu2 %v660_v51 }
 0x2ce   : > { %v630_v54 = vpop.permute.xlu0 %629  ;;  %v680_v16 = vpop.permute.xlu2 %679 }
 0x2cf   : > { %v632_v53 = vpop.permute.xlu1 %631 }
 0x2d0   : > { %737 = vmatpush.bf16.msra.mxu3 %v632_v53  ;;  %756 = vmatpush.bf16.msrb.mxu2 %v656_v52 }
 0x2d4   : > { %738 = vmatpush.bf16.msra.mxu3 %v630_v54 }
 0x2d6   : > { %v648_v63 = vpop.permute.xlu0 %647 }
 0x2d7   : > { %v654_v55 = vpop.permute.xlu1 %653 }
 0x2d8   : > { %739 = vmatpush.bf16.msra.mxu3 %v2652_v36  ;;  %757 = vmatpush.bf16.msrb.mxu2 %v654_v55 }
 0x2dc   : > { %740 = vmatpush.bf16.msra.mxu3 %v2648_v39  ;;  %758 = vmatpush.bf16.msrb.mxu2 %v650_v58 }
 0x2de   : > { %v690_v22 = vpop.permute.xlu0 %689 }
 0x2df   : > { %v674_v0 = vpop.permute.xlu1 %673  ;;  %741 = vmatmul.bf16.vlgmr.msra.gmra.mxu3 %v2656_v59 }
 0x2e0   : > { %759 = vmatpush.bf16.msrb.mxu2 %v648_v63  ;;  %777 = vmatpush.bf16.msrb.mxu0 %v674_v0 }
 0x2e3   : > { %760 = vmatmul.bf16.vlgmr.msrb.gmra.mxu2 %v2660_v1 }
 0x2e4   : > { %778 = vmatpush.bf16.msrb.mxu0 %v672_v4  ;;  %v2690_v4 = vld [vmem:[%s4061_s3 + $0x58] sm:$0xff] }
 0x2e6   : > { %v685_v30 = vpop.permute.xlu0 %684 }
 0x2e7   : > { %2677 = vmatmul.msk.bf16.vlgmr.msrb.gmra.mxu0 %vm500_vm2, %v2664_v5  ;;  %v695_v41 = vpop.permute.xlu1 %694  ;;  %v2687_v5 = vld [vmem:[%s4061_s3 + $0x40] sm:$0xff] }
 0x2ef   : > { %746 = vmatmul.bf16.gmra.mxu3 %v2668_v8 }
 0x2f3   : > { %765 = vmatmul.bf16.gmra.mxu2 %v2672_v11 }
 0x2f7   : > { %2678 = vmatmul.msk.bf16.gmra.mxu0 %vm500_vm2, %v2676_v14 }
 0x362   : > { %v742_v15 = vpop.f32.mrf.mxu3 }
 0x363   : > { %v743_v18 = vadd.f32 %v742_v15, %v680_v16 }
 0x364   : > { %v780_v17 = vpop.f32.mrf.mxu0 }
 0x366   : > { %v761_v19 = vpop.f32.mrf.mxu2 }
 0x367   : > { %v762_v20 = vadd.f32 %v761_v19, %v743_v18 }
 0x369   : > { %v781_v21 = vadd.f32 %v780_v17, %v762_v20  ;;  %v2709_v20 = vld [vmem:[%s4060_s2 + $0x68] sm:$0xf] }
 0x36a   : > { %v744_v23 = vpop.f32.mrf.mxu3 }
 0x36b   : > { %v790_v24 = vmax.f32 %v781_v21, 0.0  ;;  %v745_v31 = vadd.f32 %v744_v23, %v685_v30  ;;  %v2994_v21 = vld [vmem:[%s4060_s2 + $0x70] sm:$0xf0] }
 0x36c   : > { %v782_v25 = vpop.f32.mrf.mxu0  ;;  %v2710_v23 = vor.u32 %v2994_v21, %v2709_v20 }
 0x36d   : > { %v794_v26 = vmul.f32 %v3255_v61, %v790_v24  ;;  %v2701_v24 = vld [vmem:[%s4060_s2 + $0x60] sm:$0xf] }
 0x36e   : > { %v763_v27 = vpop.f32.mrf.mxu2 }
 0x36f   : > { %v798_v28 = vpack.c.bf16 %v794_v26, %v794_v26  ;;  %v764_v35 = vadd.f32 %v763_v27, %v745_v31  ;;  %v2992_v26 = vld [vmem:[%s4060_s2 + $0x64] sm:$0xf]  ;;  %v2703_v27 = vld [vmem:[%s4060_s2 + $0x6c] sm:$0xf0]  ;;  %v2721_v31 = vld [vmem:[%s4060_s2 + $0x80] sm:$0xf] }
 0x370   : > { %v2706_v30 = vor.u32 %v2992_v26, %v2703_v27  ;;  %v2735_v27 = vld [vmem:[%s4061_s3 + $0x70] sm:$0xff] }
 0x371   : > { %806 = vrot.lane.b32.xlu0 %v798_v28, %s4084_s15  ;;  %v783_v39 = vadd.f32 %v782_v25, %v764_v35  ;;  %v2993_v25 = vld [vmem:[%s4060_s2 + $0x68] sm:$0xf0]  ;;  %v2996_v35 = vld [vmem:[%s4060_s2 + $0x80] sm:$0xf0] }
 0x372   : > { %v747_v29 = vpop.f32.mrf.mxu3 }
 0x373   : > { %v748_v32 = vadd.f32 %v747_v29, %v690_v22  ;;  %v791_v45 = vmax.f32 %v783_v39, 0.0  ;;  %v2702_v29 = vor.u32 %v2993_v25, %v2701_v24 }
 0x374   : > { %v785_v33 = vpop.f32.mrf.mxu0 }
 0x375   : > { %v795_v51 = vmul.f32 %v3255_v61, %v791_v45 }
 0x376   : > { %v766_v34 = vpop.f32.mrf.mxu2 }
 0x377   : > { %v767_v36 = vadd.f32 %v766_v34, %v748_v32  ;;  %v799_v54 = vpack.c.bf16 %v795_v51, %v795_v51  ;;  %v2997_v32 = vld [vmem:[%s4060_s2 + $0x88] sm:$0xf0]  ;;  %v2713_v34 = vld [vmem:[%s4060_s2 + $0x78] sm:$0xf] }
 0x379   : > { %v786_v37 = vadd.f32 %v785_v33, %v767_v36  ;;  %v2722_v33 = vor.u32 %v2997_v32, %v2721_v31  ;;  %v2995_v36 = vld [vmem:[%s4060_s2 + $0x7c] sm:$0xf] }
 0x37a   : > { %v749_v38 = vpop.f32.mrf.mxu3 }
 0x37b   : > { %v792_v40 = vmax.f32 %v786_v37, 0.0  ;;  %v750_v42 = vadd.f32 %v749_v38, %v695_v41  ;;  %v2715_v37 = vld [vmem:[%s4060_s2 + $0x84] sm:$0xf0]  ;;  %v2714_v38 = vor.u32 %v2996_v35, %v2713_v34 }
 0x37c   : > { %v787_v48 = vpop.f32.mrf.mxu0  ;;  %v2718_v39 = vor.u32 %v2995_v36, %v2715_v37 }
 0x37d   : > { %v796_v43 = vmul.f32 %v3255_v61, %v792_v40 }
 0x37e   : > { %v768_v44 = vpop.f32.mrf.mxu2 }
 0x37f   : > { %v769_v46 = vadd.f32 %v768_v44, %v750_v42  ;;  %v800_v47 = vpack.c.bf16 %v796_v43, %v796_v43 }
 0x381   : > { %v788_v49 = vadd.f32 %v787_v48, %v769_v46  ;;  %810 = vrot.lane.b32.xlu1 %v800_v47, %s4084_s15 }
 0x383   : > { %v793_v50 = vmax.f32 %v788_v49, 0.0 }
 0x385   : > { %v797_v52 = vmul.f32 %v3255_v61, %v793_v50 }
 0x387   : > { %v801_v53 = vpack.c.bf16 %v797_v52, %v797_v52 }
 0x389   : > { %812 = vrot.lane.b32.xlu2 %v801_v53, %s4084_s15  ;;  %808 = vrot.lane.b32.xlu1 %v799_v54, %s4084_s15 }
 0x3e3   : > { %v813_v55 = vpop.permute.xlu2 %812  ;;  %v807_v56 = vpop.permute.xlu0 %806 }
 0x3e4   : > { %821 = vst.msk [vmem:[#allocation2 + $0xc] sm:$0xf] %vm369_vm1, %v813_v55 }
 0x3e5   : > { %818 = vst.msk [vmem:[#allocation2] sm:$0xf] %vm369_vm1, %v807_v56 }
 0x3eb   : > { %v2999_v58 = vld [vmem:[#allocation2 + $0x8] sm:$0xf0] }
 0x3ec   : > { %v2693_v63 = vld [vmem:[#allocation2] sm:$0xf] }
 0x3f3   : > { %v811_v57 = vpop.permute.xlu1 %810 }
 0x3f4   : > { %820 = vst.msk [vmem:[#allocation2 + $0x8] sm:$0xf] %vm369_vm1, %v811_v57 }
 0x3fb   : > { %v2697_v59 = vld [vmem:[#allocation2 + $0x8] sm:$0xf]  ;;  %v809_v60 = vpop.permute.xlu1 %808 }
 0x3fc   : > { %819 = vst.msk [vmem:[#allocation2 + $0x4] sm:$0xf] %vm369_vm1, %v809_v60  ;;  %v2698_v62 = vor.u32 %v2999_v58, %v2697_v59 }
 0x3fe   : > { %866 = vrot.lane.b32.xlu0 %v2698_v62, %s4080_s16 }
 0x403   : > { %v2998_v0 = vld [vmem:[#allocation2] sm:$0xf0] }
 0x404   : > { %v3348_v1 = vor.u32 %v2998_v0, %v2693_v63 }
 0x406   : > { %884 = vrot.lane.b32.xlu0 %v2698_v62, %s4076_s19  ;;  %864 = vrot.lane.b32.xlu2 %v3348_v1, %s4080_s16 }
 0x407   : > { %888 = vrot.lane.b32.xlu1 %v3348_v1, %s4078_s17 }
 0x40e   : > { %858 = vrot.lane.b32.xlu0 %v3348_v1, %s4082_s18  ;;  %890 = vrot.lane.b32.xlu2 %v2698_v62, %s4078_s17 }
 0x40f   : > { %860 = vrot.lane.b32.xlu1 %v2698_v62, %s4082_s18 }
 0x416   : > { %876 = vrot.lane.b32.xlu0 %v3348_v1, %s4074_s20  ;;  %882 = vrot.lane.b32.xlu2 %v3348_v1, %s4076_s19  ;;  %s4089_s19 = smov 108  }
 0x417   : > { %878 = vrot.lane.b32.xlu1 %v2698_v62, %s4074_s20  ;;  %s4090_s20 = smov 116  }
 0x41e   : > { %896 = vrot.lane.b32.xlu0 %v2698_v62, %s4087_s11  ;;  %854 = vrot.lane.b32.xlu2 %v2698_v62, %s4088_s21 }
 0x41f   : > { %852 = vrot.lane.b32.xlu1 %v3348_v1, %s4088_s21 }
 0x426   : > { %912 = vperm.xlu0 %3069, %v2689_v2   ;;  %872 = vrot.lane.b32.xlu2 %v2698_v62, %s4086_s23 }
 0x427   : > { %870 = vrot.lane.b32.xlu1 %v3348_v1, %s4086_s23 }
 0x42e   : > { %907 = vperm.xlu0 %3069, %v2688_v3   ;;  %894 = vrot.lane.b32.xlu2 %v3348_v1, %s4087_s11 }
 0x42f   : > { %917 = vperm.xlu1 %3070, %v2690_v4  }
 0x436   : > { %902 = vperm.xlu2 %3068, %v2687_v5  }
 0x460   : > { %v865_v6 = vpop.permute.xlu2 %864 }
 0x468   : > { %v891_v7 = vpop.permute.xlu2 %890 }
 0x469   : > { %975 = vmatpush.bf16.msrb.mxu3 %v891_v7 }
 0x470   : > { %v867_v8 = vpop.permute.xlu0 %866  ;;  %v883_v9 = vpop.permute.xlu2 %882 }
 0x471   : > { %956 = vmatpush.bf16.msrb.mxu1 %v867_v8 }
 0x475   : > { %957 = vmatpush.bf16.msrb.mxu1 %v865_v6 }
 0x478   : > { %v885_v10 = vpop.permute.xlu0 %884  ;;  %v855_v12 = vpop.permute.xlu2 %854 }
 0x479   : > { %v889_v11 = vpop.permute.xlu1 %888 }
 0x47a   : > { %976 = vmatpush.bf16.msrb.mxu3 %v889_v11 }
 0x47e   : > { %977 = vmatpush.bf16.msrb.mxu3 %v885_v10 }
 0x480   : > { %v859_v13 = vpop.permute.xlu0 %858  ;;  %v873_v17 = vpop.permute.xlu2 %872 }
 0x481   : > { %v861_v14 = vpop.permute.xlu1 %860 }
 0x482   : > { %958 = vmatpush.bf16.msrb.mxu1 %v861_v14  ;;  %978 = vmatpush.bf16.msrb.mxu3 %v883_v9 }
 0x486   : > { %959 = vmatpush.bf16.msrb.mxu1 %v859_v13 }
 0x488   : > { %v877_v15 = vpop.permute.xlu0 %876  ;;  %v895_v22 = vpop.permute.xlu2 %894 }
 0x489   : > { %v879_v16 = vpop.permute.xlu1 %878 }
 0x48a   : > { %960 = vmatpush.bf16.msrb.mxu1 %v855_v12  ;;  %979 = vmatpush.bf16.msrb.mxu3 %v879_v16 }
 0x48e   : > { %980 = vmatpush.bf16.msrb.mxu3 %v877_v15 }
 0x490   : > { %v897_v18 = vpop.permute.xlu0 %896  ;;  %v903_v42 = vpop.permute.xlu2 %902 }
 0x491   : > { %v853_v19 = vpop.permute.xlu1 %852  ;;  %1000 = vmatpush.bf16.msra.mxu2 %v897_v18 }
 0x492   : > { %961 = vmatpush.bf16.msrb.mxu1 %v853_v19  ;;  %981 = vmatpush.bf16.msrb.mxu3 %v873_v17 }
 0x495   : > { %1001 = vmatpush.bf16.msra.mxu2 %v895_v22 }
 0x496   : > { %962 = vmatpush.bf16.msrb.mxu1 %v2698_v62 }
 0x498   : > { %2723 = vmatmul.msk.bf16.vlgmr.msra.gmra.mxu2 %vm500_vm2, %v2710_v23  ;;  %v913_v48 = vpop.permute.xlu0 %912 }
 0x499   : > { %v871_v28 = vpop.permute.xlu1 %870 }
 0x49a   : > { %963 = vmatpush.bf16.msrb.mxu1 %v3348_v1  ;;  %982 = vmatpush.bf16.msrb.mxu3 %v871_v28  ;;  %v2734_v28 = vld [vmem:[%s4061_s3 + $0x68] sm:$0xff] }
 0x49d   : > { %964 = vmatmul.bf16.vlgmr.msrb.gmra.mxu1 %v2702_v29  ;;  %983 = vmatmul.bf16.vlgmr.msrb.gmra.mxu3 %v2706_v30  ;;  %v2736_v29 = vld [vmem:[%s4061_s3 + $0x78] sm:$0xff]  ;;  %v2733_v30 = vld [vmem:[%s4061_s3 + $0x60] sm:$0xff] }
 0x4a0   : > { %v908_v55 = vpop.permute.xlu0 %907 }
 0x4a1   : > { %v918_v3 = vpop.permute.xlu1 %917 }
 0x4a8   : > { %2724 = vmatmul.msk.bf16.gmra.mxu2 %vm500_vm2, %v2722_v33 }
 0x4ad   : > { %969 = vmatmul.bf16.gmra.mxu1 %v2714_v38  ;;  %988 = vmatmul.bf16.gmra.mxu3 %v2718_v39 }
 0x51a   : > { %v965_v40 = vpop.f32.mrf.mxu1 }
 0x51b   : > { %v1003_v41 = vpop.f32.mrf.mxu2  ;;  %v966_v43 = vadd.f32 %v965_v40, %v903_v42 }
 0x520   : > { %v984_v44 = vpop.f32.mrf.mxu3 }
 0x521   : > { %v985_v45 = vadd.f32 %v984_v44, %v966_v43  ;;  %v2747_v44 = vld [vmem:[%s4060_s2 + $0x90] sm:$0xf] }
 0x522   : > { %v967_v46 = vpop.f32.mrf.mxu1 }
 0x523   : > { %v1004_v47 = vadd.f32 %v1003_v41, %v985_v45  ;;  %v1005_v50 = vpop.f32.mrf.mxu2  ;;  %v968_v56 = vadd.f32 %v967_v46, %v908_v55  ;;  %v3001_v45 = vld [vmem:[%s4060_s2 + $0x98] sm:$0xf0] }
 0x525   : > { %v1013_v49 = vmax.f32 %v1004_v47, 0.0  ;;  %v2748_v47 = vor.u32 %v3001_v45, %v2747_v44  ;;  %v1435_v44 = vld [vmem:[%s3161_s14 + $0x8] sm:$0xf]  ;;  %v1434_v45 = vld [vmem:[%s3161_s14 + $0x4] sm:$0xf] }
 0x527   : > { %v1017_v51 = vmul.f32 %v3255_v61, %v1013_v49  ;;  %v2749_v49 = vld [vmem:[%s4060_s2 + $0x9c] sm:$0xf0] }
 0x528   : > { %v986_v52 = vpop.f32.mrf.mxu3 }
 0x529   : > { %v1021_v53 = vpack.c.bf16 %v1017_v51, %v1017_v51  ;;  %v987_v60 = vadd.f32 %v986_v52, %v968_v56  ;;  %v3002_v51 = vld [vmem:[%s4060_s2 + $0xa0] sm:$0xf0]  ;;  %v2759_v56 = vld [vmem:[%s4060_s2 + $0xa8] sm:$0xf] }
 0x52a   : > { %v970_v54 = vpop.f32.mrf.mxu1 }
 0x52b   : > { %1029 = vrot.lane.b32.xlu0 %v1021_v53, %s4084_s15  ;;  %v971_v57 = vadd.f32 %v970_v54, %v913_v48  ;;  %v1008_v58 = vpop.f32.mrf.mxu2  ;;  %v1006_v1 = vadd.f32 %v1005_v50, %v987_v60  ;;  %v3000_v48 = vld [vmem:[%s4060_s2 + $0x94] sm:$0xf]  ;;  %v2755_v50 = vld [vmem:[%s4060_s2 + $0x98] sm:$0xf] }
 0x52c   : > { %v2752_v54 = vor.u32 %v3000_v48, %v2749_v49  ;;  %v2756_v55 = vor.u32 %v3002_v51, %v2755_v50  ;;  %v2761_v60 = vld [vmem:[%s4060_s2 + $0xb4] sm:$0xf0] }
 0x52d   : > { %v1014_v7 = vmax.f32 %v1006_v1, 0.0 }
 0x52f   : > { %v1018_v13 = vmul.f32 %v3255_v61, %v1014_v7 }
 0x530   : > { %v989_v59 = vpop.f32.mrf.mxu3 }
 0x531   : > { %v990_v62 = vadd.f32 %v989_v59, %v971_v57  ;;  %v1022_v16 = vpack.c.bf16 %v1018_v13, %v1018_v13  ;;  %v3004_v57 = vld [vmem:[%s4060_s2 + $0xb0] sm:$0xf0]  ;;  %v3003_v59 = vld [vmem:[%s4060_s2 + $0xac] sm:$0xf] }
 0x532   : > { %v972_v0 = vpop.f32.mrf.mxu1 }
 0x533   : > { %v1009_v63 = vadd.f32 %v1008_v58, %v990_v62  ;;  %v973_v4 = vadd.f32 %v972_v0, %v918_v3  ;;  %v1010_v10 = vpop.f32.mrf.mxu2  ;;  %v2760_v58 = vor.u32 %v3004_v57, %v2759_v56  ;;  %v2767_v62 = vld [vmem:[%s4060_s2 + $0xb0] sm:$0xf]  ;;  %v2764_v0 = vor.u32 %v3003_v59, %v2761_v60 }
 0x535   : > { %v1015_v2 = vmax.f32 %v1009_v63, 0.0  ;;  %v3005_v63 = vld [vmem:[%s4060_s2 + $0xb8] sm:$0xf0] }
 0x536   : > { %v2768_v1 = vor.u32 %v3005_v63, %v2767_v62  ;;  %v2788_v62 = vld [vmem:[%s4061_s3 + $0x80] sm:$0xff]  ;;  %v2790_v63 = vld [vmem:[%s4061_s3 + $0x90] sm:$0xff] }
 0x537   : > { %v1019_v5 = vmul.f32 %v3255_v61, %v1015_v2 }
 0x538   : > { %v991_v6 = vpop.f32.mrf.mxu3 }
 0x539   : > { %v992_v8 = vadd.f32 %v991_v6, %v973_v4  ;;  %v1023_v9 = vpack.c.bf16 %v1019_v5, %v1019_v5 }
 0x53b   : > { %v1011_v11 = vadd.f32 %v1010_v10, %v992_v8  ;;  %1033 = vrot.lane.b32.xlu1 %v1023_v9, %s4084_s15 }
 0x53d   : > { %v1016_v12 = vmax.f32 %v1011_v11, 0.0 }
 0x53f   : > { %v1020_v14 = vmul.f32 %v3255_v61, %v1016_v12 }
 0x541   : > { %v1024_v15 = vpack.c.bf16 %v1020_v14, %v1020_v14 }
 0x543   : > { %1035 = vrot.lane.b32.xlu2 %v1024_v15, %s4084_s15  ;;  %1031 = vrot.lane.b32.xlu1 %v1022_v16, %s4084_s15 }
 0x59d   : > { %v1036_v17 = vpop.permute.xlu2 %1035  ;;  %v1030_v18 = vpop.permute.xlu0 %1029 }
 0x59e   : > { %1044 = vst.msk [vmem:[#allocation2 + $0xc] sm:$0xf] %vm369_vm1, %v1036_v17 }
 0x59f   : > { %1041 = vst.msk [vmem:[#allocation2] sm:$0xf] %vm369_vm1, %v1030_v18 }
 0x5a5   : > { %v3007_v20 = vld [vmem:[#allocation2 + $0x8] sm:$0xf0] }
 0x5a6   : > { %v2739_v24 = vld [vmem:[#allocation2] sm:$0xf] }
 0x5ad   : > { %v1034_v19 = vpop.permute.xlu1 %1033 }
 0x5ae   : > { %1043 = vst.msk [vmem:[#allocation2 + $0x8] sm:$0xf] %vm369_vm1, %v1034_v19 }
 0x5b5   : > { %v2743_v21 = vld [vmem:[#allocation2 + $0x8] sm:$0xf]  ;;  %v1032_v22 = vpop.permute.xlu1 %1031 }
 0x5b6   : > { %1042 = vst.msk [vmem:[#allocation2 + $0x4] sm:$0xf] %vm369_vm1, %v1032_v22  ;;  %v2744_v23 = vor.u32 %v3007_v20, %v2743_v21  ;;  %v1436_v20 = vld [vmem:[%s3161_s14 + $0xc] sm:$0xf] }
 0x5b8   : > { %1113 = vrot.lane.b32.xlu0 %v2744_v23, %s4078_s17 }
 0x5bd   : > { %v3006_v25 = vld [vmem:[#allocation2] sm:$0xf0] }
 0x5be   : > { %v2740_v26 = vor.u32 %v3006_v25, %v2739_v24 }
 0x5c0   : > { %1083 = vrot.lane.b32.xlu0 %v2744_v23, %s4082_s18  ;;  %1111 = vrot.lane.b32.xlu2 %v2740_v26, %s4078_s17  ;;  %s4018_s17 = scalar_lea.vmem %s4066_s8, %s2597_s22 }
 0x5c1   : > { %1087 = vrot.lane.b32.xlu1 %v2740_v26, %s4080_s16 }
 0x5c8   : > { %1105 = vrot.lane.b32.xlu0 %v2740_v26, %s4089_s19  ;;  %1089 = vrot.lane.b32.xlu2 %v2744_v23, %s4080_s16  ;;  %s4092_s16 = smov 107  }
 0x5c9   : > { %1107 = vrot.lane.b32.xlu1 %v2744_v23, %s4089_s19 }
 0x5d0   : > { %1075 = vrot.lane.b32.xlu0 %v2740_v26, %s4088_s21  ;;  %1081 = vrot.lane.b32.xlu2 %v2740_v26, %s4082_s18 }
 0x5d1   : > { %1077 = vrot.lane.b32.xlu1 %v2744_v23, %s4088_s21 }
 0x5d8   : > { %1095 = vrot.lane.b32.xlu0 %v2744_v23, %s4086_s23  ;;  %1101 = vrot.lane.b32.xlu2 %v2744_v23, %s4090_s20 }
 0x5d9   : > { %1099 = vrot.lane.b32.xlu1 %v2740_v26, %s4090_s20 }
 0x5e0   : > { %1135 = vperm.xlu0 %3069, %v2735_v27   ;;  %1119 = vrot.lane.b32.xlu2 %v2744_v23, %s4087_s11 }
 0x5e1   : > { %1117 = vrot.lane.b32.xlu1 %v2740_v26, %s4087_s11 }
 0x5e8   : > { %1130 = vperm.xlu0 %3069, %v2734_v28   ;;  %1093 = vrot.lane.b32.xlu2 %v2740_v26, %s4086_s23 }
 0x5e9   : > { %1140 = vperm.xlu1 %3070, %v2736_v29  }
 0x5f0   : > { %1125 = vperm.xlu2 %3068, %v2733_v30  }
 0x61a   : > { %v1112_v31 = vpop.permute.xlu2 %1111 }
 0x622   : > { %v1090_v32 = vpop.permute.xlu2 %1089 }
 0x623   : > { %1179 = vmatpush.bf16.msra.mxu0 %v1090_v32 }
 0x62a   : > { %v1082_v33 = vpop.permute.xlu2 %1081  ;;  %v1114_v34 = vpop.permute.xlu0 %1113 }
 0x62b   : > { %1198 = vmatpush.bf16.msra.mxu1 %v1114_v34 }
 0x62f   : > { %1199 = vmatpush.bf16.msra.mxu1 %v1112_v31 }
 0x632   : > { %v1102_v35 = vpop.permute.xlu2 %1101  ;;  %v1084_v36 = vpop.permute.xlu0 %1083 }
 0x633   : > { %v1088_v37 = vpop.permute.xlu1 %1087 }
 0x634   : > { %1180 = vmatpush.bf16.msra.mxu0 %v1088_v37 }
 0x638   : > { %1181 = vmatpush.bf16.msra.mxu0 %v1084_v36 }
 0x63a   : > { %v1120_v38 = vpop.permute.xlu2 %1119  ;;  %v1106_v40 = vpop.permute.xlu0 %1105 }
 0x63b   : > { %v1108_v39 = vpop.permute.xlu1 %1107  ;;  %1223 = vmatpush.bf16.msra.mxu3 %v1120_v38 }
 0x63c   : > { %1182 = vmatpush.bf16.msra.mxu0 %v1082_v33  ;;  %1200 = vmatpush.bf16.msra.mxu1 %v1108_v39 }
 0x640   : > { %1201 = vmatpush.bf16.msra.mxu1 %v1106_v40 }
 0x642   : > { %v1076_v42 = vpop.permute.xlu0 %1075  ;;  %v1094_v52 = vpop.permute.xlu2 %1093 }
 0x643   : > { %v1078_v41 = vpop.permute.xlu1 %1077 }
 0x644   : > { %1183 = vmatpush.bf16.msra.mxu0 %v1078_v41  ;;  %1202 = vmatpush.bf16.msra.mxu1 %v1102_v35 }
 0x648   : > { %1184 = vmatpush.bf16.msra.mxu0 %v1076_v42 }
 0x64a   : > { %v1096_v46 = vpop.permute.xlu0 %1095  ;;  %v1126_v4 = vpop.permute.xlu2 %1125 }
 0x64b   : > { %v1100_v43 = vpop.permute.xlu1 %1099 }
 0x64c   : > { %1185 = vmatpush.bf16.msra.mxu0 %v2744_v23  ;;  %1203 = vmatpush.bf16.msra.mxu1 %v1100_v43  ;;  %v1433_v43 = vld [vmem:[%s3161_s14] sm:$0xf]  ;;  %s4091_s14 = smov 118  }
 0x650   : > { %1186 = vmatpush.bf16.msra.mxu0 %v2740_v26  ;;  %1204 = vmatpush.bf16.msra.mxu1 %v1096_v46 }
 0x652   : > { %v1136_v12 = vpop.permute.xlu0 %1135 }
 0x653   : > { %v1118_v53 = vpop.permute.xlu1 %1117  ;;  %1187 = vmatmul.bf16.vlgmr.msra.gmra.mxu0 %v2748_v47 }
 0x654   : > { %1205 = vmatpush.bf16.msra.mxu1 %v1094_v52  ;;  %1224 = vmatpush.bf16.msra.mxu3 %v1118_v53 }
 0x657   : > { %1206 = vmatmul.bf16.vlgmr.msra.gmra.mxu1 %v2752_v54  ;;  %2769 = vmatmul.msk.bf16.vlgmr.msra.gmra.mxu3 %vm500_vm2, %v2756_v55 }
 0x65a   : > { %v1131_v19 = vpop.permute.xlu0 %1130 }
 0x65b   : > { %v1141_v29 = vpop.permute.xlu1 %1140 }
 0x663   : > { %1192 = vmatmul.bf16.gmra.mxu0 %v2760_v58 }
 0x667   : > { %1211 = vmatmul.bf16.gmra.mxu1 %v2764_v0  ;;  %2770 = vmatmul.msk.bf16.gmra.mxu3 %vm500_vm2, %v2768_v1  ;;  %v2789_v0 = vld [vmem:[%s4061_s3 + $0x88] sm:$0xff]  ;;  %v2791_v1 = vld [vmem:[%s4061_s3 + $0x98] sm:$0xff] }
 0x6d0   : > { %v1188_v2 = vpop.f32.mrf.mxu0 }
 0x6d1   : > { %v1189_v5 = vadd.f32 %v1188_v2, %v1126_v4 }
 0x6d4   : > { %v1207_v3 = vpop.f32.mrf.mxu1 }
 0x6d5   : > { %v1208_v7 = vadd.f32 %v1207_v3, %v1189_v5 }
 0x6d8   : > { %v1190_v6 = vpop.f32.mrf.mxu0 }
 0x6d9   : > { %v1191_v21 = vadd.f32 %v1190_v6, %v1131_v19 }
 0x6da   : > { %v1226_v8 = vpop.f32.mrf.mxu3 }
 0x6db   : > { %v1227_v9 = vadd.f32 %v1226_v8, %v1208_v7 }
 0x6dc   : > { %v1209_v10 = vpop.f32.mrf.mxu1 }
 0x6dd   : > { %v1236_v11 = vmax.f32 %v1227_v9, 0.0  ;;  %v1210_v24 = vadd.f32 %v1209_v10, %v1191_v21 }
 0x6df   : > { %v1240_v13 = vmul.f32 %v3255_v61, %v1236_v11 }
 0x6e0   : > { %v1193_v15 = vpop.f32.mrf.mxu0 }
 0x6e1   : > { %v1244_v14 = vpack.c.bf16 %v1240_v13, %v1240_v13  ;;  %v1194_v18 = vadd.f32 %v1193_v15, %v1136_v12  ;;  %v3597_v13 = vld [vmem:[%s4062_s4] sm:$0xff] }
 0x6e2   : > { %v1228_v16 = vpop.f32.mrf.mxu3 }
 0x6e3   : > { %1252 = vrot.lane.b32.xlu0 %v1244_v14, %s4084_s15  ;;  %v1229_v27 = vadd.f32 %v1228_v16, %v1210_v24  ;;  %v1342_v14 = vunpack.c.l.b16 %v3597_v13 }
 0x6e4   : > { %v1212_v17 = vpop.f32.mrf.mxu1 }
 0x6e5   : > { %v1213_v22 = vadd.f32 %v1212_v17, %v1194_v18  ;;  %v1237_v33 = vmax.f32 %v1229_v27, 0.0  ;;  %v1345_v18 = vpack.c.b16 %v1342_v14, %v1342_v14 }
 0x6e7   : > { %v1241_v38 = vmul.f32 %v3255_v61, %v1237_v33  ;;  %v3010_v33 = vld [vmem:[%s4060_s2 + $0xc4] sm:$0xf] }
 0x6e8   : > { %v1195_v26 = vpop.f32.mrf.mxu0 }
 0x6e9   : > { %v1196_v31 = vadd.f32 %v1195_v26, %v1141_v29  ;;  %v1245_v41 = vpack.c.bf16 %v1241_v38, %v1241_v38 }
 0x6ea   : > { %v1231_v23 = vpop.f32.mrf.mxu3 }
 0x6eb   : > { %v1232_v25 = vadd.f32 %v1231_v23, %v1213_v22  ;;  %1447 = vrot.lane.b32.xlu0 %v1436_v20, %s4084_s15  ;;  %v1269_v22 = vld [vmem:[%s4062_s4 + $0x8] sm:$0xf] }
 0x6ec   : > { %v1214_v30 = vpop.f32.mrf.mxu1  ;;  %v1344_v23 = vunpack.c.l.b16 %v1269_v22 }
 0x6ed   : > { %v1238_v28 = vmax.f32 %v1232_v25, 0.0  ;;  %v1215_v35 = vadd.f32 %v1214_v30, %v1196_v31  ;;  %v2802_v31 = vld [vmem:[%s4060_s2 + $0xc0] sm:$0xf] }
 0x6ee   : > { %v1347_v26 = vpack.c.b16 %v1344_v23, %v1344_v23 }
 0x6ef   : > { %v1242_v32 = vmul.f32 %v3255_v61, %v1238_v28 }
 0x6f1   : > { %v1246_v34 = vpack.c.bf16 %v1242_v32, %v1242_v32  ;;  %v3011_v32 = vld [vmem:[%s4060_s2 + $0xc8] sm:$0xf0] }
 0x6f2   : > { %v1233_v36 = vpop.f32.mrf.mxu3  ;;  %v2803_v38 = vor.u32 %v3011_v32, %v2802_v31 }
 0x6f3   : > { %v1234_v37 = vadd.f32 %v1233_v36, %v1215_v35  ;;  %1256 = vrot.lane.b32.xlu1 %v1246_v34, %s4084_s15  ;;  %v2804_v34 = vld [vmem:[%s4060_s2 + $0xcc] sm:$0xf0]  ;;  %v2810_v35 = vld [vmem:[%s4060_s2 + $0xc8] sm:$0xf]  ;;  %v3012_v36 = vld [vmem:[%s4060_s2 + $0xd0] sm:$0xf0] }
 0x6f5   : > { %v1239_v39 = vmax.f32 %v1234_v37, 0.0 }
 0x6f7   : > { %v1243_v40 = vmul.f32 %v3255_v61, %v1239_v39  ;;  %v2807_v39 = vor.u32 %v3010_v33, %v2804_v34 }
 0x6f9   : > { %v1247_v42 = vpack.c.bf16 %v1243_v40, %v1243_v40  ;;  %v2811_v40 = vor.u32 %v3012_v36, %v2810_v35 }
 0x6fb   : > { %1258 = vrot.lane.b32.xlu2 %v1247_v42, %s4084_s15  ;;  %1254 = vrot.lane.b32.xlu1 %v1245_v41, %s4084_s15  ;;  %v2814_v41 = vld [vmem:[%s4060_s2 + $0xd8] sm:$0xf]  ;;  %v3014_v42 = vld [vmem:[%s4060_s2 + $0xe0] sm:$0xf0] }
 0x703   : > { %1441 = vrot.lane.b32.xlu1 %v1433_v43, %s4084_s15  ;;  %1445 = vrot.lane.b32.xlu2 %v1435_v44, %s4084_s15  ;;  %v3013_v43 = vld [vmem:[%s4060_s2 + $0xdc] sm:$0xf]  ;;  %v2816_v44 = vld [vmem:[%s4060_s2 + $0xe4] sm:$0xf0] }
 0x70b   : > { %1443 = vrot.lane.b32.xlu2 %v1434_v45, %s4084_s15  ;;  %v2822_v45 = vld [vmem:[%s4060_s2 + $0xe0] sm:$0xf]  ;;  %s3094_s15 = smov 109  }
 0x755   : > { %v1259_v46 = vpop.permute.xlu2 %1258  ;;  %v1253_v47 = vpop.permute.xlu0 %1252 }
 0x756   : > { %1267 = vst.msk [vmem:[#allocation2 + $0xc] sm:$0xf] %vm369_vm1, %v1259_v46  ;;  %v3015_v46 = vld [vmem:[%s4060_s2 + $0xe8] sm:$0xf0] }
 0x757   : > { %1264 = vst.msk [vmem:[#allocation2] sm:$0xf] %vm369_vm1, %v1253_v47  ;;  %v2815_v47 = vor.u32 %v3014_v42, %v2814_v41 }
 0x75d   : > { %v3009_v61 = vld [vmem:[#allocation2 + $0x8] sm:$0xf0]  ;;  %v1448_v48 = vpop.permute.xlu0 %1447  ;;  %v1446_v50 = vpop.permute.xlu2 %1445 }
 0x75e   : > { %1456 = vst.msk [vmem:[#allocation2 + $0xc] sm:$0xf] %vm369_vm1, %v1448_v48  ;;  %v2773_v56 = vld [vmem:[#allocation2] sm:$0xf]  ;;  %v2823_v48 = vor.u32 %v3015_v46, %v2822_v45  ;;  %v2837_v45 = vld [vmem:[%s4061_s3 + $0xb8] sm:$0xff] }
 0x765   : > { %v1257_v49 = vpop.permute.xlu1 %1256  ;;  %v1444_v54 = vpop.permute.xlu2 %1443 }
 0x766   : > { %1266 = vst.msk [vmem:[#allocation2 + $0x8] sm:$0xf] %vm369_vm1, %v1257_v49 }
 0x76d   : > { %v2777_v51 = vld [vmem:[#allocation2 + $0x8] sm:$0xf]  ;;  %v1255_v52 = vpop.permute.xlu1 %1254 }
 0x76e   : > { %1455 = vst.msk [vmem:[#allocation2 + $0x8] sm:$0xf] %vm369_vm1, %v1446_v50  ;;  %v3523_v53 = vor.u32 %v3009_v61, %v2777_v51  ;;  %v2819_v61 = vor.u32 %v3013_v43, %v2816_v44 }
 0x76f   : > { %1265 = vst.msk [vmem:[#allocation2 + $0x4] sm:$0xf] %vm369_vm1, %v1255_v52 }
 0x770   : > { %1295 = vrot.lane.b32.xlu2 %v3523_v53, %s4082_s18  ;;  %1301 = vrot.lane.b32.xlu0 %v3523_v53, %s4091_s14 }
 0x775   : > { %v1442_v55 = vpop.permute.xlu1 %1441  ;;  %v3548_v60 = vld [vmem:[#allocation2 + $0x8] sm:$0xff] }
 0x776   : > { %v3008_v57 = vld [vmem:[#allocation2] sm:$0xf0]  ;;  %1453 = vst.msk [vmem:[#allocation2] sm:$0xf] %vm369_vm1, %v1442_v55 }
 0x777   : > { %1454 = vst.msk [vmem:[#allocation2 + $0x4] sm:$0xf] %vm369_vm1, %v1444_v54  ;;  %v3532_v58 = vor.u32 %v3008_v57, %v2773_v56 }
 0x779   : > { %1287 = vrot.lane.b32.xlu2 %v3532_v58, %s4088_s21  ;;  %1293 = vrot.lane.b32.xlu0 %v3532_v58, %s4082_s18 }
 0x77a   : > { %1299 = vrot.lane.b32.xlu1 %v3532_v58, %s4091_s14 }
 0x77e   : > { %v3540_v59 = vld [vmem:[#allocation2] sm:$0xff] }
 0x781   : > { %1523 = vrot.lane.b32.xlu2 %v3540_v59, %s4092_s16  ;;  %1499 = vrot.lane.b32.xlu0 %v3540_v59, %s4091_s14 }
 0x782   : > { %1289 = vrot.lane.b32.xlu1 %v3523_v53, %s4088_s21 }
 0x789   : > { %1329 = vrot.lane.b32.xlu2 %v3532_v58, %s4087_s11  ;;  %1525 = vrot.lane.b32.xlu0 %v3548_v60, %s4092_s16 }
 0x78a   : > { %1517 = vrot.lane.b32.xlu1 %v3540_v59, %s4089_s19 }
 0x791   : > { %1331 = vrot.lane.b32.xlu2 %v3523_v53, %s4087_s11  ;;  %1493 = vrot.lane.b32.xlu0 %v3540_v59, %s4082_s18 }
 0x792   : > { %1501 = vrot.lane.b32.xlu1 %v3548_v60, %s4091_s14 }
 0x799   : > { %1489 = vrot.lane.b32.xlu2 %v3548_v60, %s4088_s21  ;;  %1495 = vrot.lane.b32.xlu0 %v3548_v60, %s4082_s18 }
 0x79a   : > { %1519 = vrot.lane.b32.xlu1 %v3548_v60, %s4089_s19 }
 0x7a1   : > { %1507 = vrot.lane.b32.xlu2 %v3548_v60, %s4086_s23  ;;  %1511 = vrot.lane.b32.xlu0 %v3540_v59, %s4090_s20 }
 0x7a2   : > { %1513 = vrot.lane.b32.xlu1 %v3548_v60, %s4090_s20 }
 0x7a9   : > { %1529 = vrot.lane.b32.xlu2 %v3540_v59, %s4087_s11  ;;  %1531 = vrot.lane.b32.xlu0 %v3548_v60, %s4087_s11 }
 0x7aa   : > { %1487 = vrot.lane.b32.xlu1 %v3540_v59, %s4088_s21 }
 0x7b1   : > { %1537 = vperm.xlu2 %3068, %v2788_v62   ;;  %1547 = vperm.xlu0 %3069, %v2790_v63  }
 0x7b2   : > { %1505 = vrot.lane.b32.xlu1 %v3540_v59, %s4086_s23 }
 0x7b9   : > { %1542 = vperm.xlu0 %3069, %v2789_v0  }
 0x7ba   : > { %1552 = vperm.xlu1 %3070, %v2791_v1  }
 0x7ca   : > { %v1296_v2 = vpop.permute.xlu2 %1295 }
 0x7d3   : > { %v1288_v4 = vpop.permute.xlu2 %1287 }
 0x7db   : > { %v1524_v7 = vpop.permute.xlu2 %1523 }
 0x7e2   : > { %v1302_v3 = vpop.permute.xlu0 %1301 }
 0x7e3   : > { %1353 = vmatpush.bf16.msrb.mxu2 %v1302_v3  ;;  %v1330_v10 = vpop.permute.xlu2 %1329 }
 0x7eb   : > { %v1294_v5 = vpop.permute.xlu0 %1293  ;;  %v1332_v15 = vpop.permute.xlu2 %1331 }
 0x7ec   : > { %v1300_v6 = vpop.permute.xlu1 %1299 }
 0x7ed   : > { %1354 = vmatpush.bf16.msrb.mxu2 %v1300_v6 }
 0x7f1   : > { %1355 = vmatpush.bf16.msrb.mxu2 %v1296_v2  ;;  %v3653_v2 = vld [vmem:[%s4059_s1] ss:$0 sm:$0xff] }
 0x7f3   : > { %v1500_v8 = vpop.permute.xlu0 %1499  ;;  %v1490_v19 = vpop.permute.xlu2 %1489 }
 0x7f4   : > { %v1290_v9 = vpop.permute.xlu1 %1289 }
 0x7f5   : > { %1356 = vmatpush.bf16.msrb.mxu2 %v1294_v5 }
 0x7f9   : > { %1357 = vmatpush.bf16.msrb.mxu2 %v1290_v9 }
 0x7fb   : > { %v1526_v11 = vpop.permute.xlu0 %1525  ;;  %v1508_v27 = vpop.permute.xlu2 %1507 }
 0x7fc   : > { %v1518_v12 = vpop.permute.xlu1 %1517  ;;  %1610 = vmatpush.bf16.msrb.mxu3 %v1526_v11 }
 0x7fd   : > { %1358 = vmatpush.bf16.msrb.mxu2 %v1288_v4 }
 0x800   : > { %1611 = vmatpush.bf16.msrb.mxu3 %v1524_v7 }
 0x801   : > { %1359 = vmatpush.bf16.msrb.mxu2 %v3523_v53 }
 0x803   : > { %v1494_v16 = vpop.permute.xlu0 %1493  ;;  %v1530_v30 = vpop.permute.xlu2 %1529 }
 0x804   : > { %v1502_v17 = vpop.permute.xlu1 %1501 }
 0x805   : > { %1360 = vmatpush.bf16.msrb.mxu2 %v3532_v58  ;;  %1591 = vmatpush.bf16.msrb.mxu1 %v1502_v17 }
 0x808   : > { %1361 = vmatmul.bf16.vlgmr.msrb.gmra.mxu2 %v1345_v18 }
 0x809   : > { %1385 = vmatpush.bf16.msra.mxu2 %v1332_v15  ;;  %1592 = vmatpush.bf16.msrb.mxu1 %v1500_v8 }
 0x80b   : > { %v1496_v20 = vpop.permute.xlu0 %1495  ;;  %v1538_v55 = vpop.permute.xlu2 %1537 }
 0x80c   : > { %v1520_v21 = vpop.permute.xlu1 %1519 }
 0x80d   : > { %1386 = vmatpush.bf16.msra.mxu2 %v1330_v10  ;;  %1593 = vmatpush.bf16.msrb.mxu1 %v1496_v20 }
 0x80e   : > { %1612 = vmatpush.bf16.msrb.mxu3 %v1520_v21 }
 0x811   : > { %1594 = vmatpush.bf16.msrb.mxu1 %v1494_v16 }
 0x812   : > { %1613 = vmatpush.bf16.msrb.mxu3 %v1518_v12 }
 0x813   : > { %v1512_v24 = vpop.permute.xlu0 %1511 }
 0x814   : > { %v1514_v25 = vpop.permute.xlu1 %1513 }
 0x815   : > { %1595 = vmatpush.bf16.msrb.mxu1 %v1490_v19 }
 0x816   : > { %1614 = vmatpush.bf16.msrb.mxu3 %v1514_v25 }
 0x818   : > { %2779 = vmatmul.msk.bf16.vlgmr.msra.gmra.mxu2 %vm500_vm2, %v1347_v26 }
 0x81a   : > { %1615 = vmatpush.bf16.msrb.mxu3 %v1512_v24 }
 0x81b   : > { %v1532_v28 = vpop.permute.xlu0 %1531 }
 0x81c   : > { %v1488_v29 = vpop.permute.xlu1 %1487  ;;  %1635 = vmatpush.bf16.msrb.mxu2 %v1532_v28 }
 0x81d   : > { %1596 = vmatpush.bf16.msrb.mxu1 %v1488_v29 }
 0x81e   : > { %1616 = vmatpush.bf16.msrb.mxu3 %v1508_v27 }
 0x820   : > { %1636 = vmatpush.bf16.msrb.mxu2 %v1530_v30 }
 0x821   : > { %1597 = vmatpush.bf16.msrb.mxu1 %v3548_v60 }
 0x823   : > { %v1548_v0 = vpop.permute.xlu0 %1547 }
 0x824   : > { %v1506_v37 = vpop.permute.xlu1 %1505 }
 0x825   : > { %1598 = vmatpush.bf16.msrb.mxu1 %v3540_v59  ;;  %1617 = vmatpush.bf16.msrb.mxu3 %v1506_v37 }
 0x828   : > { %1599 = vmatmul.bf16.vlgmr.msrb.gmra.mxu1 %v2803_v38  ;;  %1618 = vmatmul.bf16.vlgmr.msrb.gmra.mxu3 %v2807_v39 }
 0x829   : > { %2824 = vmatmul.msk.bf16.vlgmr.msrb.gmra.mxu2 %vm500_vm2, %v2811_v40 }
 0x82b   : > { %v1543_v8 = vpop.permute.xlu0 %1542 }
 0x82c   : > { %v1553_v19 = vpop.permute.xlu1 %1552 }
 0x838   : > { %1604 = vmatmul.bf16.gmra.mxu1 %v2815_v47  ;;  %1623 = vmatmul.bf16.gmra.mxu3 %v2819_v61  ;;  %v2836_v47 = vld [vmem:[%s4061_s3 + $0xb0] sm:$0xff]  ;;  %v2835_v61 = vld [vmem:[%s4061_s3 + $0xa8] sm:$0xff] }
 0x839   : > { %2825 = vmatmul.msk.bf16.gmra.mxu2 %vm500_vm2, %v2823_v48  ;;  %v2834_v48 = vld [vmem:[%s4061_s3 + $0xa0] sm:$0xff] }
 0x88b   : > { %v3646_v49 = vpop.f32.mrf.mxu2 }
 0x893   : > { %v1364_v50 = vpop.f32.mrf.mxu2 }
 0x89b   : > { %v3648_v51 = vpop.f32.mrf.mxu2 }
 0x8a3   : > { %v1390_v52 = vpop.f32.mrf.mxu2 }
 0x8a5   : > { %v1600_v54 = vpop.f32.mrf.mxu1 }
 0x8a6   : > { %v1601_v56 = vadd.f32 %v1600_v54, %v1538_v55  ;;  %v1343_v54 = vunpack.c.h.b16 %v3597_v13 }
 0x8ab   : > { %v1619_v57 = vpop.f32.mrf.mxu3 }
 0x8ac   : > { %v1620_v59 = vadd.f32 %v1619_v57, %v1601_v56  ;;  %v1638_v60 = vpop.f32.mrf.mxu2  ;;  %v1346_v56 = vpack.c.b16 %v1343_v54, %v1343_v54 }
 0x8ad   : > { %v1602_v62 = vpop.f32.mrf.mxu1 }
 0x8ae   : > { %v1639_v63 = vadd.f32 %v1638_v60, %v1620_v59  ;;  %v1603_v10 = vadd.f32 %v1602_v62, %v1543_v8  ;;  %v2856_v8 = vld [vmem:[%s4060_s2 + $0xf8] sm:$0xf] }
 0x8b0   : > { %v1648_v1 = vmax.f32 %v1639_v63, 0.0 }
 0x8b2   : > { %v1652_v3 = vmul.f32 %v3653_v2, %v1648_v1 }
 0x8b3   : > { %v1621_v4 = vpop.f32.mrf.mxu3 }
 0x8b4   : > { %v1656_v5 = vpack.c.bf16 %v1652_v3, %v1652_v3  ;;  %v1640_v6 = vpop.f32.mrf.mxu2  ;;  %v1622_v15 = vadd.f32 %v1621_v4, %v1603_v10 }
 0x8b5   : > { %v1605_v7 = vpop.f32.mrf.mxu1 }
 0x8b6   : > { %1664 = vrot.lane.b32.xlu0 %v1656_v5, %s4093_s13  ;;  %v1606_v9 = vadd.f32 %v1605_v7, %v1548_v0  ;;  %v1641_v20 = vadd.f32 %v1640_v6, %v1622_v15  ;;  %v2848_v6 = vld [vmem:[%s4060_s2 + $0xf0] sm:$0xf]  ;;  %v3019_v7 = vld [vmem:[%s4060_s2 + $0xf8] sm:$0xf0]  ;;  %v2850_v15 = vld [vmem:[%s4060_s2 + $0xfc] sm:$0xf0] }
 0x8b7   : > { %v2849_v10 = vor.u32 %v3019_v7, %v2848_v6 }
 0x8b8   : > { %v1649_v26 = vmax.f32 %v1641_v20, 0.0  ;;  %v2868_v20 = vld [vmem:[%s4060_s2 + $0x110] sm:$0xf] }
 0x8ba   : > { %v1653_v30 = vmul.f32 %v3653_v2, %v1649_v26 }
 0x8bb   : > { %v1624_v11 = vpop.f32.mrf.mxu3 }
 0x8bc   : > { %v1625_v12 = vadd.f32 %v1624_v11, %v1606_v9  ;;  %v1643_v14 = vpop.f32.mrf.mxu2  ;;  %v1657_v33 = vpack.c.bf16 %v1653_v30, %v1653_v30  ;;  %v3020_v9 = vld [vmem:[%s4060_s2 + $0x100] sm:$0xf0] }
 0x8bd   : > { %v1607_v17 = vpop.f32.mrf.mxu1 }
 0x8be   : > { %v1644_v16 = vadd.f32 %v1643_v14, %v1625_v12  ;;  %1323 = vrot.lane.b32.xlu0 %v3532_v58, %s4092_s16  ;;  %v1608_v22 = vadd.f32 %v1607_v17, %v1553_v19  ;;  %v2857_v12 = vor.u32 %v3020_v9, %v2856_v8  ;;  %v3018_v14 = vld [vmem:[%s4060_s2 + $0xf4] sm:$0xf] }
 0x8bf   : > { %v2853_v17 = vor.u32 %v3018_v14, %v2850_v15  ;;  %v3022_v19 = vld [vmem:[%s4060_s2 + $0x110] sm:$0xf0]  ;;  %v2883_v14 = vld [vmem:[%s4061_s3 + $0xd8] sm:$0xff] }
 0x8c0   : > { %v1650_v18 = vmax.f32 %v1644_v16, 0.0  ;;  %v2882_v15 = vld [vmem:[%s4061_s3 + $0xd0] sm:$0xff] }
 0x8c2   : > { %v1654_v21 = vmul.f32 %v3653_v2, %v1650_v18  ;;  %v2860_v18 = vld [vmem:[%s4060_s2 + $0x108] sm:$0xf] }
 0x8c3   : > { %v1626_v23 = vpop.f32.mrf.mxu3 }
 0x8c4   : > { %v1658_v24 = vpack.c.bf16 %v1654_v21, %v1654_v21  ;;  %v1627_v25 = vadd.f32 %v1626_v23, %v1608_v22  ;;  %v1645_v27 = vpop.f32.mrf.mxu2  ;;  %v3023_v21 = vld [vmem:[%s4060_s2 + $0x118] sm:$0xf0]  ;;  %v2861_v22 = vor.u32 %v3022_v19, %v2860_v18 }
 0x8c5   : > { %v2869_v23 = vor.u32 %v3023_v21, %v2868_v20 }
 0x8c6   : > { %v1646_v28 = vadd.f32 %v1645_v27, %v1627_v25  ;;  %1313 = vrot.lane.b32.xlu0 %v3523_v53, %s4090_s20  ;;  %1668 = vrot.lane.b32.xlu1 %v1658_v24, %s4093_s13  ;;  %v3021_v24 = vld [vmem:[%s4060_s2 + $0x10c] sm:$0xf]  ;;  %v2862_v25 = vld [vmem:[%s4060_s2 + $0x114] sm:$0xf0] }
 0x8c7   : > { %v2865_v26 = vor.u32 %v3021_v24, %v2862_v25 }
 0x8c8   : > { %v1651_v29 = vmax.f32 %v1646_v28, 0.0 }
 0x8ca   : > { %v1655_v31 = vmul.f32 %v3653_v2, %v1651_v29 }
 0x8cc   : > { %v1659_v32 = vpack.c.bf16 %v1655_v31, %v1655_v31 }
 0x8ce   : > { %1670 = vrot.lane.b32.xlu2 %v1659_v32, %s4093_s13  ;;  %1311 = vrot.lane.b32.xlu0 %v3532_v58, %s4090_s20 }
 0x8cf   : > { %1666 = vrot.lane.b32.xlu1 %v1657_v33, %s4093_s13 }
 0x8d6   : > { %1325 = vrot.lane.b32.xlu2 %v3523_v53, %s4092_s16  ;;  %1307 = vrot.lane.b32.xlu0 %v3523_v53, %s4086_s23 }
 0x8d7   : > { %1319 = vrot.lane.b32.xlu1 %v3523_v53, %s4089_s19 }
 0x8de   : > { %1317 = vrot.lane.b32.xlu2 %v3532_v58, %s4089_s19  ;;  %1305 = vrot.lane.b32.xlu0 %v3532_v58, %s4086_s23 }
 0x928   : > { %v1671_v34 = vpop.permute.xlu2 %1670  ;;  %v1665_v35 = vpop.permute.xlu0 %1664 }
 0x929   : > { %1679 = vst.msk [vmem:[#allocation2 + $0xc] sm:$0xf] %vm369_vm1, %v1671_v34 }
 0x92a   : > { %1676 = vst.msk [vmem:[#allocation2] sm:$0xf] %vm369_vm1, %v1665_v35 }
 0x930   : > { %v1326_v36 = vpop.permute.xlu2 %1325  ;;  %v1324_v37 = vpop.permute.xlu0 %1323 }
 0x931   : > { %1366 = vmatpush.bf16.msrb.mxu0 %v1326_v36 }
 0x935   : > { %1367 = vmatpush.bf16.msrb.mxu0 %v1324_v37 }
 0x938   : > { %v1669_v38 = vpop.permute.xlu1 %1668  ;;  %v1314_v53 = vpop.permute.xlu0 %1313 }
 0x939   : > { %1678 = vst.msk [vmem:[#allocation2 + $0x8] sm:$0xf] %vm369_vm1, %v1669_v38  ;;  %v1318_v43 = vpop.permute.xlu2 %1317 }
 0x940   : > { %v3682_v39 = vld [vmem:[#allocation2 + $0x8] sm:$0xff]  ;;  %v1312_v58 = vpop.permute.xlu0 %1311 }
 0x941   : > { %v1667_v40 = vpop.permute.xlu1 %1666  ;;  %1712 = vrot.lane.b32.xlu0 %v3682_v39, %s4088_s21 }
 0x942   : > { %1677 = vst.msk [vmem:[#allocation2 + $0x4] sm:$0xf] %vm369_vm1, %v1667_v40 }
 0x948   : > { %v1308_v44 = vpop.permute.xlu0 %1307 }
 0x949   : > { %v1320_v41 = vpop.permute.xlu1 %1319  ;;  %v3687_v42 = vld [vmem:[#allocation2] sm:$0xff] }
 0x94a   : > { %1368 = vmatpush.bf16.msrb.mxu0 %v1320_v41  ;;  %1734 = vrot.lane.b32.xlu0 %v3687_v42, %s4090_s20 }
 0x94b   : > { %1746 = vrot.lane.b32.xlu2 %v3687_v42, %s4092_s16  ;;  %1722 = vrot.lane.b32.xlu1 %v3687_v42, %s4091_s14 }
 0x94e   : > { %1369 = vmatpush.bf16.msrb.mxu0 %v1318_v43 }
 0x950   : > { %v1306_v46 = vpop.permute.xlu0 %1305 }
 0x952   : > { %1370 = vmatpush.bf16.msrb.mxu0 %v1314_v53  ;;  %1752 = vrot.lane.b32.xlu0 %v3687_v42, %s4087_s11 }
 0x953   : > { %1740 = vrot.lane.b32.xlu2 %v3687_v42, %s4089_s19  ;;  %1716 = vrot.lane.b32.xlu1 %v3687_v42, %s4094_s24 }
 0x956   : > { %1371 = vmatpush.bf16.msrb.mxu0 %v1312_v58 }
 0x95a   : > { %1372 = vmatpush.bf16.msrb.mxu0 %v1308_v44  ;;  %1775 = vperm.xlu0 %3069, %v2837_v45  }
 0x95b   : > { %1748 = vrot.lane.b32.xlu2 %v3682_v39, %s4092_s16  ;;  %1724 = vrot.lane.b32.xlu1 %v3682_v39, %s4091_s14 }
 0x95e   : > { %1373 = vmatpush.bf16.msrb.mxu0 %v1306_v46 }
 0x961   : > { %1374 = vmatmul.bf16.vlgmr.msrb.gmra.mxu0 %v1346_v56 }
 0x963   : > { %1742 = vrot.lane.b32.xlu2 %v3682_v39, %s4089_s19  ;;  %1718 = vrot.lane.b32.xlu1 %v3682_v39, %s4094_s24 }
 0x96b   : > { %1710 = vrot.lane.b32.xlu2 %v3687_v42, %s4088_s21  ;;  %1736 = vrot.lane.b32.xlu1 %v3682_v39, %s4090_s20 }
 0x973   : > { %1730 = vrot.lane.b32.xlu2 %v3682_v39, %s4086_s23  ;;  %1754 = vrot.lane.b32.xlu1 %v3682_v39, %s4087_s11 }
 0x97b   : > { %1770 = vperm.xlu2 %3068, %v2836_v47   ;;  %1728 = vrot.lane.b32.xlu1 %v3687_v42, %s4086_s23 }
 0x983   : > { %1765 = vperm.xlu2 %3068, %v2835_v61   ;;  %1760 = vperm.xlu1 %3070, %v2834_v48  }
 0x9a5   : > { %v1747_v50 = vpop.permute.xlu2 %1746 }
 0x9ad   : > { %v1741_v52 = vpop.permute.xlu2 %1740 }
 0x9b3   : > { %v1713_v0 = vpop.permute.xlu0 %1712 }
 0x9b5   : > { %v1749_v55 = vpop.permute.xlu2 %1748 }
 0x9b6   : > { %1833 = vmatpush.bf16.msra.mxu1 %v1749_v55 }
 0x9ba   : > { %1834 = vmatpush.bf16.msra.mxu1 %v1747_v50 }
 0x9bc   : > { %v1735_v13 = vpop.permute.xlu0 %1734 }
 0x9bd   : > { %v1743_v57 = vpop.permute.xlu2 %1742  ;;  %v1723_v59 = vpop.permute.xlu1 %1722 }
 0x9be   : > { %1835 = vmatpush.bf16.msra.mxu1 %v1743_v57 }
 0x9c2   : > { %1836 = vmatpush.bf16.msra.mxu1 %v1741_v52 }
 0x9c4   : > { %v1753_v11 = vpop.permute.xlu0 %1752 }
 0x9c5   : > { %v1717_v60 = vpop.permute.xlu1 %1716  ;;  %v1711_v1 = vpop.permute.xlu2 %1710 }
 0x9cc   : > { %v1776_v52 = vpop.permute.xlu0 %1775 }
 0x9cd   : > { %v1725_v62 = vpop.permute.xlu1 %1724  ;;  %v1731_v4 = vpop.permute.xlu2 %1730 }
 0x9ce   : > { %1814 = vmatpush.bf16.msra.mxu0 %v1725_v62 }
 0x9d2   : > { %1815 = vmatpush.bf16.msra.mxu0 %v1723_v59 }
 0x9d5   : > { %v1719_v63 = vpop.permute.xlu1 %1718  ;;  %v1771_v37 = vpop.permute.xlu2 %1770 }
 0x9d6   : > { %1816 = vmatpush.bf16.msra.mxu0 %v1719_v63 }
 0x9da   : > { %1817 = vmatpush.bf16.msra.mxu0 %v1717_v60 }
 0x9dd   : > { %v1737_v3 = vpop.permute.xlu1 %1736 }
 0x9de   : > { %1818 = vmatpush.bf16.msra.mxu0 %v1713_v0  ;;  %1837 = vmatpush.bf16.msra.mxu1 %v1737_v3  ;;  %v3772_v27 = vpop.f32.mrf.mxu0 }
 0x9e2   : > { %1819 = vmatpush.bf16.msra.mxu0 %v1711_v1  ;;  %1838 = vmatpush.bf16.msra.mxu1 %v1735_v13 }
 0x9e5   : > { %v1755_v5 = vpop.permute.xlu1 %1754 }
 0x9e6   : > { %1820 = vmatpush.bf16.msra.mxu0 %v3682_v39  ;;  %1839 = vmatpush.bf16.msra.mxu1 %v1731_v4  ;;  %v1377_v28 = vpop.f32.mrf.mxu0 }
 0x9e7   : > { %1858 = vmatpush.bf16.msra.mxu3 %v1755_v5 }
 0x9ea   : > { %1821 = vmatpush.bf16.msra.mxu0 %v3687_v42  ;;  %v1766_v42 = vpop.permute.xlu2 %1765 }
 0x9eb   : > { %1859 = vmatpush.bf16.msra.mxu3 %v1753_v11 }
 0x9ed   : > { %v1729_v16 = vpop.permute.xlu1 %1728  ;;  %1822 = vmatmul.bf16.vlgmr.msra.gmra.mxu0 %v2849_v10 }
 0x9ee   : > { %2870 = vmatmul.msk.bf16.vlgmr.msra.gmra.mxu3 %vm500_vm2, %v2857_v12  ;;  %1840 = vmatpush.bf16.msra.mxu1 %v1729_v16  ;;  %v2880_v16 = vld [vmem:[%s4061_s3 + $0xc0] sm:$0xff] }
 0x9f1   : > { %1841 = vmatmul.bf16.vlgmr.msra.gmra.mxu1 %v2853_v17  ;;  %v2881_v17 = vld [vmem:[%s4061_s3 + $0xc8] sm:$0xff] }
 0x9f5   : > { %v1761_v30 = vpop.permute.xlu1 %1760 }
 0x9fd   : > { %1827 = vmatmul.bf16.gmra.mxu0 %v2861_v22 }
 0x9fe   : > { %2871 = vmatmul.msk.bf16.gmra.mxu3 %vm500_vm2, %v2869_v23 }
 0xa01   : > { %1846 = vmatmul.bf16.gmra.mxu1 %v2865_v26 }
 0xa6a   : > { %v1823_v29 = vpop.f32.mrf.mxu0 }
 0xa6b   : > { %v1824_v31 = vadd.f32 %v1823_v29, %v1761_v30 }
 0xa6e   : > { %v1842_v32 = vpop.f32.mrf.mxu1 }
 0xa6f   : > { %v1843_v33 = vadd.f32 %v1842_v32, %v1824_v31  ;;  %v2894_v31 = vld [vmem:[%s4060_s2 + $0x120] sm:$0xf]  ;;  %v3027_v32 = vld [vmem:[%s4060_s2 + $0x128] sm:$0xf0] }
 0xa71   : > { %v1861_v34 = vpop.f32.mrf.mxu3 }
 0xa72   : > { %v1862_v35 = vadd.f32 %v1861_v34, %v1843_v33  ;;  %v1825_v36 = vpop.f32.mrf.mxu0  ;;  %v2895_v33 = vor.u32 %v3027_v32, %v2894_v31 }
 0xa73   : > { %v1826_v44 = vadd.f32 %v1825_v36, %v1766_v42  ;;  %v3026_v36 = vld [vmem:[%s4060_s2 + $0x124] sm:$0xf]  ;;  %v2906_v42 = vld [vmem:[%s4060_s2 + $0x138] sm:$0xf] }
 0xa74   : > { %v1871_v38 = vmax.f32 %v1862_v35, 0.0 }
 0xa76   : > { %v1875_v53 = vmul.f32 %v3653_v2, %v1871_v38  ;;  %v1844_v39 = vpop.f32.mrf.mxu1  ;;  %v2902_v38 = vld [vmem:[%s4060_s2 + $0x128] sm:$0xf] }
 0xa77   : > { %v1845_v47 = vadd.f32 %v1844_v39, %v1826_v44 }
 0xa78   : > { %v1879_v40 = vpack.c.bf16 %v1875_v53, %v1875_v53  ;;  %v3028_v53 = vld [vmem:[%s4060_s2 + $0x130] sm:$0xf0] }
 0xa79   : > { %v1863_v58 = vpop.f32.mrf.mxu3 }
 0xa7a   : > { %1887 = vrot.lane.b32.xlu2 %v1879_v40, %s4093_s13  ;;  %v1828_v41 = vpop.f32.mrf.mxu0  ;;  %v1864_v54 = vadd.f32 %v1863_v58, %v1845_v47  ;;  %v2914_v47 = vld [vmem:[%s4060_s2 + $0x140] sm:$0xf] }
 0xa7b   : > { %v1829_v43 = vadd.f32 %v1828_v41, %v1771_v37  ;;  %v2896_v37 = vld [vmem:[%s4060_s2 + $0x12c] sm:$0xf0]  ;;  %v2903_v41 = vor.u32 %v3028_v53, %v2902_v38 }
 0xa7c   : > { %v1872_v62 = vmax.f32 %v1864_v54, 0.0  ;;  %v2899_v58 = vor.u32 %v3026_v36, %v2896_v37  ;;  %v2928_v53 = vld [vmem:[%s4061_s3 + $0xf0] sm:$0xff] }
 0xa7e   : > { %v1847_v45 = vpop.f32.mrf.mxu1  ;;  %v1876_v3 = vmul.f32 %v3653_v2, %v1872_v62 }
 0xa7f   : > { %v1848_v46 = vadd.f32 %v1847_v45, %v1829_v43  ;;  %v3030_v43 = vld [vmem:[%s4060_s2 + $0x140] sm:$0xf0]  ;;  %v3029_v45 = vld [vmem:[%s4060_s2 + $0x13c] sm:$0xf] }
 0xa80   : > { %v1880_v5 = vpack.c.bf16 %v1876_v3, %v1876_v3  ;;  %v2907_v44 = vor.u32 %v3030_v43, %v2906_v42 }
 0xa81   : > { %v1866_v61 = vpop.f32.mrf.mxu3 }
 0xa82   : > { %v1867_v48 = vadd.f32 %v1866_v61, %v1848_v46  ;;  %v1830_v50 = vpop.f32.mrf.mxu0  ;;  %v2908_v46 = vld [vmem:[%s4060_s2 + $0x144] sm:$0xf0]  ;;  %v3031_v61 = vld [vmem:[%s4060_s2 + $0x148] sm:$0xf0] }
 0xa83   : > { %v1831_v56 = vadd.f32 %v1830_v50, %v1776_v52  ;;  %v2915_v50 = vor.u32 %v3031_v61, %v2914_v47 }
 0xa84   : > { %v1873_v55 = vmax.f32 %v1867_v48, 0.0  ;;  %v2911_v48 = vor.u32 %v3029_v45, %v2908_v46 }
 0xa86   : > { %v1877_v57 = vmul.f32 %v3653_v2, %v1873_v55  ;;  %v1849_v59 = vpop.f32.mrf.mxu1 }
 0xa87   : > { %v1850_v60 = vadd.f32 %v1849_v59, %v1831_v56 }
 0xa88   : > { %v1881_v63 = vpack.c.bf16 %v1877_v57, %v1877_v57 }
 0xa89   : > { %v1868_v0 = vpop.f32.mrf.mxu3 }
 0xa8a   : > { %v1869_v1 = vadd.f32 %v1868_v0, %v1850_v60  ;;  %1891 = vrot.lane.b32.xlu0 %v1881_v63, %s4093_s13 }
 0xa8c   : > { %v1874_v13 = vmax.f32 %v1869_v1, 0.0 }
 0xa8e   : > { %v1878_v4 = vmul.f32 %v3653_v2, %v1874_v13 }
 0xa90   : > { %v1882_v6 = vpack.c.bf16 %v1878_v4, %v1878_v4 }
 0xa92   : > { %1889 = vrot.lane.b32.xlu0 %v1880_v5, %s4093_s13  ;;  %1893 = vrot.lane.b32.xlu1 %v1882_v6, %s4093_s13 }
 0xad4   : > { %v1888_v7 = vpop.permute.xlu2 %1887 }
 0xad5   : > { %1899 = vst.msk [vmem:[#allocation2] sm:$0xf] %vm369_vm1, %v1888_v7 }
 0xafc   : > { %v1892_v8 = vpop.permute.xlu0 %1891 }
 0xafd   : > { %1901 = vst.msk [vmem:[#allocation2 + $0x8] sm:$0xf] %vm369_vm1, %v1892_v8 }
 0xb04   : > { %v1894_v9 = vpop.permute.xlu1 %1893  ;;  %v1890_v10 = vpop.permute.xlu0 %1889 }
 0xb05   : > { %1902 = vst.msk [vmem:[#allocation2 + $0xc] sm:$0xf] %vm369_vm1, %v1894_v9 }
 0xb06   : > { %1900 = vst.msk [vmem:[#allocation2 + $0x4] sm:$0xf] %vm369_vm1, %v1890_v10 }
 0xb0c   : > { %v3033_v11 = vld [vmem:[#allocation2 + $0x8] sm:$0xff] }
 0xb0d   : > { %v3032_v12 = vld [vmem:[#allocation2] sm:$0xff]  ;;  %1941 = vrot.lane.b32.xlu0 %v3033_v11, %s4094_s24  ;;  %1947 = vrot.lane.b32.xlu1 %v3033_v11, %s4091_s14 }
 0xb0e   : > { %1945 = vrot.lane.b32.xlu2 %v3032_v12, %s4091_s14 }
 0xb15   : > { %1971 = vrot.lane.b32.xlu1 %v3033_v11, %s4092_s16  ;;  %1969 = vrot.lane.b32.xlu0 %v3032_v12, %s4092_s16 }
 0xb16   : > { %1939 = vrot.lane.b32.xlu2 %v3032_v12, %s4094_s24 }
 0xb1d   : > { %1935 = vrot.lane.b32.xlu1 %v3033_v11, %s4088_s21  ;;  %1933 = vrot.lane.b32.xlu0 %v3032_v12, %s4088_s21 }
 0xb1e   : > { %1965 = vrot.lane.b32.xlu2 %v3033_v11, %s4089_s19 }
 0xb25   : > { %1963 = vrot.lane.b32.xlu1 %v3032_v12, %s4089_s19  ;;  %1957 = vrot.lane.b32.xlu0 %v3032_v12, %s4090_s20 }
 0xb26   : > { %1959 = vrot.lane.b32.xlu2 %v3033_v11, %s4090_s20 }
 0xb2d   : > { %1953 = vrot.lane.b32.xlu1 %v3033_v11, %s4086_s23  ;;  %1951 = vrot.lane.b32.xlu0 %v3032_v12, %s4086_s23 }
 0xb2e   : > { %1977 = vrot.lane.b32.xlu2 %v3033_v11, %s4087_s11 }
 0xb35   : > { %1975 = vrot.lane.b32.xlu1 %v3032_v12, %s4087_s11  ;;  %1998 = vperm.xlu0 %3069, %v2883_v14  }
 0xb36   : > { %1993 = vperm.xlu2 %3068, %v2882_v15  }
 0xb3d   : > { %1983 = vperm.xlu1 %3070, %v2880_v16  }
 0xb3e   : > { %1988 = vperm.xlu2 %3068, %v2881_v17  }
 0xb68   : > { %v1946_v18 = vpop.permute.xlu2 %1945 }
 0xb70   : > { %v1940_v19 = vpop.permute.xlu2 %1939 }
 0xb78   : > { %v1966_v20 = vpop.permute.xlu2 %1965 }
 0xb7f   : > { %v1948_v21 = vpop.permute.xlu1 %1947  ;;  %v1942_v22 = vpop.permute.xlu0 %1941 }
 0xb80   : > { %v1960_v23 = vpop.permute.xlu2 %1959  ;;  %2037 = vmatpush.bf16.msra.mxu2 %v1948_v21 }
 0xb84   : > { %2038 = vmatpush.bf16.msra.mxu2 %v1946_v18 }
 0xb87   : > { %v1972_v24 = vpop.permute.xlu1 %1971  ;;  %v1970_v26 = vpop.permute.xlu0 %1969 }
 0xb88   : > { %v1978_v25 = vpop.permute.xlu2 %1977  ;;  %2039 = vmatpush.bf16.msra.mxu2 %v1942_v22  ;;  %2056 = vmatpush.bf16.msrb.mxu0 %v1972_v24 }
 0xb89   : > { %2081 = vmatpush.bf16.msrb.mxu1 %v1978_v25 }
 0xb8c   : > { %2040 = vmatpush.bf16.msra.mxu2 %v1940_v19  ;;  %2057 = vmatpush.bf16.msrb.mxu0 %v1970_v26 }
 0xb8f   : > { %v1936_v28 = vpop.permute.xlu1 %1935  ;;  %v1934_v29 = vpop.permute.xlu0 %1933 }
 0xb90   : > { %2041 = vmatpush.bf16.msra.mxu2 %v1936_v28  ;;  %2058 = vmatpush.bf16.msrb.mxu0 %v1966_v20  ;;  %v1994_v63 = vpop.permute.xlu2 %1993 }
 0xb94   : > { %2042 = vmatpush.bf16.msra.mxu2 %v1934_v29 }
 0xb97   : > { %v1964_v30 = vpop.permute.xlu1 %1963  ;;  %v1958_v34 = vpop.permute.xlu0 %1957 }
 0xb98   : > { %2043 = vmatpush.bf16.msra.mxu2 %v3033_v11  ;;  %2059 = vmatpush.bf16.msrb.mxu0 %v1964_v30  ;;  %v1989_v6 = vpop.permute.xlu2 %1988 }
 0xb9c   : > { %2044 = vmatpush.bf16.msra.mxu2 %v3032_v12  ;;  %2060 = vmatpush.bf16.msrb.mxu0 %v1960_v23 }
 0xb9f   : > { %v1954_v35 = vpop.permute.xlu1 %1953  ;;  %2045 = vmatmul.bf16.vlgmr.msra.gmra.mxu2 %v2895_v33  ;;  %v1952_v39 = vpop.permute.xlu0 %1951 }
 0xba0   : > { %2061 = vmatpush.bf16.msrb.mxu0 %v1958_v34 }
 0xba4   : > { %2062 = vmatpush.bf16.msrb.mxu0 %v1954_v35 }
 0xba7   : > { %v1976_v40 = vpop.permute.xlu1 %1975  ;;  %v1999_v18 = vpop.permute.xlu0 %1998 }
 0xba8   : > { %2063 = vmatpush.bf16.msrb.mxu0 %v1952_v39  ;;  %2082 = vmatpush.bf16.msrb.mxu1 %v1976_v40  ;;  %v2929_v39 = vld [vmem:[%s4061_s3 + $0xf8] sm:$0xff]  ;;  %v2927_v40 = vld [vmem:[%s4061_s3 + $0xe8] sm:$0xff] }
 0xbab   : > { %2064 = vmatmul.bf16.vlgmr.msrb.gmra.mxu0 %v2899_v58  ;;  %2916 = vmatmul.msk.bf16.vlgmr.msrb.gmra.mxu1 %vm500_vm2, %v2903_v41  ;;  %v2926_v58 = vld [vmem:[%s4061_s3 + $0xe0] sm:$0xff] }
 0xbaf   : > { %2050 = vmatmul.bf16.gmra.mxu2 %v2907_v44  ;;  %v1984_v54 = vpop.permute.xlu1 %1983 }
 0xbbb   : > { %2069 = vmatmul.bf16.gmra.mxu0 %v2911_v48  ;;  %2917 = vmatmul.msk.bf16.gmra.mxu1 %vm500_vm2, %v2915_v50 }
 0xc22   : > { %v2046_v52 = vpop.f32.mrf.mxu2 }
 0xc23   : > { %v2047_v55 = vadd.f32 %v2046_v52, %v1984_v54 }
 0xc28   : > { %v2065_v56 = vpop.f32.mrf.mxu0  ;;  %v2084_v57 = vpop.f32.mrf.mxu1 }
 0xc29   : > { %v2066_v59 = vadd.f32 %v2065_v56, %v2047_v55  ;;  %v2940_v55 = vld [vmem:[%s4060_s2 + $0x150] sm:$0xf]  ;;  %v3035_v56 = vld [vmem:[%s4060_s2 + $0x158] sm:$0xf0] }
 0xc2a   : > { %v2048_v60 = vpop.f32.mrf.mxu2 }
 0xc2b   : > { %v2085_v62 = vadd.f32 %v2084_v57, %v2066_v59  ;;  %v2049_v7 = vadd.f32 %v2048_v60, %v1989_v6  ;;  %v2941_v59 = vor.u32 %v3035_v56, %v2940_v55  ;;  %v2952_v6 = vld [vmem:[%s4060_s2 + $0x168] sm:$0xf] }
 0xc2d   : > { %v2094_v0 = vmax.f32 %v2085_v62, 0.0  ;;  %v3034_v62 = vld [vmem:[%s4060_s2 + $0x154] sm:$0xf] }
 0xc2f   : > { %v2098_v1 = vmul.f32 %v3653_v2, %v2094_v0 }
 0xc30   : > { %v2067_v3 = vpop.f32.mrf.mxu0  ;;  %v2086_v13 = vpop.f32.mrf.mxu1 }
 0xc31   : > { %v2102_v4 = vpack.c.bf16 %v2098_v1, %v2098_v1  ;;  %v2068_v11 = vadd.f32 %v2067_v3, %v2049_v7  ;;  %v2948_v3 = vld [vmem:[%s4060_s2 + $0x158] sm:$0xf]  ;;  %v3038_v7 = vld [vmem:[%s4060_s2 + $0x170] sm:$0xf0] }
 0xc32   : > { %v2051_v5 = vpop.f32.mrf.mxu2 }
 0xc33   : > { %2110 = vrot.lane.b32.xlu2 %v2102_v4, %s4093_s13  ;;  %v2052_v8 = vadd.f32 %v2051_v5, %v1994_v63  ;;  %v2087_v16 = vadd.f32 %v2086_v13, %v2068_v11  ;;  %v2942_v63 = vld [vmem:[%s4060_s2 + $0x15c] sm:$0xf0]  ;;  %v3036_v13 = vld [vmem:[%s4060_s2 + $0x160] sm:$0xf0] }
 0xc34   : > { %v2945_v1 = vor.u32 %v3034_v62, %v2942_v63  ;;  %v2949_v5 = vor.u32 %v3036_v13, %v2948_v3 }
 0xc35   : > { %v2095_v22 = vmax.f32 %v2087_v16, 0.0 }
 0xc37   : > { %v2099_v28 = vmul.f32 %v3653_v2, %v2095_v22 }
 0xc38   : > { %v2070_v9 = vpop.f32.mrf.mxu0  ;;  %v2089_v10 = vpop.f32.mrf.mxu1 }
 0xc39   : > { %v2071_v12 = vadd.f32 %v2070_v9, %v2052_v8  ;;  %v2103_v31 = vpack.c.bf16 %v2099_v28, %v2099_v28  ;;  %v2953_v8 = vor.u32 %v3038_v7, %v2952_v6  ;;  %v3037_v9 = vld [vmem:[%s4060_s2 + $0x16c] sm:$0xf] }
 0xc3a   : > { %v2053_v15 = vpop.f32.mrf.mxu2 }
 0xc3b   : > { %v2090_v14 = vadd.f32 %v2089_v10, %v2071_v12  ;;  %v2054_v19 = vadd.f32 %v2053_v15, %v1999_v18  ;;  %v2954_v10 = vld [vmem:[%s4060_s2 + $0x174] sm:$0xf0]  ;;  %v2960_v12 = vld [vmem:[%s4060_s2 + $0x170] sm:$0xf] }
 0xc3c   : > { %v2957_v11 = vor.u32 %v3037_v9, %v2954_v10 }
 0xc3d   : > { %v2096_v17 = vmax.f32 %v2090_v14, 0.0  ;;  %v3039_v14 = vld [vmem:[%s4060_s2 + $0x178] sm:$0xf0] }
 0xc3e   : > { %v2961_v15 = vor.u32 %v3039_v14, %v2960_v12 }
 0xc3f   : > { %v2100_v20 = vmul.f32 %v3653_v2, %v2096_v17 }
 0xc40   : > { %v2072_v21 = vpop.f32.mrf.mxu0  ;;  %v2091_v25 = vpop.f32.mrf.mxu1 }
 0xc41   : > { %v2104_v23 = vpack.c.bf16 %v2100_v20, %v2100_v20  ;;  %v2073_v24 = vadd.f32 %v2072_v21, %v2054_v19 }
 0xc43   : > { %v2092_v26 = vadd.f32 %v2091_v25, %v2073_v24  ;;  %2114 = vrot.lane.b32.xlu0 %v2104_v23, %s4093_s13 }
 0xc45   : > { %v2097_v29 = vmax.f32 %v2092_v26, 0.0 }
 0xc47   : > { %v2101_v30 = vmul.f32 %v3653_v2, %v2097_v29 }
 0xc49   : > { %v2105_v32 = vpack.c.bf16 %v2101_v30, %v2101_v30 }
 0xc4b   : > { %2112 = vrot.lane.b32.xlu0 %v2103_v31, %s4093_s13  ;;  %2116 = vrot.lane.b32.xlu1 %v2105_v32, %s4093_s13 }
 0xc8d   : > { %v2111_v33 = vpop.permute.xlu2 %2110 }
 0xc8e   : > { %2122 = vst.msk [vmem:[#allocation2] sm:$0xf] %vm369_vm1, %v2111_v33 }
 0xcb5   : > { %v2115_v34 = vpop.permute.xlu0 %2114 }
 0xcb6   : > { %2124 = vst.msk [vmem:[#allocation2 + $0x8] sm:$0xf] %vm369_vm1, %v2115_v34 }
 0xcbd   : > { %v2117_v35 = vpop.permute.xlu1 %2116  ;;  %v2113_v36 = vpop.permute.xlu0 %2112 }
 0xcbe   : > { %2125 = vst.msk [vmem:[#allocation2 + $0xc] sm:$0xf] %vm369_vm1, %v2117_v35 }
 0xcbf   : > { %2123 = vst.msk [vmem:[#allocation2 + $0x4] sm:$0xf] %vm369_vm1, %v2113_v36 }
 0xcc5   : > { %v3041_v37 = vld [vmem:[#allocation2 + $0x8] sm:$0xff] }
 0xcc6   : > { %v3040_v38 = vld [vmem:[#allocation2] sm:$0xff]  ;;  %2194 = vrot.lane.b32.xlu2 %v3041_v37, %s4092_s16  ;;  %2170 = vrot.lane.b32.xlu1 %v3041_v37, %s4091_s14 }
 0xcc7   : > { %2168 = vrot.lane.b32.xlu0 %v3040_v38, %s4091_s14 }
 0xcce   : > { %2164 = vrot.lane.b32.xlu2 %v3041_v37, %s4094_s24  ;;  %2192 = vrot.lane.b32.xlu1 %v3040_v38, %s4092_s16 }
 0xccf   : > { %2188 = vrot.lane.b32.xlu0 %v3041_v37, %s4089_s19 }
 0xcd6   : > { %2186 = vrot.lane.b32.xlu2 %v3040_v38, %s4089_s19  ;;  %2162 = vrot.lane.b32.xlu1 %v3040_v38, %s4094_s24 }
 0xcd7   : > { %2158 = vrot.lane.b32.xlu0 %v3041_v37, %s4088_s21 }
 0xcde   : > { %2156 = vrot.lane.b32.xlu2 %v3040_v38, %s4088_s21  ;;  %2182 = vrot.lane.b32.xlu1 %v3041_v37, %s4090_s20 }
 0xcdf   : > { %2180 = vrot.lane.b32.xlu0 %v3040_v38, %s4090_s20 }
 0xce6   : > { %2174 = vrot.lane.b32.xlu2 %v3040_v38, %s4086_s23  ;;  %2176 = vrot.lane.b32.xlu1 %v3041_v37, %s4086_s23 }
 0xce7   : > { %2200 = vrot.lane.b32.xlu0 %v3041_v37, %s4087_s11 }
 0xcee   : > { %2216 = vperm.xlu2 %3068, %v2928_v53   ;;  %2198 = vrot.lane.b32.xlu1 %v3040_v38, %s4087_s11 }
 0xcef   : > { %2221 = vperm.xlu0 %3069, %v2929_v39  }
 0xcf6   : > { %2211 = vperm.xlu2 %3068, %v2927_v40   ;;  %2206 = vperm.xlu1 %3070, %v2926_v58  }
 0xd20   : > { %v2195_v41 = vpop.permute.xlu2 %2194 }
 0xd21   : > { %2279 = vmatpush.bf16.msrb.mxu2 %v2195_v41 }
 0xd28   : > { %v2165_v44 = vpop.permute.xlu2 %2164 }
 0xd30   : > { %v2187_v47 = vpop.permute.xlu2 %2186 }
 0xd38   : > { %v2171_v42 = vpop.permute.xlu1 %2170  ;;  %v2157_v50 = vpop.permute.xlu2 %2156 }
 0xd39   : > { %v2169_v43 = vpop.permute.xlu0 %2168  ;;  %2260 = vmatpush.bf16.msrb.mxu3 %v2171_v42 }
 0xd3d   : > { %2261 = vmatpush.bf16.msrb.mxu3 %v2169_v43 }
 0xd40   : > { %v2193_v45 = vpop.permute.xlu1 %2192  ;;  %v2175_v0 = vpop.permute.xlu2 %2174 }
 0xd41   : > { %v2189_v46 = vpop.permute.xlu0 %2188  ;;  %2262 = vmatpush.bf16.msrb.mxu3 %v2165_v44  ;;  %2280 = vmatpush.bf16.msrb.mxu2 %v2193_v45 }
 0xd45   : > { %2281 = vmatpush.bf16.msrb.mxu2 %v2189_v46 }
 0xd48   : > { %v2163_v61 = vpop.permute.xlu1 %2162  ;;  %v2217_v23 = vpop.permute.xlu2 %2216 }
 0xd49   : > { %v2159_v48 = vpop.permute.xlu0 %2158  ;;  %2263 = vmatpush.bf16.msrb.mxu3 %v2163_v61  ;;  %2282 = vmatpush.bf16.msrb.mxu2 %v2187_v47 }
 0xd4d   : > { %2264 = vmatpush.bf16.msrb.mxu3 %v2159_v48 }
 0xd50   : > { %v2183_v52 = vpop.permute.xlu1 %2182  ;;  %v2212_v32 = vpop.permute.xlu2 %2211 }
 0xd51   : > { %v2181_v54 = vpop.permute.xlu0 %2180  ;;  %2265 = vmatpush.bf16.msrb.mxu3 %v2157_v50  ;;  %2283 = vmatpush.bf16.msrb.mxu2 %v2183_v52 }
 0xd55   : > { %2266 = vmatpush.bf16.msrb.mxu3 %v3041_v37  ;;  %2284 = vmatpush.bf16.msrb.mxu2 %v2181_v54 }
 0xd58   : > { %v2177_v57 = vpop.permute.xlu1 %2176 }
 0xd59   : > { %v2201_v60 = vpop.permute.xlu0 %2200  ;;  %2267 = vmatpush.bf16.msrb.mxu3 %v3040_v38  ;;  %2285 = vmatpush.bf16.msrb.mxu2 %v2177_v57 }
 0xd5a   : > { %2304 = vmatpush.bf16.msra.mxu0 %v2201_v60 }
 0xd5c   : > { %2268 = vmatmul.bf16.vlgmr.msrb.gmra.mxu3 %v2941_v59 }
 0xd5d   : > { %2286 = vmatpush.bf16.msrb.mxu2 %v2175_v0  ;;  %v1270_v0 = vld [vmem:[%s4063_s5] sm:$0xff] }
 0xd60   : > { %v2199_v4 = vpop.permute.xlu1 %2198  ;;  %2287 = vmatmul.bf16.vlgmr.msrb.gmra.mxu2 %v2945_v1  ;;  %v2351_v1 = vld [vmem:[%s4065_s7] sm:$0xff] }
 0xd61   : > { %2305 = vmatpush.bf16.msra.mxu0 %v2199_v4  ;;  %v2222_v41 = vpop.permute.xlu0 %2221 }
 0xd64   : > { %2962 = vmatmul.msk.bf16.vlgmr.msra.gmra.mxu0 %vm500_vm2, %v2949_v5 }
 0xd68   : > { %v2207_v17 = vpop.permute.xlu1 %2206 }
 0xd6c   : > { %2273 = vmatmul.bf16.gmra.mxu3 %v2953_v8 }
 0xd70   : > { %2292 = vmatmul.bf16.gmra.mxu2 %v2957_v11 }
 0xd74   : > { %2963 = vmatmul.msk.bf16.gmra.mxu0 %vm500_vm2, %v2961_v15 }
 0xddf   : > { %v2269_v16 = vpop.f32.mrf.mxu3 }
 0xde0   : > { %v2270_v19 = vadd.f32 %v2269_v16, %v2207_v17 }
 0xde1   : > { %v2307_v18 = vpop.f32.mrf.mxu0 }
 0xde3   : > { %v2288_v20 = vpop.f32.mrf.mxu2 }
 0xde4   : > { %v2289_v21 = vadd.f32 %v2288_v20, %v2270_v19 }
 0xde6   : > { %v2308_v22 = vadd.f32 %v2307_v18, %v2289_v21  ;;  %v2350_v21 = vld [vmem:[%s4064_s6 + $0x8] sm:$0xf] }
 0xde7   : > { %v2271_v24 = vpop.f32.mrf.mxu3 }
 0xde8   : > { %v2317_v25 = vmax.f32 %v2308_v22, 0.0  ;;  %v2272_v33 = vadd.f32 %v2271_v24, %v2212_v32 }
 0xde9   : > { %v2309_v26 = vpop.f32.mrf.mxu0 }
 0xdea   : > { %v2321_v28 = vmul.f32 %v3653_v2, %v2317_v25  ;;  %v2425_v25 = vunpack.c.l.b16 %v2350_v21 }
 0xdeb   : > { %v2290_v29 = vpop.f32.mrf.mxu2 }
 0xdec   : > { %v2325_v30 = vpack.c.bf16 %v2321_v28, %v2321_v28  ;;  %v2291_v37 = vadd.f32 %v2290_v29, %v2272_v33  ;;  %v2428_v28 = vpack.c.b16 %v2425_v25, %v2425_v25 }
 0xdee   : > { %2333 = vrot.lane.b32.xlu2 %v2325_v30, %s4093_s13  ;;  %v2310_v40 = vadd.f32 %v2309_v26, %v2291_v37 }
 0xdef   : > { %v2274_v31 = vpop.f32.mrf.mxu3 }
 0xdf0   : > { %v2275_v34 = vadd.f32 %v2274_v31, %v2217_v23  ;;  %v2318_v45 = vmax.f32 %v2310_v40, 0.0 }
 0xdf1   : > { %v2312_v36 = vpop.f32.mrf.mxu0 }
 0xdf2   : > { %v2322_v50 = vmul.f32 %v3653_v2, %v2318_v45 }
 0xdf3   : > { %v2293_v35 = vpop.f32.mrf.mxu2 }
 0xdf4   : > { %v2294_v38 = vadd.f32 %v2293_v35, %v2275_v34  ;;  %v2326_v55 = vpack.c.bf16 %v2322_v50, %v2322_v50 }
 0xdf6   : > { %v2313_v53 = vadd.f32 %v2312_v36, %v2294_v38 }
 0xdf7   : > { %v2276_v39 = vpop.f32.mrf.mxu3 }
 0xdf8   : > { %v2319_v58 = vmax.f32 %v2313_v53, 0.0  ;;  %v2277_v43 = vadd.f32 %v2276_v39, %v2222_v41 }
 0xdf9   : > { %v2314_v61 = vpop.f32.mrf.mxu0 }
 0xdfa   : > { %v2323_v42 = vmul.f32 %v3653_v2, %v2319_v58 }
 0xdfb   : > { %v2295_v44 = vpop.f32.mrf.mxu2 }
 0xdfc   : > { %v2327_v46 = vpack.c.bf16 %v2323_v42, %v2323_v42  ;;  %v2296_v47 = vadd.f32 %v2295_v44, %v2277_v43 }
 0xdfe   : > { %v2315_v48 = vadd.f32 %v2314_v61, %v2296_v47  ;;  %2337 = vrot.lane.b32.xlu0 %v2327_v46, %s4093_s13 }
 0xe00   : > { %v2320_v52 = vmax.f32 %v2315_v48, 0.0 }
 0xe02   : > { %v2324_v54 = vmul.f32 %v3653_v2, %v2320_v52 }
 0xe04   : > { %v2328_v56 = vpack.c.bf16 %v2324_v54, %v2324_v54 }
 0xe06   : > { %2335 = vrot.lane.b32.xlu0 %v2326_v55, %s4093_s13  ;;  %2339 = vrot.lane.b32.xlu1 %v2328_v56, %s4093_s13  ;;  %s341_s13 = scalar_lea.vmem %s4067_s9, %s2597_s22 }
 0xe48   : > { %v2334_v57 = vpop.permute.xlu2 %2333 }
 0xe49   : > { %2345 = vst.msk [vmem:[#allocation2] sm:$0xf] %vm369_vm1, %v2334_v57 }
 0xe70   : > { %v2338_v59 = vpop.permute.xlu0 %2337 }
 0xe71   : > { %2347 = vst.msk [vmem:[#allocation2 + $0x8] sm:$0xf] %vm369_vm1, %v2338_v59 }
 0xe78   : > { %v2340_v60 = vpop.permute.xlu1 %2339  ;;  %v2336_v62 = vpop.permute.xlu0 %2335 }
 0xe79   : > { %2348 = vst.msk [vmem:[#allocation2 + $0xc] sm:$0xf] %vm369_vm1, %v2340_v60 }
 0xe7a   : > { %2346 = vst.msk [vmem:[#allocation2 + $0x4] sm:$0xf] %vm369_vm1, %v2336_v62 }
 0xe80   : > { %v3942_v63 = vld [vmem:[#allocation2 + $0x8] sm:$0xff] }
 0xe81   : > { %v3944_v2 = vld [vmem:[#allocation2] sm:$0xff]  ;;  %2382 = vrot.lane.b32.xlu2 %v3942_v63, %s4091_s14 }
 0xe82   : > { %2380 = vrot.lane.b32.xlu1 %v3944_v2, %s4091_s14  ;;  %2404 = vrot.lane.b32.xlu0 %v3944_v2, %s4092_s16 }
 0xe89   : > { %2400 = vrot.lane.b32.xlu2 %v3942_v63, %s4089_s19 }
 0xe8a   : > { %2406 = vrot.lane.b32.xlu1 %v3942_v63, %s4092_s16  ;;  %2376 = vrot.lane.b32.xlu0 %v3942_v63, %s4094_s24 }
 0xe91   : > { %2374 = vrot.lane.b32.xlu2 %v3944_v2, %s4094_s24 }
 0xe92   : > { %2398 = vrot.lane.b32.xlu1 %v3944_v2, %s4089_s19  ;;  %2394 = vrot.lane.b32.xlu0 %v3942_v63, %s4090_s20  ;;  %s3096_s19 = smov 103  }
 0xe99   : > { %2392 = vrot.lane.b32.xlu2 %v3944_v2, %s4090_s20 }
 0xe9a   : > { %2370 = vrot.lane.b32.xlu1 %v3942_v63, %s4088_s21  ;;  %2368 = vrot.lane.b32.xlu0 %v3944_v2, %s4088_s21  ;;  %s3092_s21 = smov 115  }
 0xea1   : > { %2412 = vrot.lane.b32.xlu2 %v3942_v63, %s4087_s11 }
 0xea2   : > { %2388 = vrot.lane.b32.xlu1 %v3942_v63, %s4086_s23  ;;  %2386 = vrot.lane.b32.xlu0 %v3944_v2, %s4086_s23 }
 0xea9   : > { %1337 = vperm.xlu2 %3068, %v1270_v0  }
 0xeaa   : > { %2410 = vrot.lane.b32.xlu1 %v3944_v2, %s4087_s11  ;;  %2418 = vperm.xlu0 %3069, %v2351_v1   ;;  %s3091_s11 = smov 113  }
 0xedb   : > { %v2383_v3 = vpop.permute.xlu2 %2382 }
 0xedc   : > { %2434 = vmatpush.bf16.msra.mxu1 %v2383_v3 }
 0xee3   : > { %v2401_v13 = vpop.permute.xlu2 %2400 }
 0xeeb   : > { %v2375_v4 = vpop.permute.xlu2 %2374 }
 0xef3   : > { %v2393_v5 = vpop.permute.xlu2 %2392 }
 0xef4   : > { %v2381_v6 = vpop.permute.xlu1 %2380  ;;  %v2405_v7 = vpop.permute.xlu0 %2404 }
 0xef5   : > { %2435 = vmatpush.bf16.msra.mxu1 %v2381_v6 }
 0xefb   : > { %v2413_v8 = vpop.permute.xlu2 %2412 }
 0xefc   : > { %v2407_v9 = vpop.permute.xlu1 %2406  ;;  %v2377_v10 = vpop.permute.xlu0 %2376  ;;  %2466 = vmatpush.bf16.msra.mxu2 %v2413_v8 }
 0xefd   : > { %2436 = vmatpush.bf16.msra.mxu1 %v2377_v10  ;;  %2447 = vmatpush.bf16.msra.mxu3 %v2407_v9 }
 0xf01   : > { %2437 = vmatpush.bf16.msra.mxu1 %v2375_v4  ;;  %2448 = vmatpush.bf16.msra.mxu3 %v2405_v7 }
 0xf03   : > { %v1338_v11 = vpop.permute.xlu2 %1337 }
 0xf04   : > { %v1363_v12 = vadd.f32 %v3646_v49, %v1338_v11  ;;  %v2399_v14 = vpop.permute.xlu1 %2398  ;;  %v2395_v15 = vpop.permute.xlu0 %2394 }
 0xf05   : > { %2449 = vmatpush.bf16.msra.mxu3 %v2401_v13 }
 0xf06   : > { %v1376_v16 = vadd.f32 %v3772_v27, %v1363_v12 }
 0xf08   : > { %v3987_v17 = vadd.f32 %v3648_v51, %v1376_v16  ;;  %v2349_v51 = vld [vmem:[%s4064_s6] sm:$0xff] }
 0xf09   : > { %2450 = vmatpush.bf16.msra.mxu3 %v2399_v14  ;;  %v2423_v19 = vunpack.c.l.b16 %v2349_v51  ;;  %v2424_v20 = vunpack.c.h.b16 %v2349_v51 }
 0xf0a   : > { %1403 = vrot.lane.b32.xlu2 %v3987_v17, %s3091_s11  ;;  %1393 = vrot.lane.b32.xlu1 %v3987_v17, %s4086_s23 }
 0xf0b   : > { %1398 = vrot.lane.b32.xlu0 %v3987_v17, %s3092_s21  ;;  %v2426_v23 = vpack.c.b16 %v2423_v19, %v2423_v19  ;;  %v2427_v24 = vpack.c.b16 %v2424_v20, %v2424_v20 }
 0xf0c   : > { %v2371_v49 = vpop.permute.xlu1 %2370  ;;  %v2369_v18 = vpop.permute.xlu0 %2368 }
 0xf0d   : > { %2438 = vmatpush.bf16.msra.mxu1 %v2371_v49  ;;  %2451 = vmatpush.bf16.msra.mxu3 %v2395_v15 }
 0xf11   : > { %2439 = vmatpush.bf16.msra.mxu1 %v2369_v18  ;;  %2452 = vmatpush.bf16.msra.mxu3 %v2393_v5 }
 0xf12   : > { %1418 = vrot.lane.b32.xlu2 %v3987_v17, %s4092_s16  ;;  %1408 = vrot.lane.b32.xlu1 %v3987_v17, %s3093_s12 }
 0xf13   : > { %1413 = vrot.lane.b32.xlu0 %v3987_v17, %s3094_s15 }
 0xf14   : > { %v2389_v27 = vpop.permute.xlu1 %2388  ;;  %v2387_v22 = vpop.permute.xlu0 %2386 }
 0xf15   : > { %2440 = vmatpush.bf16.msra.mxu1 %v3942_v63  ;;  %2453 = vmatpush.bf16.msra.mxu3 %v2389_v27 }
 0xf19   : > { %2441 = vmatpush.bf16.msra.mxu1 %v3944_v2  ;;  %2454 = vmatpush.bf16.msra.mxu3 %v2387_v22 }
 0xf1a   : > { %1423 = vrot.lane.b32.xlu1 %v3987_v17, %s3095_s26 }
 0xf1c   : > { %v2411_v26 = vpop.permute.xlu1 %2410  ;;  %2442 = vmatmul.bf16.vlgmr.msra.gmra.mxu1 %v2426_v23  ;;  %2455 = vmatmul.bf16.vlgmr.msra.gmra.mxu3 %v2427_v24  ;;  %v2419_v29 = vpop.permute.xlu0 %2418 }
 0xf1d   : > { %2467 = vmatpush.bf16.msra.mxu2 %v2411_v26 }
 0xf20   : > { %2972 = vmatmul.msk.bf16.vlgmr.msra.gmra.mxu2 %vm500_vm2, %v2428_v28 }
 0xf64   : > { %v1404_v30 = vpop.permute.xlu2 %1403 }
 0xf6c   : > { %v1419_v35 = vpop.permute.xlu2 %1418 }
 0xf7c   : > { %v1394_v31 = vpop.permute.xlu1 %1393 }
 0xf7d   : > { %1397 = vst.msk [vmem:[%s4018_s17] sm:$0xff] %vm1396_vm3, %v1394_v31  ;;  %v1399_v32 = vpop.permute.xlu0 %1398 }
 0xf7e   : > { %1402 = vst.msk [vmem:[%s4018_s17] sm:$0xff] %vm1401_vm4, %v1399_v32 }
 0xf7f   : > { %1407 = vst.msk [vmem:[%s4018_s17] sm:$0xff] %vm1406_vm5, %v1404_v30 }
 0xf84   : > { %v1409_v33 = vpop.permute.xlu1 %1408 }
 0xf85   : > { %1412 = vst.msk [vmem:[%s4018_s17] sm:$0xff] %vm1411_vm6, %v1409_v33  ;;  %v1414_v34 = vpop.permute.xlu0 %1413 }
 0xf86   : > { %1417 = vst.msk [vmem:[%s4018_s17] sm:$0xff] %vm1416_vm7, %v1414_v34 }
 0xf87   : > { %1422 = vst.msk [vmem:[%s4018_s17] sm:$0xff] %vm1421_vm8, %v1419_v35 }
 0xf8c   : > { %v1424_v36 = vpop.permute.xlu1 %1423 }
 0xf8d   : > { %1427 = vst.msk [vmem:[%s4018_s17] sm:$0xff] %vm1426_vm9, %v1424_v36 }
 0xf99   : > { %v2443_v37 = vpop.f32.mrf.mxu1 }
 0xf9a   : > { %v2444_v53 = vadd.f32 %v2443_v37, %v2419_v29 }
 0xf9f   : > { %v2456_v38 = vpop.f32.mrf.mxu3 }
 0xfa0   : > { %v2457_v40 = vadd.f32 %v2456_v38, %v2444_v53 }
 0xfa1   : > { %v2445_v39 = vpop.f32.mrf.mxu1 }
 0xfa3   : > { %v2469_v58 = vpop.f32.mrf.mxu2 }
 0xfa4   : > { %v2470_v41 = vadd.f32 %v2469_v58, %v2457_v40 }
 0xfa6   : > { %2482 = vrot.lane.b32.xlu0 %v2470_v41, %s3091_s11  ;;  %2478 = vrot.lane.b32.xlu1 %v2470_v41, %s3092_s21 }
 0xfa7   : > { %2474 = vrot.lane.b32.xlu2 %v2470_v41, %s4086_s23  ;;  %v2458_v42 = vpop.f32.mrf.mxu3 }
 0xfab   : > { %v2471_v43 = vpop.f32.mrf.mxu2 }
 0xfae   : > { %2494 = vrot.lane.b32.xlu0 %v2470_v41, %s4092_s16  ;;  %2490 = vrot.lane.b32.xlu1 %v2470_v41, %s3094_s15 }
 0xfaf   : > { %2486 = vrot.lane.b32.xlu2 %v2470_v41, %s3093_s12 }
 0xfb6   : > { %1428 = vrot.lane.b32.xlu0 %v3987_v17, %s3096_s19  ;;  %2502 = vrot.lane.b32.xlu1 %v2470_v41, %s3096_s19 }
 0xfb7   : > { %2498 = vrot.lane.b32.xlu2 %v2470_v41, %s3095_s26 }
0x1001   : > { %v2475_v44 = vpop.permute.xlu2 %2474 }
0x1002   : > { %2477 = vst.msk [vmem:[%s341_s13] sm:$0xff] %vm1396_vm3, %v2475_v44 }
0x1009   : > { %v2487_v45 = vpop.permute.xlu2 %2486 }
0x1011   : > { %v2499_v50 = vpop.permute.xlu2 %2498 }
0x1018   : > { %v2479_v46 = vpop.permute.xlu1 %2478  ;;  %v2483_v47 = vpop.permute.xlu0 %2482 }
0x1019   : > { %2481 = vst.msk [vmem:[%s341_s13] sm:$0xff] %vm1401_vm4, %v2479_v46 }
0x101a   : > { %2485 = vst.msk [vmem:[%s341_s13] sm:$0xff] %vm1406_vm5, %v2483_v47 }
0x101b   : > { %2489 = vst.msk [vmem:[%s341_s13] sm:$0xff] %vm1411_vm6, %v2487_v45 }
0x1020   : > { %v2491_v61 = vpop.permute.xlu1 %2490  ;;  %v2495_v48 = vpop.permute.xlu0 %2494 }
0x1021   : > { %2493 = vst.msk [vmem:[%s341_s13] sm:$0xff] %vm1416_vm7, %v2491_v61 }
0x1022   : > { %2497 = vst.msk [vmem:[%s341_s13] sm:$0xff] %vm1421_vm8, %v2495_v48 }
0x1023   : > { %2501 = vst.msk [vmem:[%s341_s13] sm:$0xff] %vm1426_vm9, %v2499_v50 }
0x1028   : > { %v2503_v52 = vpop.permute.xlu1 %2502  ;;  %v1429_v54 = vpop.permute.xlu0 %1428 }
0x1029   : > { %2505 = vst.msk [vmem:[%s341_s13] sm:$0xff] %vm1431_vm10, %v2503_v52 }
0x102a   : > { %1432 = vst.msk [vmem:[%s4018_s17] sm:$0xff] %vm1431_vm10, %v1429_v54 }
0x102b PF: > { %s20_s30 = sadd.s32 1, %s3079_s30  }
0x102c   : > { %p17_p4 = scmp.ge.s32.totalorder %s20_s30, 4  }
0x102e   :  { %19 = sbr.rel (!%p17_p4) target bundleno = 1 (0x1), region = 108 }

</bundles_post_ra>
